<compile_context>
chip_gen: v6e
topology: v6e:2x2x1
jax: 0.10.0
libtpu: 0.0.40
codegen_flags: <defaults>
</compile_context>

<pallas_src>
import jax
import jax.numpy as jnp
from jax.experimental import pallas as pl
from jax.experimental.pallas import tpu as pltpu

F32 = jnp.float32
_SQRT_HALF = 0.7071067811865476

C_HID = 3                    # base_channel_size
C_LAT = 6 * C_HID            # 18 latent channels
DEC_CROP = 27 * 4 + 26       # per-side crop implied by the ConvTranspose1d paddings


# ----------------------------------------------------------------------------
# helpers traced inside the kernel
# ----------------------------------------------------------------------------
def _gelu(x):
    # exact erf-based GELU (torch.nn.GELU default)
    return 0.5 * x * (1.0 + jax.lax.erf(x * _SQRT_HALF))


def _taps(h, s):
    """k=3 conv taps at dilation s, fused along the channel axis.

    h: (B, C, L) channel-major, valid on the dilated grid {0, s, 2s, ...}.
    Returns (B, 3C, L) = [h[.-s] ; h ; h[.+s]] with zeros at the sequence
    edges.  The shifts are lane-axis slices/concats (no selection matmuls,
    no VMEM scratch); only the active lanes are ever consumed downstream.
    """
    b, c, l = h.shape
    z = jnp.zeros((b, c, s), h.dtype)
    left = jnp.concatenate([z, h[:, :, : l - s]], axis=2)     # h[l - s], 0 for l < s
    right = jnp.concatenate([h[:, :, s:], z], axis=2)         # h[l + s], 0 for l >= L - s
    return jnp.concatenate([left, h, right], axis=1)


def _cmix(taps, w, b):
    """Encoder channel mix (B, K, L) x (Cout, K) -> (B, Cout, L), + bias.

    The weight is broadcast over batch *inside VMEM*; unlike the decoder
    weights it is at most 18x36 floats (O(KB)), and broadcasting keeps the
    contraction in the canonical batched-matmul ('bmk,bkn') form with no
    in-kernel transposes.  The decoder (where weights are 240x240) uses the
    single 2-D dot in `_mix2d` instead.
    """
    bsz = taps.shape[0]
    wb = jnp.broadcast_to(w[None], (bsz,) + w.shape)
    return jnp.einsum('bok,bkl->bol', wb, taps, preferred_element_type=F32) + b


def _bn_train(h, gamma, beta, s, lc, eps=1e-5):
    """BatchNorm1d (training mode, biased stats) over the active dilated grid.

    Active positions are lanes {0, s, ..., (lc-1)*s}.  Two-pass (mean, then
    centered square) masked statistics for numerical stability.
    """
    bsz, _, l = h.shape
    lane = jax.lax.broadcasted_iota(jnp.int32, (1, 1, l), 2)
    mask = jnp.where((lane & (s - 1)) == 0, 1.0, 0.0)         # s is a power of two
    inv_n = 1.0 / (bsz * lc)
    mean = jnp.sum(jnp.sum(h * mask, axis=2, keepdims=True),
                   axis=0, keepdims=True) * inv_n             # (1, C, 1)
    xc = h - mean
    var = jnp.sum(jnp.sum(xc * xc * mask, axis=2, keepdims=True),
                  axis=0, keepdims=True) * inv_n
    return xc * jax.lax.rsqrt(var + eps) * gamma + beta


def _mix2d(h, w, b):
    """Decoder position-wise channel matmul (B, M, Cin) @ (Cin, Cout) + bias.

    Batch folds into the sublane (M) axis -> one 2-D MXU dot, no per-batch
    weight copies, VMEM footprint independent of B.
    """
    bsz, m, k = h.shape
    o = jnp.dot(h.reshape(bsz * m, k), w, preferred_element_type=F32) + b
    return o.reshape(bsz, m, w.shape[1])


# ----------------------------------------------------------------------------
# parameters (synthetic, deterministic) + one-time packing into 4 slabs
# ----------------------------------------------------------------------------
def init_params(key):
    def w(k, shape, scale=0.1):
        return scale * jax.random.normal(k, shape, dtype=F32)

    ks = iter(jax.random.split(key, 40))
    p = {}
    p['dense1_w'] = w(next(ks), (3, 1, 1)); p['dense1_b'] = w(next(ks), (3,))
    # Encoder convs, torch layout (Cout, Cin, k=3)
    p['l1_w'] = w(next(ks), (3, 3, 3));   p['l1_b'] = w(next(ks), (3,))
    p['l2_w'] = w(next(ks), (3, 3, 3));   p['l2_b'] = w(next(ks), (3,))
    p['bn1_g'] = jnp.ones((3,), F32);     p['bn1_b'] = jnp.zeros((3,), F32)
    p['l4_w'] = w(next(ks), (6, 3, 3));   p['l4_b'] = w(next(ks), (6,))
    p['l5_w'] = w(next(ks), (12, 6, 3));  p['l5_b'] = w(next(ks), (12,))
    p['bn2_g'] = jnp.ones((12,), F32);    p['bn2_b'] = jnp.zeros((12,), F32)
    p['l7_w'] = w(next(ks), (18, 12, 3)); p['l7_b'] = w(next(ks), (18,))
    # self.out: Conv1d(1, 256, 1)
    p['out_w'] = w(next(ks), (256, 1, 1)); p['out_b'] = w(next(ks), (256,))
    # Decoder ConvTranspose1d(k=1), torch layout (Cin, Cout, 1)
    p['d1_w'] = w(next(ks), (256, 240, 1)); p['d1_b'] = w(next(ks), (240,))
    p['d2_w'] = w(next(ks), (240, 240, 1)); p['d2_b'] = w(next(ks), (240,))
    p['d3_w'] = w(next(ks), (240, 240, 1)); p['d3_b'] = w(next(ks), (240,))
    p['d4_w'] = w(next(ks), (240, 240, 1)); p['d4_b'] = w(next(ks), (240,))
    p['d5_w'] = w(next(ks), (240, 80, 1));  p['d5_b'] = w(next(ks), (80,))
    return p


def pack_params(p):
    """One-time packing of the ~28 small tensors into 4 slabs (5 kernel inputs
    total incl. x) so the kernel issues a handful of DMAs instead of ~29."""
    def fuse(wt):   # (Cout, Cin, 3) -> (Cout, 3*Cin); [o, t*Cin + c] = w[o, c, t]
        co, ci, k = wt.shape
        return jnp.transpose(wt, (0, 2, 1)).reshape(co, k * ci)

    # Encoder fused conv-weight slab (42, 36)
    ew = jnp.zeros((42, 36), F32)
    ew = ew.at[0:3, 0:9].set(fuse(p['l1_w']))
    ew = ew.at[3:6, 0:9].set(fuse(p['l2_w']))
    ew = ew.at[6:12, 0:9].set(fuse(p['l4_w']))
    ew = ew.at[12:24, 0:18].set(fuse(p['l5_w']))
    ew = ew.at[24:42, 0:36].set(fuse(p['l7_w']))

    # Column-oriented vector slab (256, 13): used where a (C, 1)-shaped value
    # is needed in the channel-major encoder / self.out stage.
    vcol = jnp.zeros((256, 13), F32)
    cols = [p['dense1_w'].reshape(3), p['dense1_b'], p['l1_b'], p['l2_b'],
            p['bn1_g'], p['bn1_b'], p['l4_b'], p['l5_b'], p['bn2_g'],
            p['bn2_b'], p['l7_b'], p['out_w'].reshape(256), p['out_b']]
    for j, v in enumerate(cols):
        vcol = vcol.at[0:v.shape[0], j].set(v)

    # Row-oriented vector slab (5, 240): decoder biases, used as (1, Cout).
    vrow = jnp.zeros((5, 240), F32)
    rows = [p['d1_b'], p['d2_b'], p['d3_b'], p['d4_b'], p['d5_b']]
    for i, v in enumerate(rows):
        vrow = vrow.at[i, 0:v.shape[0]].set(v)

    # Decoder weight slab (1216, 240)
    dw = jnp.zeros((1216, 240), F32)
    dw = dw.at[0:256, :].set(p['d1_w'][:, :, 0])
    dw = dw.at[256:496, :].set(p['d2_w'][:, :, 0])
    dw = dw.at[496:736, :].set(p['d3_w'][:, :, 0])
    dw = dw.at[736:976, :].set(p['d4_w'][:, :, 0])
    dw = dw.at[976:1216, 0:80].set(p['d5_w'][:, :, 0])

    return {'enc_w': ew, 'vcol': vcol, 'vrow': vrow, 'dec_w': dw}


# ----------------------------------------------------------------------------
# forward (single fused pallas_call)
# ----------------------------------------------------------------------------
def autoencoder_forward(packed, x, timesteps=None):
    """Returns (z, x_hat), matching the torch Autoencoder.forward semantics."""
    del timesteps   # only feeds the unused `sinee` branch (dead compute)
    B, L = x.shape
    half = lambda n: (n - 1) // 2 + 1          # Conv1d(k=3, pad=1, stride=2) length
    L1, L3 = half(L), half(half(L))
    L5 = half(half(half(L)))
    Lz = C_LAT * L5
    Ld = Lz - 2 * DEC_CROP
    assert Ld >= 1, "input length too small for the decoder crop-padding"

    def kernel(x_ref, ew_ref, vc_ref, vr_ref, dw_ref, enc_ref, xhat_ref, stg_ref):
        # ---------------- encoder: channel-major (B, C, L), length on lanes ---
        # dense_1: Conv1d(1, 3, 1) == per-channel scale + bias
        wd1 = vc_ref[0:3, 0:1][None]                       # (1, 3, 1)
        bd1 = vc_ref[0:3, 1:2][None]
        h = x_ref[...][:, None, :] * wd1 + bd1             # (B, 3, L)

        # Dilated (a-trous) encoder: stride-2 layers never compact the length
        # axis; the tap spacing doubles instead and only lanes {0, s, 2s, ...}
        # carry the real signal.  All elementwise / GELU / BN work stays
        # lane-dense; the single compaction happens after the last conv.
        h = _gelu(_cmix(_taps(h, 1), ew_ref[0:3, 0:9], vc_ref[0:3, 2:3][None]))      # l1 (s2)
        h = _gelu(_cmix(_taps(h, 2), ew_ref[3:6, 0:9], vc_ref[0:3, 3:4][None]))      # l2
        h = _bn_train(h, vc_ref[0:3, 4:5][None], vc_ref[0:3, 5:6][None], 2, L1)      # l3
        h = _gelu(_cmix(_taps(h, 2), ew_ref[6:12, 0:9], vc_ref[0:6, 6:7][None]))     # l4 (s2)
        h = _gelu(_cmix(_taps(h, 4), ew_ref[12:24, 0:18], vc_ref[0:12, 7:8][None]))  # l5
        h = _bn_train(h, vc_ref[0:12, 8:9][None], vc_ref[0:12, 9:10][None], 4, L3)   # l6
        h = _gelu(_cmix(_taps(h, 4), ew_ref[24:42, 0:36], vc_ref[0:18, 10:11][None]))  # l7 (s2)
        # h: (B, 18, L), valid on lanes {0, 8, ..., 8*(L5-1)}

        # -------- compact + flatten: z[b, c*L5 + m] = h[b, c, 8*m] ------------
        # One staging store + one sublane-strided load; the flat (B, Lz) latent
        # is written lane-dense, directly in the torch Flatten order.
        stg_ref[...] = jnp.swapaxes(h, 1, 2)                             # (B, L, 18)
        hc = jnp.swapaxes(stg_ref[:, pl.ds(0, L5, stride=8), :], 1, 2)   # (B, 18, L5)
        for c in range(C_LAT):          # 18 iterations: architecture constant
            enc_ref[:, c * L5:(c + 1) * L5] = hc[:, c, :]

        # -------- self.out + decoder (crop-first), channels-last --------------
        # Every decoder layer is ConvTranspose1d(k=1) = crop + position-wise
        # channel matmul, so the total crop commutes with the compute and only
        # the surviving Ld flat-latent positions are processed.
        zwin = enc_ref[:, DEC_CROP:DEC_CROP + Ld]                        # (B, Ld)
        d_t = vc_ref[0:256, 11:12][None] * zwin[:, None, :] \
            + vc_ref[0:256, 12:13][None]                                 # (B, 256, Ld)
        d = jnp.swapaxes(d_t, 1, 2)                                      # (B, Ld, 256)
        d = _gelu(_mix2d(d, dw_ref[0:256, :], vr_ref[0:1, 0:240]))
        d = _gelu(_mix2d(d, dw_ref[256:496, :], vr_ref[1:2, 0:240]))
        d = _gelu(_mix2d(d, dw_ref[496:736, :], vr_ref[2:3, 0:240]))
        d = _gelu(_mix2d(d, dw_ref[736:976, :], vr_ref[3:4, 0:240]))
        d = _mix2d(d, dw_ref[976:1216, 0:80], vr_ref[4:5, 0:80])         # (B, Ld, 80)
        # F.pad(decoder_out, (0, 1)): one trailing zero position
        xhat_ref[:, 0:Ld, :] = d
        xhat_ref[:, Ld:Ld + 1, :] = jnp.zeros((B, 1, 80), F32)

    vmem = pl.BlockSpec(memory_space=pltpu.MemorySpace.VMEM)
    enc, xhat = pl.pallas_call(
        kernel,
        out_shape=(jax.ShapeDtypeStruct((B, Lz), F32),          # flat latent z
                   jax.ShapeDtypeStruct((B, Ld + 1, 80), F32)),
        in_specs=[vmem] * 5,
        out_specs=(vmem, vmem),
        scratch_shapes=[pltpu.VMEM((B, L, C_LAT), F32)],        # final-compaction staging
        compiler_params=pltpu.CompilerParams(vmem_limit_bytes=32 * 1024 * 1024),
    )(x.astype(F32), packed['enc_w'], packed['vcol'], packed['vrow'], packed['dec_w'])
    # No grid: BatchNorm couples the whole (tiny) batch and everything fits in
    # VMEM on v5e/v6e/v7x.  At larger B, a batch-"parallel" grid axis (with a
    # separate BN-stats pass) would engage v7x's second TensorCore.
    return enc, jnp.transpose(xhat, (0, 2, 1))                  # x_hat in NCW


# ----------------------------------------------------------------------------
# pure-JAX reference (no Pallas) for validation
# ----------------------------------------------------------------------------
def reference_forward(p, x):
    B, L = x.shape
    h = x[:, None, :] * p['dense1_w'].reshape(1, 3, 1) + p['dense1_b'].reshape(1, 3, 1)

    def conv(h, w, b, stride):
        o = jax.lax.conv_general_dilated(h, w, window_strides=(stride,),
                                         padding=((1, 1),),
                                         dimension_numbers=('NCH', 'OIH', 'NCH'))
        return o + b.reshape(1, -1, 1)

    def bn(h, g, be, eps=1e-5):
        mean = h.mean(axis=(0, 2), keepdims=True)
        var = ((h - mean) ** 2).mean(axis=(0, 2), keepdims=True)
        return (h - mean) * jax.lax.rsqrt(var + eps) * g.reshape(1, -1, 1) \
            + be.reshape(1, -1, 1)

    h = _gelu(conv(h, p['l1_w'], p['l1_b'], 2))
    h = _gelu(conv(h, p['l2_w'], p['l2_b'], 1))
    h = bn(h, p['bn1_g'], p['bn1_b'])
    h = _gelu(conv(h, p['l4_w'], p['l4_b'], 2))
    h = _gelu(conv(h, p['l5_w'], p['l5_b'], 1))
    h = bn(h, p['bn2_g'], p['bn2_b'])
    h = _gelu(conv(h, p['l7_w'], p['l7_b'], 2))
    z = h.reshape(B, -1)

    d = z[:, None, :] * p['out_w'].reshape(1, 256, 1) + p['out_b'].reshape(1, 256, 1)
    pads = (27, 27, 27, 27, 26)
    ws = (p['d1_w'], p['d2_w'], p['d3_w'], p['d4_w'], p['d5_w'])
    bs = (p['d1_b'], p['d2_b'], p['d3_b'], p['d4_b'], p['d5_b'])
    for i in range(5):
        d = d[:, :, pads[i]:d.shape[2] - pads[i]]
        d = jnp.einsum('bcl,co->bol', d, ws[i][:, :, 0]) + bs[i].reshape(1, -1, 1)
        if i < 4:
            d = _gelu(d)
    return z, jnp.pad(d, ((0, 0), (0, 0), (0, 1)))


if __name__ == "__main__":
    key = jax.random.PRNGKey(0)
    pkey, xkey, tkey = jax.random.split(key, 3)
    params = init_params(pkey)
    packed = pack_params(params)     # one-time packing (would live in init in practice)

    # Smallest shapes consistent with the module: the decoder's crop-padding
    # needs 18 * L5 >= 269  =>  L >= 113;  L = 120 is convenient.
    B, L, T = 2, 120, 8
    x = jax.random.normal(xkey, (B, L), F32)
    timesteps = jax.random.normal(tkey, (T,), F32)

    z, x_hat = autoencoder_forward(packed, x, timesteps)
    jax.block_until_ready((z, x_hat))
    assert z.shape == (B, 270) and x_hat.shape == (B, 80, 3)

    # Validate against the pure-JAX reference (loose tolerance: matmul/conv
    # precision defaults differ between XLA and the in-kernel MXU path).
    z_ref, x_ref = reference_forward(params, x)
    assert bool(jnp.allclose(z, z_ref, rtol=2e-1, atol=5e-2)), "latent mismatch"
    assert bool(jnp.allclose(x_hat, x_ref, rtol=2e-1, atol=5e-2)), "x_hat mismatch"
    print("KERNEL_OK")
</pallas_src>

<mosaic_0001>
module attributes {stable_mosaic.version = 11 : i64} {
  func.func @kernel(%arg0: memref<2x120xf32, #tpu.memory_space<vmem>>, %arg1: memref<42x36xf32, #tpu.memory_space<vmem>>, %arg2: memref<256x13xf32, #tpu.memory_space<vmem>>, %arg3: memref<5x240xf32, #tpu.memory_space<vmem>>, %arg4: memref<1216x240xf32, #tpu.memory_space<vmem>>, %arg5: memref<2x270xf32, #tpu.memory_space<vmem>>, %arg6: memref<2x3x80xf32, #tpu.memory_space<vmem>>, %arg7: memref<2x120x18xf32, #tpu.memory_space<vmem>>) attributes {dimension_semantics = [], scalar_prefetch = 0 : i64, scratch_operands = 1 : i64, tpu.core_type = #tpu.core_type<tc>} {
    %c0 = arith.constant 0 : index
    %c0_0 = arith.constant 0 : index
    %0 = vector.load %arg2[%c0, %c0_0] : memref<256x13xf32, #tpu.memory_space<vmem>>, vector<3x1xf32>
    %1 = vector.shape_cast %0 : vector<3x1xf32> to vector<1x3x1xf32>
    %c0_1 = arith.constant 0 : index
    %c1 = arith.constant 1 : index
    %2 = vector.load %arg2[%c0_1, %c1] : memref<256x13xf32, #tpu.memory_space<vmem>>, vector<3x1xf32>
    %3 = vector.shape_cast %2 : vector<3x1xf32> to vector<1x3x1xf32>
    %c0_2 = arith.constant 0 : index
    %c0_3 = arith.constant 0 : index
    %4 = vector.load %arg0[%c0_2, %c0_3] : memref<2x120xf32, #tpu.memory_space<vmem>>, vector<2x120xf32>
    %5 = vector.shape_cast %4 : vector<2x120xf32> to vector<2x1x120xf32>
    %6 = vector.broadcast %5 : vector<2x1x120xf32> to vector<2x3x120xf32>
    %7 = vector.broadcast %1 : vector<1x3x1xf32> to vector<2x3x120xf32>
    %8 = arith.mulf %6, %7 : vector<2x3x120xf32>
    %9 = vector.broadcast %3 : vector<1x3x1xf32> to vector<2x3x120xf32>
    %10 = arith.addf %8, %9 : vector<2x3x120xf32>
    %cst = arith.constant 0.000000e+00 : f32
    %11 = vector.broadcast %cst : f32 to vector<2x3x1xf32>
    %12 = vector.extract_strided_slice %10 {offsets = [0, 0, 0], sizes = [2, 3, 119], strides = [1, 1, 1]} : vector<2x3x120xf32> to vector<2x3x119xf32>
    %13 = tpu.concatenate %11, %12 in 2 : vector<2x3x1xf32>, vector<2x3x119xf32> -> vector<2x3x120xf32>
    %14 = vector.extract_strided_slice %10 {offsets = [0, 0, 1], sizes = [2, 3, 119], strides = [1, 1, 1]} : vector<2x3x120xf32> to vector<2x3x119xf32>
    %15 = tpu.concatenate %14, %11 in 2 : vector<2x3x119xf32>, vector<2x3x1xf32> -> vector<2x3x120xf32>
    %16 = tpu.concatenate %13, %10, %15 in 1 : vector<2x3x120xf32>, vector<2x3x120xf32>, vector<2x3x120xf32> -> vector<2x9x120xf32>
    %c0_4 = arith.constant 0 : index
    %c0_5 = arith.constant 0 : index
    %17 = vector.load %arg1[%c0_4, %c0_5] : memref<42x36xf32, #tpu.memory_space<vmem>>, vector<3x9xf32>
    %c0_6 = arith.constant 0 : index
    %c2 = arith.constant 2 : index
    %18 = vector.load %arg2[%c0_6, %c2] : memref<256x13xf32, #tpu.memory_space<vmem>>, vector<3x1xf32>
    %19 = vector.shape_cast %18 : vector<3x1xf32> to vector<1x3x1xf32>
    %20 = vector.shape_cast %17 : vector<3x9xf32> to vector<1x3x9xf32>
    %21 = vector.shape_cast %20 : vector<1x3x9xf32> to vector<1x3x9xf32>
    %22 = vector.broadcast %21 : vector<1x3x9xf32> to vector<2x3x9xf32>
    "tpu.trace_start"() <{level = 10 : i32, message = "bok,bkl->bol"}> : () -> ()
    %cst_7 = arith.constant dense<0.000000e+00> : vector<2x3x120xf32>
    %23 = tpu.matmul %22, %16, %cst_7 {dimension_numbers = #tpu.dot_dimension_numbers<[2], [1], [1], [2], [0, 0, 0, 1, 1, 2], [0], [0]>} : vector<2x3x9xf32>, vector<2x9x120xf32>, vector<2x3x120xf32> -> vector<2x3x120xf32>
    "tpu.trace_stop"() : () -> ()
    %24 = vector.broadcast %19 : vector<1x3x1xf32> to vector<2x3x120xf32>
    %25 = arith.addf %23, %24 : vector<2x3x120xf32>
    %cst_8 = arith.constant 5.000000e-01 : f32
    %26 = vector.broadcast %cst_8 : f32 to vector<2x3x120xf32>
    %27 = arith.mulf %26, %25 : vector<2x3x120xf32>
    %cst_9 = arith.constant 0.707106769 : f32
    %28 = vector.broadcast %cst_9 : f32 to vector<2x3x120xf32>
    %29 = arith.mulf %25, %28 : vector<2x3x120xf32>
    %30 = math.erf %29 : vector<2x3x120xf32>
    %cst_10 = arith.constant 1.000000e+00 : f32
    %31 = vector.broadcast %cst_10 : f32 to vector<2x3x120xf32>
    %32 = arith.addf %31, %30 : vector<2x3x120xf32>
    %33 = arith.mulf %27, %32 : vector<2x3x120xf32>
    %cst_11 = arith.constant 0.000000e+00 : f32
    %34 = vector.broadcast %cst_11 : f32 to vector<2x3x2xf32>
    %35 = vector.extract_strided_slice %33 {offsets = [0, 0, 0], sizes = [2, 3, 118], strides = [1, 1, 1]} : vector<2x3x120xf32> to vector<2x3x118xf32>
    %36 = tpu.concatenate %34, %35 in 2 : vector<2x3x2xf32>, vector<2x3x118xf32> -> vector<2x3x120xf32>
    %37 = vector.extract_strided_slice %33 {offsets = [0, 0, 2], sizes = [2, 3, 118], strides = [1, 1, 1]} : vector<2x3x120xf32> to vector<2x3x118xf32>
    %38 = tpu.concatenate %37, %34 in 2 : vector<2x3x118xf32>, vector<2x3x2xf32> -> vector<2x3x120xf32>
    %39 = tpu.concatenate %36, %33, %38 in 1 : vector<2x3x120xf32>, vector<2x3x120xf32>, vector<2x3x120xf32> -> vector<2x9x120xf32>
    %c3 = arith.constant 3 : index
    %c0_12 = arith.constant 0 : index
    %40 = vector.load %arg1[%c3, %c0_12] : memref<42x36xf32, #tpu.memory_space<vmem>>, vector<3x9xf32>
    %c0_13 = arith.constant 0 : index
    %c3_14 = arith.constant 3 : index
    %41 = vector.load %arg2[%c0_13, %c3_14] : memref<256x13xf32, #tpu.memory_space<vmem>>, vector<3x1xf32>
    %42 = vector.shape_cast %41 : vector<3x1xf32> to vector<1x3x1xf32>
    %43 = vector.shape_cast %40 : vector<3x9xf32> to vector<1x3x9xf32>
    %44 = vector.shape_cast %43 : vector<1x3x9xf32> to vector<1x3x9xf32>
    %45 = vector.broadcast %44 : vector<1x3x9xf32> to vector<2x3x9xf32>
    "tpu.trace_start"() <{level = 10 : i32, message = "bok,bkl->bol"}> : () -> ()
    %cst_15 = arith.constant dense<0.000000e+00> : vector<2x3x120xf32>
    %46 = tpu.matmul %45, %39, %cst_15 {dimension_numbers = #tpu.dot_dimension_numbers<[2], [1], [1], [2], [0, 0, 0, 1, 1, 2], [0], [0]>} : vector<2x3x9xf32>, vector<2x9x120xf32>, vector<2x3x120xf32> -> vector<2x3x120xf32>
    "tpu.trace_stop"() : () -> ()
    %47 = vector.broadcast %42 : vector<1x3x1xf32> to vector<2x3x120xf32>
    %48 = arith.addf %46, %47 : vector<2x3x120xf32>
    %cst_16 = arith.constant 5.000000e-01 : f32
    %49 = vector.broadcast %cst_16 : f32 to vector<2x3x120xf32>
    %50 = arith.mulf %49, %48 : vector<2x3x120xf32>
    %cst_17 = arith.constant 0.707106769 : f32
    %51 = vector.broadcast %cst_17 : f32 to vector<2x3x120xf32>
    %52 = arith.mulf %48, %51 : vector<2x3x120xf32>
    %53 = math.erf %52 : vector<2x3x120xf32>
    %cst_18 = arith.constant 1.000000e+00 : f32
    %54 = vector.broadcast %cst_18 : f32 to vector<2x3x120xf32>
    %55 = arith.addf %54, %53 : vector<2x3x120xf32>
    %56 = arith.mulf %50, %55 : vector<2x3x120xf32>
    %c0_19 = arith.constant 0 : index
    %c4 = arith.constant 4 : index
    %57 = vector.load %arg2[%c0_19, %c4] : memref<256x13xf32, #tpu.memory_space<vmem>>, vector<3x1xf32>
    %58 = vector.shape_cast %57 : vector<3x1xf32> to vector<1x3x1xf32>
    %c0_20 = arith.constant 0 : index
    %c5 = arith.constant 5 : index
    %59 = vector.load %arg2[%c0_20, %c5] : memref<256x13xf32, #tpu.memory_space<vmem>>, vector<3x1xf32>
    %60 = vector.shape_cast %59 : vector<3x1xf32> to vector<1x3x1xf32>
    %61 = tpu.iota {dimensions = array<i32: 2>} : vector<1x1x120xi32>
    %c1_i32 = arith.constant 1 : i32
    %62 = vector.broadcast %c1_i32 : i32 to vector<1x1x120xi32>
    %63 = arith.andi %61, %62 : vector<1x1x120xi32>
    %c0_i32 = arith.constant 0 : i32
    %64 = vector.broadcast %c0_i32 : i32 to vector<1x1x120xi32>
    %65 = arith.cmpi eq, %63, %64 : vector<1x1x120xi32>
    %cst_21 = arith.constant 1.000000e+00 : f32
    %cst_22 = arith.constant 0.000000e+00 : f32
    %66 = vector.broadcast %cst_21 : f32 to vector<1x1x120xf32>
    %67 = vector.broadcast %cst_22 : f32 to vector<1x1x120xf32>
    %68 = arith.select %65, %66, %67 : vector<1x1x120xi1>, vector<1x1x120xf32>
    %69 = vector.broadcast %68 : vector<1x1x120xf32> to vector<2x3x120xf32>
    %70 = arith.mulf %56, %69 : vector<2x3x120xf32>
    %cst_23 = arith.constant dense<0.000000e+00> : vector<2x3xf32>
    %71 = vector.multi_reduction <add>, %70, %cst_23 [2] : vector<2x3x120xf32> to vector<2x3xf32>
    %72 = vector.shape_cast %71 : vector<2x3xf32> to vector<2x3x1xf32>
    %cst_24 = arith.constant dense<0.000000e+00> : vector<3x1xf32>
    %73 = vector.multi_reduction <add>, %72, %cst_24 [0] : vector<2x3x1xf32> to vector<3x1xf32>
    %74 = vector.shape_cast %73 : vector<3x1xf32> to vector<1x3x1xf32>
    %cst_25 = arith.constant 0.00833333377 : f32
    %75 = vector.broadcast %cst_25 : f32 to vector<1x3x1xf32>
    %76 = arith.mulf %74, %75 : vector<1x3x1xf32>
    %77 = vector.broadcast %76 : vector<1x3x1xf32> to vector<2x3x120xf32>
    %78 = arith.subf %56, %77 : vector<2x3x120xf32>
    %79 = arith.mulf %78, %78 : vector<2x3x120xf32>
    %80 = vector.broadcast %68 : vector<1x1x120xf32> to vector<2x3x120xf32>
    %81 = arith.mulf %79, %80 : vector<2x3x120xf32>
    %cst_26 = arith.constant dense<0.000000e+00> : vector<2x3xf32>
    %82 = vector.multi_reduction <add>, %81, %cst_26 [2] : vector<2x3x120xf32> to vector<2x3xf32>
    %83 = vector.shape_cast %82 : vector<2x3xf32> to vector<2x3x1xf32>
    %cst_27 = arith.constant dense<0.000000e+00> : vector<3x1xf32>
    %84 = vector.multi_reduction <add>, %83, %cst_27 [0] : vector<2x3x1xf32> to vector<3x1xf32>
    %85 = vector.shape_cast %84 : vector<3x1xf32> to vector<1x3x1xf32>
    %cst_28 = arith.constant 0.00833333377 : f32
    %86 = vector.broadcast %cst_28 : f32 to vector<1x3x1xf32>
    %87 = arith.mulf %85, %86 : vector<1x3x1xf32>
    %cst_29 = arith.constant 9.99999974E-6 : f32
    %88 = vector.broadcast %cst_29 : f32 to vector<1x3x1xf32>
    %89 = arith.addf %87, %88 : vector<1x3x1xf32>
    %90 = math.rsqrt %89 : vector<1x3x1xf32>
    %91 = vector.broadcast %90 : vector<1x3x1xf32> to vector<2x3x120xf32>
    %92 = arith.mulf %78, %91 : vector<2x3x120xf32>
    %93 = vector.broadcast %58 : vector<1x3x1xf32> to vector<2x3x120xf32>
    %94 = arith.mulf %92, %93 : vector<2x3x120xf32>
    %95 = vector.broadcast %60 : vector<1x3x1xf32> to vector<2x3x120xf32>
    %96 = arith.addf %94, %95 : vector<2x3x120xf32>
    %cst_30 = arith.constant 0.000000e+00 : f32
    %97 = vector.broadcast %cst_30 : f32 to vector<2x3x2xf32>
    %98 = vector.extract_strided_slice %96 {offsets = [0, 0, 0], sizes = [2, 3, 118], strides = [1, 1, 1]} : vector<2x3x120xf32> to vector<2x3x118xf32>
    %99 = tpu.concatenate %97, %98 in 2 : vector<2x3x2xf32>, vector<2x3x118xf32> -> vector<2x3x120xf32>
    %100 = vector.extract_strided_slice %96 {offsets = [0, 0, 2], sizes = [2, 3, 118], strides = [1, 1, 1]} : vector<2x3x120xf32> to vector<2x3x118xf32>
    %101 = tpu.concatenate %100, %97 in 2 : vector<2x3x118xf32>, vector<2x3x2xf32> -> vector<2x3x120xf32>
    %102 = tpu.concatenate %99, %96, %101 in 1 : vector<2x3x120xf32>, vector<2x3x120xf32>, vector<2x3x120xf32> -> vector<2x9x120xf32>
    %c6 = arith.constant 6 : index
    %c0_31 = arith.constant 0 : index
    %103 = vector.load %arg1[%c6, %c0_31] : memref<42x36xf32, #tpu.memory_space<vmem>>, vector<6x9xf32>
    %c0_32 = arith.constant 0 : index
    %c6_33 = arith.constant 6 : index
    %104 = vector.load %arg2[%c0_32, %c6_33] : memref<256x13xf32, #tpu.memory_space<vmem>>, vector<6x1xf32>
    %105 = vector.shape_cast %104 : vector<6x1xf32> to vector<1x6x1xf32>
    %106 = vector.shape_cast %103 : vector<6x9xf32> to vector<1x6x9xf32>
    %107 = vector.shape_cast %106 : vector<1x6x9xf32> to vector<1x6x9xf32>
    %108 = vector.broadcast %107 : vector<1x6x9xf32> to vector<2x6x9xf32>
    "tpu.trace_start"() <{level = 10 : i32, message = "bok,bkl->bol"}> : () -> ()
    %cst_34 = arith.constant dense<0.000000e+00> : vector<2x6x120xf32>
    %109 = tpu.matmul %108, %102, %cst_34 {dimension_numbers = #tpu.dot_dimension_numbers<[2], [1], [1], [2], [0, 0, 0, 1, 1, 2], [0], [0]>} : vector<2x6x9xf32>, vector<2x9x120xf32>, vector<2x6x120xf32> -> vector<2x6x120xf32>
    "tpu.trace_stop"() : () -> ()
    %110 = vector.broadcast %105 : vector<1x6x1xf32> to vector<2x6x120xf32>
    %111 = arith.addf %109, %110 : vector<2x6x120xf32>
    %cst_35 = arith.constant 5.000000e-01 : f32
    %112 = vector.broadcast %cst_35 : f32 to vector<2x6x120xf32>
    %113 = arith.mulf %112, %111 : vector<2x6x120xf32>
    %cst_36 = arith.constant 0.707106769 : f32
    %114 = vector.broadcast %cst_36 : f32 to vector<2x6x120xf32>
    %115 = arith.mulf %111, %114 : vector<2x6x120xf32>
    %116 = math.erf %115 : vector<2x6x120xf32>
    %cst_37 = arith.constant 1.000000e+00 : f32
    %117 = vector.broadcast %cst_37 : f32 to vector<2x6x120xf32>
    %118 = arith.addf %117, %116 : vector<2x6x120xf32>
    %119 = arith.mulf %113, %118 : vector<2x6x120xf32>
    %cst_38 = arith.constant 0.000000e+00 : f32
    %120 = vector.broadcast %cst_38 : f32 to vector<2x6x4xf32>
    %121 = vector.extract_strided_slice %119 {offsets = [0, 0, 0], sizes = [2, 6, 116], strides = [1, 1, 1]} : vector<2x6x120xf32> to vector<2x6x116xf32>
    %122 = tpu.concatenate %120, %121 in 2 : vector<2x6x4xf32>, vector<2x6x116xf32> -> vector<2x6x120xf32>
    %123 = vector.extract_strided_slice %119 {offsets = [0, 0, 4], sizes = [2, 6, 116], strides = [1, 1, 1]} : vector<2x6x120xf32> to vector<2x6x116xf32>
    %124 = tpu.concatenate %123, %120 in 2 : vector<2x6x116xf32>, vector<2x6x4xf32> -> vector<2x6x120xf32>
    %125 = tpu.concatenate %122, %119, %124 in 1 : vector<2x6x120xf32>, vector<2x6x120xf32>, vector<2x6x120xf32> -> vector<2x18x120xf32>
    %c12 = arith.constant 12 : index
    %c0_39 = arith.constant 0 : index
    %126 = vector.load %arg1[%c12, %c0_39] : memref<42x36xf32, #tpu.memory_space<vmem>>, vector<12x18xf32>
    %c0_40 = arith.constant 0 : index
    %c7 = arith.constant 7 : index
    %127 = vector.load %arg2[%c0_40, %c7] : memref<256x13xf32, #tpu.memory_space<vmem>>, vector<12x1xf32>
    %128 = vector.shape_cast %127 : vector<12x1xf32> to vector<1x12x1xf32>
    %129 = vector.shape_cast %126 : vector<12x18xf32> to vector<1x12x18xf32>
    %130 = vector.shape_cast %129 : vector<1x12x18xf32> to vector<1x12x18xf32>
    %131 = vector.broadcast %130 : vector<1x12x18xf32> to vector<2x12x18xf32>
    "tpu.trace_start"() <{level = 10 : i32, message = "bok,bkl->bol"}> : () -> ()
    %cst_41 = arith.constant dense<0.000000e+00> : vector<2x12x120xf32>
    %132 = tpu.matmul %131, %125, %cst_41 {dimension_numbers = #tpu.dot_dimension_numbers<[2], [1], [1], [2], [0, 0, 0, 1, 1, 2], [0], [0]>} : vector<2x12x18xf32>, vector<2x18x120xf32>, vector<2x12x120xf32> -> vector<2x12x120xf32>
    "tpu.trace_stop"() : () -> ()
    %133 = vector.broadcast %128 : vector<1x12x1xf32> to vector<2x12x120xf32>
    %134 = arith.addf %132, %133 : vector<2x12x120xf32>
    %cst_42 = arith.constant 5.000000e-01 : f32
    %135 = vector.broadcast %cst_42 : f32 to vector<2x12x120xf32>
    %136 = arith.mulf %135, %134 : vector<2x12x120xf32>
    %cst_43 = arith.constant 0.707106769 : f32
    %137 = vector.broadcast %cst_43 : f32 to vector<2x12x120xf32>
    %138 = arith.mulf %134, %137 : vector<2x12x120xf32>
    %139 = math.erf %138 : vector<2x12x120xf32>
    %cst_44 = arith.constant 1.000000e+00 : f32
    %140 = vector.broadcast %cst_44 : f32 to vector<2x12x120xf32>
    %141 = arith.addf %140, %139 : vector<2x12x120xf32>
    %142 = arith.mulf %136, %141 : vector<2x12x120xf32>
    %c0_45 = arith.constant 0 : index
    %c8 = arith.constant 8 : index
    %143 = vector.load %arg2[%c0_45, %c8] : memref<256x13xf32, #tpu.memory_space<vmem>>, vector<12x1xf32>
    %144 = vector.shape_cast %143 : vector<12x1xf32> to vector<1x12x1xf32>
    %c0_46 = arith.constant 0 : index
    %c9 = arith.constant 9 : index
    %145 = vector.load %arg2[%c0_46, %c9] : memref<256x13xf32, #tpu.memory_space<vmem>>, vector<12x1xf32>
    %146 = vector.shape_cast %145 : vector<12x1xf32> to vector<1x12x1xf32>
    %147 = tpu.iota {dimensions = array<i32: 2>} : vector<1x1x120xi32>
    %c3_i32 = arith.constant 3 : i32
    %148 = vector.broadcast %c3_i32 : i32 to vector<1x1x120xi32>
    %149 = arith.andi %147, %148 : vector<1x1x120xi32>
    %c0_i32_47 = arith.constant 0 : i32
    %150 = vector.broadcast %c0_i32_47 : i32 to vector<1x1x120xi32>
    %151 = arith.cmpi eq, %149, %150 : vector<1x1x120xi32>
    %cst_48 = arith.constant 1.000000e+00 : f32
    %cst_49 = arith.constant 0.000000e+00 : f32
    %152 = vector.broadcast %cst_48 : f32 to vector<1x1x120xf32>
    %153 = vector.broadcast %cst_49 : f32 to vector<1x1x120xf32>
    %154 = arith.select %151, %152, %153 : vector<1x1x120xi1>, vector<1x1x120xf32>
    %155 = vector.broadcast %154 : vector<1x1x120xf32> to vector<2x12x120xf32>
    %156 = arith.mulf %142, %155 : vector<2x12x120xf32>
    %cst_50 = arith.constant dense<0.000000e+00> : vector<2x12xf32>
    %157 = vector.multi_reduction <add>, %156, %cst_50 [2] : vector<2x12x120xf32> to vector<2x12xf32>
    %158 = vector.shape_cast %157 : vector<2x12xf32> to vector<2x12x1xf32>
    %cst_51 = arith.constant dense<0.000000e+00> : vector<12x1xf32>
    %159 = vector.multi_reduction <add>, %158, %cst_51 [0] : vector<2x12x1xf32> to vector<12x1xf32>
    %160 = vector.shape_cast %159 : vector<12x1xf32> to vector<1x12x1xf32>
    %cst_52 = arith.constant 0.0166666675 : f32
    %161 = vector.broadcast %cst_52 : f32 to vector<1x12x1xf32>
    %162 = arith.mulf %160, %161 : vector<1x12x1xf32>
    %163 = vector.broadcast %162 : vector<1x12x1xf32> to vector<2x12x120xf32>
    %164 = arith.subf %142, %163 : vector<2x12x120xf32>
    %165 = arith.mulf %164, %164 : vector<2x12x120xf32>
    %166 = vector.broadcast %154 : vector<1x1x120xf32> to vector<2x12x120xf32>
    %167 = arith.mulf %165, %166 : vector<2x12x120xf32>
    %cst_53 = arith.constant dense<0.000000e+00> : vector<2x12xf32>
    %168 = vector.multi_reduction <add>, %167, %cst_53 [2] : vector<2x12x120xf32> to vector<2x12xf32>
    %169 = vector.shape_cast %168 : vector<2x12xf32> to vector<2x12x1xf32>
    %cst_54 = arith.constant dense<0.000000e+00> : vector<12x1xf32>
    %170 = vector.multi_reduction <add>, %169, %cst_54 [0] : vector<2x12x1xf32> to vector<12x1xf32>
    %171 = vector.shape_cast %170 : vector<12x1xf32> to vector<1x12x1xf32>
    %cst_55 = arith.constant 0.0166666675 : f32
    %172 = vector.broadcast %cst_55 : f32 to vector<1x12x1xf32>
    %173 = arith.mulf %171, %172 : vector<1x12x1xf32>
    %cst_56 = arith.constant 9.99999974E-6 : f32
    %174 = vector.broadcast %cst_56 : f32 to vector<1x12x1xf32>
    %175 = arith.addf %173, %174 : vector<1x12x1xf32>
    %176 = math.rsqrt %175 : vector<1x12x1xf32>
    %177 = vector.broadcast %176 : vector<1x12x1xf32> to vector<2x12x120xf32>
    %178 = arith.mulf %164, %177 : vector<2x12x120xf32>
    %179 = vector.broadcast %144 : vector<1x12x1xf32> to vector<2x12x120xf32>
    %180 = arith.mulf %178, %179 : vector<2x12x120xf32>
    %181 = vector.broadcast %146 : vector<1x12x1xf32> to vector<2x12x120xf32>
    %182 = arith.addf %180, %181 : vector<2x12x120xf32>
    %cst_57 = arith.constant 0.000000e+00 : f32
    %183 = vector.broadcast %cst_57 : f32 to vector<2x12x4xf32>
    %184 = vector.extract_strided_slice %182 {offsets = [0, 0, 0], sizes = [2, 12, 116], strides = [1, 1, 1]} : vector<2x12x120xf32> to vector<2x12x116xf32>
    %185 = tpu.concatenate %183, %184 in 2 : vector<2x12x4xf32>, vector<2x12x116xf32> -> vector<2x12x120xf32>
    %186 = vector.extract_strided_slice %182 {offsets = [0, 0, 4], sizes = [2, 12, 116], strides = [1, 1, 1]} : vector<2x12x120xf32> to vector<2x12x116xf32>
    %187 = tpu.concatenate %186, %183 in 2 : vector<2x12x116xf32>, vector<2x12x4xf32> -> vector<2x12x120xf32>
    %188 = tpu.concatenate %185, %182, %187 in 1 : vector<2x12x120xf32>, vector<2x12x120xf32>, vector<2x12x120xf32> -> vector<2x36x120xf32>
    %c24 = arith.constant 24 : index
    %c0_58 = arith.constant 0 : index
    %189 = vector.load %arg1[%c24, %c0_58] : memref<42x36xf32, #tpu.memory_space<vmem>>, vector<18x36xf32>
    %c0_59 = arith.constant 0 : index
    %c10 = arith.constant 10 : index
    %190 = vector.load %arg2[%c0_59, %c10] : memref<256x13xf32, #tpu.memory_space<vmem>>, vector<18x1xf32>
    %191 = vector.shape_cast %190 : vector<18x1xf32> to vector<1x18x1xf32>
    %192 = vector.shape_cast %189 : vector<18x36xf32> to vector<1x18x36xf32>
    %193 = vector.shape_cast %192 : vector<1x18x36xf32> to vector<1x18x36xf32>
    %194 = vector.broadcast %193 : vector<1x18x36xf32> to vector<2x18x36xf32>
    "tpu.trace_start"() <{level = 10 : i32, message = "bok,bkl->bol"}> : () -> ()
    %cst_60 = arith.constant dense<0.000000e+00> : vector<2x18x120xf32>
    %195 = tpu.matmul %194, %188, %cst_60 {dimension_numbers = #tpu.dot_dimension_numbers<[2], [1], [1], [2], [0, 0, 0, 1, 1, 2], [0], [0]>} : vector<2x18x36xf32>, vector<2x36x120xf32>, vector<2x18x120xf32> -> vector<2x18x120xf32>
    "tpu.trace_stop"() : () -> ()
    %196 = vector.broadcast %191 : vector<1x18x1xf32> to vector<2x18x120xf32>
    %197 = arith.addf %195, %196 : vector<2x18x120xf32>
    %cst_61 = arith.constant 5.000000e-01 : f32
    %198 = vector.broadcast %cst_61 : f32 to vector<2x18x120xf32>
    %199 = arith.mulf %198, %197 : vector<2x18x120xf32>
    %cst_62 = arith.constant 0.707106769 : f32
    %200 = vector.broadcast %cst_62 : f32 to vector<2x18x120xf32>
    %201 = arith.mulf %197, %200 : vector<2x18x120xf32>
    %202 = math.erf %201 : vector<2x18x120xf32>
    %cst_63 = arith.constant 1.000000e+00 : f32
    %203 = vector.broadcast %cst_63 : f32 to vector<2x18x120xf32>
    %204 = arith.addf %203, %202 : vector<2x18x120xf32>
    %205 = arith.mulf %199, %204 : vector<2x18x120xf32>
    %206 = tpu.transpose %205, [0, 2, 1] : vector<2x18x120xf32> -> vector<2x120x18xf32>
    %c0_64 = arith.constant 0 : index
    %c0_65 = arith.constant 0 : index
    %c0_66 = arith.constant 0 : index
    %207 = vector.load %arg7[%c0_64, %c0_65, %c0_66] : memref<2x120x18xf32, #tpu.memory_space<vmem>>, vector<2x120x18xf32>
    tpu.vector_store %arg7[%c0_64, %c0_65, %c0_66], %206 {strides = array<i32>} : memref<2x120x18xf32, #tpu.memory_space<vmem>>, vector<2x120x18xf32>,
    %c0_67 = arith.constant 0 : index
    %c0_68 = arith.constant 0 : index
    %c0_69 = arith.constant 0 : index
    %208 = tpu.strided_load %arg7[%c0_67, %c0_68, %c0_69] {strides = array<i32: 1, 8, 1>} : memref<2x120x18xf32, #tpu.memory_space<vmem>>, vector<2x15x18xf32>
    %209 = tpu.transpose %208, [0, 2, 1] : vector<2x15x18xf32> -> vector<2x18x15xf32>
    %210 = vector.extract_strided_slice %209 {offsets = [0, 0, 0], sizes = [2, 1, 15], strides = [1, 1, 1]} : vector<2x18x15xf32> to vector<2x1x15xf32>
    %211 = vector.shape_cast %210 : vector<2x1x15xf32> to vector<2x15xf32>
    %c0_70 = arith.constant 0 : index
    %c0_71 = arith.constant 0 : index
    %212 = vector.load %arg5[%c0_70, %c0_71] : memref<2x270xf32, #tpu.memory_space<vmem>>, vector<2x15xf32>
    tpu.vector_store %arg5[%c0_70, %c0_71], %211 {strides = array<i32>} : memref<2x270xf32, #tpu.memory_space<vmem>>, vector<2x15xf32>,
    %213 = vector.extract_strided_slice %209 {offsets = [0, 1, 0], sizes = [2, 1, 15], strides = [1, 1, 1]} : vector<2x18x15xf32> to vector<2x1x15xf32>
    %214 = vector.shape_cast %213 : vector<2x1x15xf32> to vector<2x15xf32>
    %c0_72 = arith.constant 0 : index
    %c15 = arith.constant 15 : index
    %215 = vector.load %arg5[%c0_72, %c15] : memref<2x270xf32, #tpu.memory_space<vmem>>, vector<2x15xf32>
    tpu.vector_store %arg5[%c0_72, %c15], %214 {strides = array<i32>} : memref<2x270xf32, #tpu.memory_space<vmem>>, vector<2x15xf32>,
    %216 = vector.extract_strided_slice %209 {offsets = [0, 2, 0], sizes = [2, 1, 15], strides = [1, 1, 1]} : vector<2x18x15xf32> to vector<2x1x15xf32>
    %217 = vector.shape_cast %216 : vector<2x1x15xf32> to vector<2x15xf32>
    %c0_73 = arith.constant 0 : index
    %c30 = arith.constant 30 : index
    %218 = vector.load %arg5[%c0_73, %c30] : memref<2x270xf32, #tpu.memory_space<vmem>>, vector<2x15xf32>
    tpu.vector_store %arg5[%c0_73, %c30], %217 {strides = array<i32>} : memref<2x270xf32, #tpu.memory_space<vmem>>, vector<2x15xf32>,
    %219 = vector.extract_strided_slice %209 {offsets = [0, 3, 0], sizes = [2, 1, 15], strides = [1, 1, 1]} : vector<2x18x15xf32> to vector<2x1x15xf32>
    %220 = vector.shape_cast %219 : vector<2x1x15xf32> to vector<2x15xf32>
    %c0_74 = arith.constant 0 : index
    %c45 = arith.constant 45 : index
    %221 = vector.load %arg5[%c0_74, %c45] : memref<2x270xf32, #tpu.memory_space<vmem>>, vector<2x15xf32>
    tpu.vector_store %arg5[%c0_74, %c45], %220 {strides = array<i32>} : memref<2x270xf32, #tpu.memory_space<vmem>>, vector<2x15xf32>,
    %222 = vector.extract_strided_slice %209 {offsets = [0, 4, 0], sizes = [2, 1, 15], strides = [1, 1, 1]} : vector<2x18x15xf32> to vector<2x1x15xf32>
    %223 = vector.shape_cast %222 : vector<2x1x15xf32> to vector<2x15xf32>
    %c0_75 = arith.constant 0 : index
    %c60 = arith.constant 60 : index
    %224 = vector.load %arg5[%c0_75, %c60] : memref<2x270xf32, #tpu.memory_space<vmem>>, vector<2x15xf32>
    tpu.vector_store %arg5[%c0_75, %c60], %223 {strides = array<i32>} : memref<2x270xf32, #tpu.memory_space<vmem>>, vector<2x15xf32>,
    %225 = vector.extract_strided_slice %209 {offsets = [0, 5, 0], sizes = [2, 1, 15], strides = [1, 1, 1]} : vector<2x18x15xf32> to vector<2x1x15xf32>
    %226 = vector.shape_cast %225 : vector<2x1x15xf32> to vector<2x15xf32>
    %c0_76 = arith.constant 0 : index
    %c75 = arith.constant 75 : index
    %227 = vector.load %arg5[%c0_76, %c75] : memref<2x270xf32, #tpu.memory_space<vmem>>, vector<2x15xf32>
    tpu.vector_store %arg5[%c0_76, %c75], %226 {strides = array<i32>} : memref<2x270xf32, #tpu.memory_space<vmem>>, vector<2x15xf32>,
    %228 = vector.extract_strided_slice %209 {offsets = [0, 6, 0], sizes = [2, 1, 15], strides = [1, 1, 1]} : vector<2x18x15xf32> to vector<2x1x15xf32>
    %229 = vector.shape_cast %228 : vector<2x1x15xf32> to vector<2x15xf32>
    %c0_77 = arith.constant 0 : index
    %c90 = arith.constant 90 : index
    %230 = vector.load %arg5[%c0_77, %c90] : memref<2x270xf32, #tpu.memory_space<vmem>>, vector<2x15xf32>
    tpu.vector_store %arg5[%c0_77, %c90], %229 {strides = array<i32>} : memref<2x270xf32, #tpu.memory_space<vmem>>, vector<2x15xf32>,
    %231 = vector.extract_strided_slice %209 {offsets = [0, 7, 0], sizes = [2, 1, 15], strides = [1, 1, 1]} : vector<2x18x15xf32> to vector<2x1x15xf32>
    %232 = vector.shape_cast %231 : vector<2x1x15xf32> to vector<2x15xf32>
    %c0_78 = arith.constant 0 : index
    %c105 = arith.constant 105 : index
    %233 = vector.load %arg5[%c0_78, %c105] : memref<2x270xf32, #tpu.memory_space<vmem>>, vector<2x15xf32>
    tpu.vector_store %arg5[%c0_78, %c105], %232 {strides = array<i32>} : memref<2x270xf32, #tpu.memory_space<vmem>>, vector<2x15xf32>,
    %234 = vector.extract_strided_slice %209 {offsets = [0, 8, 0], sizes = [2, 1, 15], strides = [1, 1, 1]} : vector<2x18x15xf32> to vector<2x1x15xf32>
    %235 = vector.shape_cast %234 : vector<2x1x15xf32> to vector<2x15xf32>
    %c0_79 = arith.constant 0 : index
    %c120 = arith.constant 120 : index
    %236 = vector.load %arg5[%c0_79, %c120] : memref<2x270xf32, #tpu.memory_space<vmem>>, vector<2x15xf32>
    tpu.vector_store %arg5[%c0_79, %c120], %235 {strides = array<i32>} : memref<2x270xf32, #tpu.memory_space<vmem>>, vector<2x15xf32>,
    %237 = vector.extract_strided_slice %209 {offsets = [0, 9, 0], sizes = [2, 1, 15], strides = [1, 1, 1]} : vector<2x18x15xf32> to vector<2x1x15xf32>
    %238 = vector.shape_cast %237 : vector<2x1x15xf32> to vector<2x15xf32>
    %c0_80 = arith.constant 0 : index
    %c135 = arith.constant 135 : index
    %239 = vector.load %arg5[%c0_80, %c135] : memref<2x270xf32, #tpu.memory_space<vmem>>, vector<2x15xf32>
    tpu.vector_store %arg5[%c0_80, %c135], %238 {strides = array<i32>} : memref<2x270xf32, #tpu.memory_space<vmem>>, vector<2x15xf32>,
    %240 = vector.extract_strided_slice %209 {offsets = [0, 10, 0], sizes = [2, 1, 15], strides = [1, 1, 1]} : vector<2x18x15xf32> to vector<2x1x15xf32>
    %241 = vector.shape_cast %240 : vector<2x1x15xf32> to vector<2x15xf32>
    %c0_81 = arith.constant 0 : index
    %c150 = arith.constant 150 : index
    %242 = vector.load %arg5[%c0_81, %c150] : memref<2x270xf32, #tpu.memory_space<vmem>>, vector<2x15xf32>
    tpu.vector_store %arg5[%c0_81, %c150], %241 {strides = array<i32>} : memref<2x270xf32, #tpu.memory_space<vmem>>, vector<2x15xf32>,
    %243 = vector.extract_strided_slice %209 {offsets = [0, 11, 0], sizes = [2, 1, 15], strides = [1, 1, 1]} : vector<2x18x15xf32> to vector<2x1x15xf32>
    %244 = vector.shape_cast %243 : vector<2x1x15xf32> to vector<2x15xf32>
    %c0_82 = arith.constant 0 : index
    %c165 = arith.constant 165 : index
    %245 = vector.load %arg5[%c0_82, %c165] : memref<2x270xf32, #tpu.memory_space<vmem>>, vector<2x15xf32>
    tpu.vector_store %arg5[%c0_82, %c165], %244 {strides = array<i32>} : memref<2x270xf32, #tpu.memory_space<vmem>>, vector<2x15xf32>,
    %246 = vector.extract_strided_slice %209 {offsets = [0, 12, 0], sizes = [2, 1, 15], strides = [1, 1, 1]} : vector<2x18x15xf32> to vector<2x1x15xf32>
    %247 = vector.shape_cast %246 : vector<2x1x15xf32> to vector<2x15xf32>
    %c0_83 = arith.constant 0 : index
    %c180 = arith.constant 180 : index
    %248 = vector.load %arg5[%c0_83, %c180] : memref<2x270xf32, #tpu.memory_space<vmem>>, vector<2x15xf32>
    tpu.vector_store %arg5[%c0_83, %c180], %247 {strides = array<i32>} : memref<2x270xf32, #tpu.memory_space<vmem>>, vector<2x15xf32>,
    %249 = vector.extract_strided_slice %209 {offsets = [0, 13, 0], sizes = [2, 1, 15], strides = [1, 1, 1]} : vector<2x18x15xf32> to vector<2x1x15xf32>
    %250 = vector.shape_cast %249 : vector<2x1x15xf32> to vector<2x15xf32>
    %c0_84 = arith.constant 0 : index
    %c195 = arith.constant 195 : index
    %251 = vector.load %arg5[%c0_84, %c195] : memref<2x270xf32, #tpu.memory_space<vmem>>, vector<2x15xf32>
    tpu.vector_store %arg5[%c0_84, %c195], %250 {strides = array<i32>} : memref<2x270xf32, #tpu.memory_space<vmem>>, vector<2x15xf32>,
    %252 = vector.extract_strided_slice %209 {offsets = [0, 14, 0], sizes = [2, 1, 15], strides = [1, 1, 1]} : vector<2x18x15xf32> to vector<2x1x15xf32>
    %253 = vector.shape_cast %252 : vector<2x1x15xf32> to vector<2x15xf32>
    %c0_85 = arith.constant 0 : index
    %c210 = arith.constant 210 : index
    %254 = vector.load %arg5[%c0_85, %c210] : memref<2x270xf32, #tpu.memory_space<vmem>>, vector<2x15xf32>
    tpu.vector_store %arg5[%c0_85, %c210], %253 {strides = array<i32>} : memref<2x270xf32, #tpu.memory_space<vmem>>, vector<2x15xf32>,
    %255 = vector.extract_strided_slice %209 {offsets = [0, 15, 0], sizes = [2, 1, 15], strides = [1, 1, 1]} : vector<2x18x15xf32> to vector<2x1x15xf32>
    %256 = vector.shape_cast %255 : vector<2x1x15xf32> to vector<2x15xf32>
    %c0_86 = arith.constant 0 : index
    %c225 = arith.constant 225 : index
    %257 = vector.load %arg5[%c0_86, %c225] : memref<2x270xf32, #tpu.memory_space<vmem>>, vector<2x15xf32>
    tpu.vector_store %arg5[%c0_86, %c225], %256 {strides = array<i32>} : memref<2x270xf32, #tpu.memory_space<vmem>>, vector<2x15xf32>,
    %258 = vector.extract_strided_slice %209 {offsets = [0, 16, 0], sizes = [2, 1, 15], strides = [1, 1, 1]} : vector<2x18x15xf32> to vector<2x1x15xf32>
    %259 = vector.shape_cast %258 : vector<2x1x15xf32> to vector<2x15xf32>
    %c0_87 = arith.constant 0 : index
    %c240 = arith.constant 240 : index
    %260 = vector.load %arg5[%c0_87, %c240] : memref<2x270xf32, #tpu.memory_space<vmem>>, vector<2x15xf32>
    tpu.vector_store %arg5[%c0_87, %c240], %259 {strides = array<i32>} : memref<2x270xf32, #tpu.memory_space<vmem>>, vector<2x15xf32>,
    %261 = vector.extract_strided_slice %209 {offsets = [0, 17, 0], sizes = [2, 1, 15], strides = [1, 1, 1]} : vector<2x18x15xf32> to vector<2x1x15xf32>
    %262 = vector.shape_cast %261 : vector<2x1x15xf32> to vector<2x15xf32>
    %c0_88 = arith.constant 0 : index
    %c255 = arith.constant 255 : index
    %263 = vector.load %arg5[%c0_88, %c255] : memref<2x270xf32, #tpu.memory_space<vmem>>, vector<2x15xf32>
    tpu.vector_store %arg5[%c0_88, %c255], %262 {strides = array<i32>} : memref<2x270xf32, #tpu.memory_space<vmem>>, vector<2x15xf32>,
    %c0_89 = arith.constant 0 : index
    %c134 = arith.constant 134 : index
    %264 = vector.load %arg5[%c0_89, %c134] : memref<2x270xf32, #tpu.memory_space<vmem>>, vector<2x2xf32>
    %c0_90 = arith.constant 0 : index
    %c11 = arith.constant 11 : index
    %265 = vector.load %arg2[%c0_90, %c11] : memref<256x13xf32, #tpu.memory_space<vmem>>, vector<256x1xf32>
    %266 = vector.shape_cast %265 : vector<256x1xf32> to vector<1x256x1xf32>
    %267 = vector.shape_cast %264 : vector<2x2xf32> to vector<2x1x2xf32>
    %268 = vector.broadcast %266 : vector<1x256x1xf32> to vector<2x256x2xf32>
    %269 = vector.broadcast %267 : vector<2x1x2xf32> to vector<2x256x2xf32>
    %270 = arith.mulf %268, %269 : vector<2x256x2xf32>
    %c0_91 = arith.constant 0 : index
    %c12_92 = arith.constant 12 : index
    %271 = vector.load %arg2[%c0_91, %c12_92] : memref<256x13xf32, #tpu.memory_space<vmem>>, vector<256x1xf32>
    %272 = vector.shape_cast %271 : vector<256x1xf32> to vector<1x256x1xf32>
    %273 = vector.broadcast %272 : vector<1x256x1xf32> to vector<2x256x2xf32>
    %274 = arith.addf %270, %273 : vector<2x256x2xf32>
    %275 = tpu.transpose %274, [0, 2, 1] : vector<2x256x2xf32> -> vector<2x2x256xf32>
    %c0_93 = arith.constant 0 : index
    %c0_94 = arith.constant 0 : index
    %276 = vector.load %arg4[%c0_93, %c0_94] : memref<1216x240xf32, #tpu.memory_space<vmem>>, vector<256x240xf32>
    %c0_95 = arith.constant 0 : index
    %c0_96 = arith.constant 0 : index
    %277 = vector.load %arg3[%c0_95, %c0_96] : memref<5x240xf32, #tpu.memory_space<vmem>>, vector<1x240xf32>
    %278 = vector.shape_cast %275 : vector<2x2x256xf32> to vector<4x256xf32>
    %cst_97 = arith.constant dense<0.000000e+00> : vector<4x240xf32>
    %279 = tpu.matmul %278, %276, %cst_97 {dimension_numbers = #tpu.dot_dimension_numbers<[1], [0], [0], [1], [0, 0, 1, 1], [], []>} : vector<4x256xf32>, vector<256x240xf32>, vector<4x240xf32> -> vector<4x240xf32>
    %280 = vector.broadcast %277 : vector<1x240xf32> to vector<4x240xf32>
    %281 = arith.addf %279, %280 : vector<4x240xf32>
    %282 = vector.shape_cast %281 : vector<4x240xf32> to vector<2x2x240xf32>
    %cst_98 = arith.constant 5.000000e-01 : f32
    %283 = vector.broadcast %cst_98 : f32 to vector<2x2x240xf32>
    %284 = arith.mulf %283, %282 : vector<2x2x240xf32>
    %cst_99 = arith.constant 0.707106769 : f32
    %285 = vector.broadcast %cst_99 : f32 to vector<2x2x240xf32>
    %286 = arith.mulf %282, %285 : vector<2x2x240xf32>
    %287 = math.erf %286 : vector<2x2x240xf32>
    %cst_100 = arith.constant 1.000000e+00 : f32
    %288 = vector.broadcast %cst_100 : f32 to vector<2x2x240xf32>
    %289 = arith.addf %288, %287 : vector<2x2x240xf32>
    %290 = arith.mulf %284, %289 : vector<2x2x240xf32>
    %c256 = arith.constant 256 : index
    %c0_101 = arith.constant 0 : index
    %291 = vector.load %arg4[%c256, %c0_101] : memref<1216x240xf32, #tpu.memory_space<vmem>>, vector<240x240xf32>
    %c1_102 = arith.constant 1 : index
    %c0_103 = arith.constant 0 : index
    %292 = vector.load %arg3[%c1_102, %c0_103] : memref<5x240xf32, #tpu.memory_space<vmem>>, vector<1x240xf32>
    %293 = vector.shape_cast %290 : vector<2x2x240xf32> to vector<4x240xf32>
    %cst_104 = arith.constant dense<0.000000e+00> : vector<4x240xf32>
    %294 = tpu.matmul %293, %291, %cst_104 {dimension_numbers = #tpu.dot_dimension_numbers<[1], [0], [0], [1], [0, 0, 1, 1], [], []>} : vector<4x240xf32>, vector<240x240xf32>, vector<4x240xf32> -> vector<4x240xf32>
    %295 = vector.broadcast %292 : vector<1x240xf32> to vector<4x240xf32>
    %296 = arith.addf %294, %295 : vector<4x240xf32>
    %297 = vector.shape_cast %296 : vector<4x240xf32> to vector<2x2x240xf32>
    %cst_105 = arith.constant 5.000000e-01 : f32
    %298 = vector.broadcast %cst_105 : f32 to vector<2x2x240xf32>
    %299 = arith.mulf %298, %297 : vector<2x2x240xf32>
    %cst_106 = arith.constant 0.707106769 : f32
    %300 = vector.broadcast %cst_106 : f32 to vector<2x2x240xf32>
    %301 = arith.mulf %297, %300 : vector<2x2x240xf32>
    %302 = math.erf %301 : vector<2x2x240xf32>
    %cst_107 = arith.constant 1.000000e+00 : f32
    %303 = vector.broadcast %cst_107 : f32 to vector<2x2x240xf32>
    %304 = arith.addf %303, %302 : vector<2x2x240xf32>
    %305 = arith.mulf %299, %304 : vector<2x2x240xf32>
    %c496 = arith.constant 496 : index
    %c0_108 = arith.constant 0 : index
    %306 = vector.load %arg4[%c496, %c0_108] : memref<1216x240xf32, #tpu.memory_space<vmem>>, vector<240x240xf32>
    %c2_109 = arith.constant 2 : index
    %c0_110 = arith.constant 0 : index
    %307 = vector.load %arg3[%c2_109, %c0_110] : memref<5x240xf32, #tpu.memory_space<vmem>>, vector<1x240xf32>
    %308 = vector.shape_cast %305 : vector<2x2x240xf32> to vector<4x240xf32>
    %cst_111 = arith.constant dense<0.000000e+00> : vector<4x240xf32>
    %309 = tpu.matmul %308, %306, %cst_111 {dimension_numbers = #tpu.dot_dimension_numbers<[1], [0], [0], [1], [0, 0, 1, 1], [], []>} : vector<4x240xf32>, vector<240x240xf32>, vector<4x240xf32> -> vector<4x240xf32>
    %310 = vector.broadcast %307 : vector<1x240xf32> to vector<4x240xf32>
    %311 = arith.addf %309, %310 : vector<4x240xf32>
    %312 = vector.shape_cast %311 : vector<4x240xf32> to vector<2x2x240xf32>
    %cst_112 = arith.constant 5.000000e-01 : f32
    %313 = vector.broadcast %cst_112 : f32 to vector<2x2x240xf32>
    %314 = arith.mulf %313, %312 : vector<2x2x240xf32>
    %cst_113 = arith.constant 0.707106769 : f32
    %315 = vector.broadcast %cst_113 : f32 to vector<2x2x240xf32>
    %316 = arith.mulf %312, %315 : vector<2x2x240xf32>
    %317 = math.erf %316 : vector<2x2x240xf32>
    %cst_114 = arith.constant 1.000000e+00 : f32
    %318 = vector.broadcast %cst_114 : f32 to vector<2x2x240xf32>
    %319 = arith.addf %318, %317 : vector<2x2x240xf32>
    %320 = arith.mulf %314, %319 : vector<2x2x240xf32>
    %c736 = arith.constant 736 : index
    %c0_115 = arith.constant 0 : index
    %321 = vector.load %arg4[%c736, %c0_115] : memref<1216x240xf32, #tpu.memory_space<vmem>>, vector<240x240xf32>
    %c3_116 = arith.constant 3 : index
    %c0_117 = arith.constant 0 : index
    %322 = vector.load %arg3[%c3_116, %c0_117] : memref<5x240xf32, #tpu.memory_space<vmem>>, vector<1x240xf32>
    %323 = vector.shape_cast %320 : vector<2x2x240xf32> to vector<4x240xf32>
    %cst_118 = arith.constant dense<0.000000e+00> : vector<4x240xf32>
    %324 = tpu.matmul %323, %321, %cst_118 {dimension_numbers = #tpu.dot_dimension_numbers<[1], [0], [0], [1], [0, 0, 1, 1], [], []>} : vector<4x240xf32>, vector<240x240xf32>, vector<4x240xf32> -> vector<4x240xf32>
    %325 = vector.broadcast %322 : vector<1x240xf32> to vector<4x240xf32>
    %326 = arith.addf %324, %325 : vector<4x240xf32>
    %327 = vector.shape_cast %326 : vector<4x240xf32> to vector<2x2x240xf32>
    %cst_119 = arith.constant 5.000000e-01 : f32
    %328 = vector.broadcast %cst_119 : f32 to vector<2x2x240xf32>
    %329 = arith.mulf %328, %327 : vector<2x2x240xf32>
    %cst_120 = arith.constant 0.707106769 : f32
    %330 = vector.broadcast %cst_120 : f32 to vector<2x2x240xf32>
    %331 = arith.mulf %327, %330 : vector<2x2x240xf32>
    %332 = math.erf %331 : vector<2x2x240xf32>
    %cst_121 = arith.constant 1.000000e+00 : f32
    %333 = vector.broadcast %cst_121 : f32 to vector<2x2x240xf32>
    %334 = arith.addf %333, %332 : vector<2x2x240xf32>
    %335 = arith.mulf %329, %334 : vector<2x2x240xf32>
    %c976 = arith.constant 976 : index
    %c0_122 = arith.constant 0 : index
    %336 = vector.load %arg4[%c976, %c0_122] : memref<1216x240xf32, #tpu.memory_space<vmem>>, vector<240x80xf32>
    %c4_123 = arith.constant 4 : index
    %c0_124 = arith.constant 0 : index
    %337 = vector.load %arg3[%c4_123, %c0_124] : memref<5x240xf32, #tpu.memory_space<vmem>>, vector<1x80xf32>
    %338 = vector.shape_cast %335 : vector<2x2x240xf32> to vector<4x240xf32>
    %cst_125 = arith.constant dense<0.000000e+00> : vector<4x80xf32>
    %339 = tpu.matmul %338, %336, %cst_125 {dimension_numbers = #tpu.dot_dimension_numbers<[1], [0], [0], [1], [0, 0, 1, 1], [], []>} : vector<4x240xf32>, vector<240x80xf32>, vector<4x80xf32> -> vector<4x80xf32>
    %340 = vector.broadcast %337 : vector<1x80xf32> to vector<4x80xf32>
    %341 = arith.addf %339, %340 : vector<4x80xf32>
    %342 = vector.shape_cast %341 : vector<4x80xf32> to vector<2x2x80xf32>
    %c0_126 = arith.constant 0 : index
    %c0_127 = arith.constant 0 : index
    %c0_128 = arith.constant 0 : index
    %343 = vector.load %arg6[%c0_126, %c0_127, %c0_128] : memref<2x3x80xf32, #tpu.memory_space<vmem>>, vector<2x2x80xf32>
    tpu.vector_store %arg6[%c0_126, %c0_127, %c0_128], %342 {strides = array<i32>} : memref<2x3x80xf32, #tpu.memory_space<vmem>>, vector<2x2x80xf32>,
    %cst_129 = arith.constant 0.000000e+00 : f32
    %344 = vector.broadcast %cst_129 : f32 to vector<2x1x80xf32>
    %c0_130 = arith.constant 0 : index
    %c2_131 = arith.constant 2 : index
    %c0_132 = arith.constant 0 : index
    %345 = vector.load %arg6[%c0_130, %c2_131, %c0_132] : memref<2x3x80xf32, #tpu.memory_space<vmem>>, vector<2x1x80xf32>
    tpu.vector_store %arg6[%c0_130, %c2_131, %c0_132], %344 {strides = array<i32>} : memref<2x3x80xf32, #tpu.memory_space<vmem>>, vector<2x1x80xf32>,
    return
  }
}

</mosaic_0001>

<bundles_post_ra>
// kernel: tpu_custom_call.1
= control target key start
LH: loop header
LB: loop body
LE: loop exit
PB: predicated region body
PF: predicated region fallthrough
CT: control target
= control target key end

     0   :  { %v3965_v1 = vmov 0   ;;  %s5991_s0 = inlined_call_operand.vmem [shape: f32[2,120], index: 0, kind: input, shape index: {}]   ;;  %s5992_s1 = inlined_call_operand.vmem [shape: f32[42,36], index: 1, kind: input, shape index: {}]   ;;  %s5993_s2 = inlined_call_operand.vmem [shape: f32[256,13], index: 2, kind: input, shape index: {}]   ;;  %s5994_s3 = inlined_call_operand.vmem [shape: f32[5,240], index: 3, kind: input, shape index: {}]   ;;  %s5995_s4 = inlined_call_operand.vmem [shape: f32[1216,240], index: 4, kind: input, shape index: {}]   ;;  %s5996_s5 = inlined_call_operand.hbm [shape: f32[2,270], index: 5, kind: output, shape index: {0}]   ;;  %s5997_s6 = inlined_call_operand.vmem [shape: f32[2,3,80], index: 6, kind: output, shape index: {1}]  }
   0x1   :  { %v23_v0 = vld [vmem:[%s5993_s2] sm:$0x7]  ;;  %3843 = vset.pattern.permute.xlu0 %v3965_v1 }
   0x2   :  { %60 = vperm.xlu0 %3843, %v23_v0  }
   0x3   :  { %12 = vsyncpa [#allocation4], 0  ;;  %v3966_v2 = vmov 1   ;;  %v3967_v3 = vmov 1966171168   ;;  %v37_v5 = vlaneseq  ;;  %v5998_v14 = vmov 0.0  }
   0x4   :  { %v35_v4 = vunpack.c.l.s4 %v3967_v3  ;;  %v3619_v8 = vld.sshfl [vmem:[%s5991_s0] sm:$0x11 pattern:$0x75316420]  ;;  %3704 = vmatprep.subr.mxu0 %v5998_v14  ;;  %vm3969_vm0 = vmmov 0   ;;  %s3970_s0 = smov 1  }
   0x5   :  { %v4045_v7 = vshrl.u32 %v37_v5, 7  ;;  %v33_v9 = vcombine.high %v3619_v8, %v3619_v8  ;;  %3708 = vmatprep.mubr.msk.f32.mxu0 %vm3969_vm0, %v5998_v14  ;;  %s3971_s25 = smov 127   ;;  %v3972_v23 = vmov 2   ;;  %v108_v24 = vld [vmem:[%s5993_s2] sm:$0x7]  ;;  %vm88_vm1 = vcmask 973824  }
   0x6   :  { %3844 = vset.pattern.permute.xlu0 %v3966_v2  ;;  %v36_v6 = vunpack.c.0.s8 %v35_v4  ;;  %3845 = vset.pattern.permute.xlu1 %v3972_v23  ;;  %vm118_vm2 = vcmask 1040384   ;;  %vm79_vm3 = vcmask 7168   ;;  %vm104_vm4 = vcmask 1045504   ;;  %v107_v33 = vld [vmem:[%s5992_s1] sm:$0x7]  ;;  %s3973_s30 = smov 2  }
   0x7   :  { %66 = vperm.xlu0 %3844, %v23_v0   ;;  %6036 = vst [vmem:[#allocation6_spill] sm:$0xff] %v4045_v7  ;;  %v4052_v13 = vsub.s32 0, %v4045_v7  ;;  %vm101_vm5 = vcmask 1042432   ;;  %vm114_vm6 = vcmask 72704   ;;  %s3974_s7 = smov 126   ;;  %v3975_v56 = vmov 3  }
   0x8   :  { %v39_v10 = vsub.s32 %v36_v6, %v4045_v7  ;;  %v308_v60 = vld [vmem:[%s5993_s2] sm:$0x7]  ;;  %vm281_vm7 = vcmask 15360   ;;  %vm290_vm8 = vcmask 965632   ;;  %v307_v6 = vld [vmem:[%s5992_s1 + $0x3] sm:$0x7] }
   0x9   :  { %6037 = vst [vmem:[#allocation7_spill] sm:$0xff] %v4052_v13  ;;  %vm479_vm10 = vcmask 976896   ;;  %vm768_vm11 = vcmask 146432   ;;  %s3979_s20 = smov 124   ;;  %s3980_s21 = smov 4   ;;  %vm736_vm12 = vcmask 949248  }
   0xa   :  { %v40_v11 = vrot.slane %v3619_v8, %v39_v10  ;;  %v47_v12 = vrot.slane %v33_v9, %v39_v10  ;;  %vm775_vm13 = vcmask 1041408   ;;  %vm751_vm14 = vcmask 1043456   ;;  %s3989_s27 = smov 45   ;;  %s3990_s28 = smov 60  }
   0xb   :  { %3846 = vset.pattern.permute.xlu0 %v3975_v56  ;;  %vm727_vm15 = vcmask 31744   ;;  %s3991_s29 = smov 75   ;;  %s3994_s8 = smov 120  }
   0xc   :  { %v51_v15 = vrot.slane %v40_v11, %v4052_v13  ;;  %v55_v16 = vrot.slane %v47_v12, %v4052_v13  ;;  %s3995_s9 = smov 7   ;;  %s3996_s10 = smov 22  }
   0xd   :  { %s3997_s11 = smov 90   ;;  %s3998_s12 = smov 52  }
   0xe   :  { %s3999_s13 = smov 37   ;;  %s4000_s14 = smov 97  }
   0xf   :  { %s4001_s15 = smov 67   ;;  %s4003_s16 = smov 112  }
  0x7d   :  { %v61_v17 = vpop.permute.xlu0 %60 }
  0x7e   :  { %v63_v18 = vmul.f32 %v61_v17, %v51_v15  ;;  %v64_v19 = vmul.f32 %v61_v17, %v55_v16 }
  0x82   :  { %v67_v20 = vpop.permute.xlu0 %66 }
  0x83   :  { %v69_v21 = vadd.f32 %v67_v20, %v63_v18  ;;  %v70_v22 = vadd.f32 %v67_v20, %v64_v19 }
  0x85   :  { %75 = vrot.lane.b32.xlu0 %v70_v22, %s3970_s0  ;;  %82 = vrot.lane.b32.xlu1 %v69_v21, %s3971_s25  ;;  %v91_v28 = vrot.slane %v69_v21, 5  ;;  %v92_v37 = vrot.slane %v70_v22, 5 }
  0x89   :  { %73 = vrot.lane.b32.xlu1 %v69_v21, %s3970_s0 }
  0x8d   :  { %84 = vrot.lane.b32.xlu1 %v70_v22, %s3971_s25 }
  0x91   :  { %111 = vperm.xlu1 %3845, %v108_v24  }
  0xf7   :  { %v83_v25 = vpop.permute.xlu1 %82  ;;  %v76_v30 = vpop.permute.xlu0 %75 }
  0xf8   :  { %v89_v26 = vsel %vm88_vm1, %v83_v25, 0.0  ;;  %v81_v35 = vsel %vm79_vm3, 0.0, %v76_v30 }
  0xf9   :  { %v97_v27 = vrot.slane %v89_v26, 2  ;;  %v103_v40 = vsel %vm101_vm5, %v81_v35, %v92_v37 }
  0xfb   :  { %3705 = vmatpush3.msk.msra.mxu0 %vm118_vm2, %v97_v27  ;;  %v74_v29 = vpop.permute.xlu1 %73 }
  0xfc   :  { %v80_v31 = vsel %vm79_vm3, 0.0, %v74_v29  ;;  %3706 = vmatprep.subr.mxu0 %v5998_v14  ;;  %vm959_vm3 = vcmask 982016  }
  0xfd   :  { %v102_v32 = vsel %vm101_vm5, %v80_v31, %v91_v28 }
  0xfe   :  { %v105_v34 = vsel %vm104_vm4, %v102_v32, %v97_v27  ;;  %v4116_v27 = vand.u32 127, %v37_v5 }
  0xff   :  { %v85_v36 = vpop.permute.xlu1 %84  ;;  %3707 = vmatpush3.msra.mxu0 %v105_v34 }
 0x100   :  { %v90_v38 = vsel %vm88_vm1, %v85_v36, 0.0  ;;  %3709 = vmatmul.mubr.msk.f32.vlgmr.msra.gmra.mxu0 %vm114_vm6, %v107_v33  ;;  %3711 = vmatprep.subr.mxu0 %v5998_v14  ;;  %v474_v28 = vand.u32 1, %v4116_v27 }
 0x101   :  { %v98_v39 = vrot.slane %v90_v38, 2  ;;  %3715 = vmatprep.mubr.msk.f32.mxu0 %vm3969_vm0, %v5998_v14 }
 0x102   :  { %vm475_vm9 = vcmp.eq.s32.totalorder %v474_v28, 0 }
 0x103   :  { %3712 = vmatpush3.msk.msra.mxu0 %vm118_vm2, %v98_v39  ;;  %v106_v41 = vsel %vm104_vm4, %v103_v40, %v98_v39  ;;  %v476_v32 = vsel %vm475_vm9, 1.0, %v5998_v14  ;;  %vm1521_vm9 = vcmask 115712  }
 0x104   :  { %3713 = vmatprep.subr.mxu0 %v5998_v14 }
 0x105   :  { %3714 = vmatpush3.msra.mxu0 %v106_v41  ;;  %v3976_v41 = vmov 4  }
 0x106   :  { %3716 = vmatmul.mubr.msk.f32.vlgmr.msra.gmra.mxu0 %vm114_vm6, %v107_v33  ;;  %3718 = vmatprep.subr.mxu0 %v5998_v14 }
 0x107   :  { %3722 = vmatprep.mubr.msk.f32.mxu0 %vm3969_vm0, %v5998_v14  ;;  %3847 = vset.pattern.permute.xlu1 %v3976_v41 }
 0x10c   :  { %v112_v42 = vpop.permute.xlu1 %111 }
 0x1c0   :  { %v187_v43 = vpop.f32.mrf.mxu0 }
 0x1c1   :  { %v188_v44 = vadd.f32 %v187_v43, %v112_v42 }
 0x1c2   :  { %v3710_v45 = vpop.f32.mrf.mxu0 }
 0x1c3   :  { %v265_v46 = vmul.f32 0.70710677, %v188_v44  ;;  %v263_v52 = vmul.f32 0.5, %v188_v44 }
 0x1c5   :  { %3889 = verf.f32 %v265_v46 }
 0x1c6   :  { %v259_v47 = vpop.f32.mrf.mxu0 }
 0x1c7   :  { %v260_v48 = vadd.f32 %v259_v47, %v112_v42  ;;  %v3977_v42 = vmov 5  }
 0x1c8   :  { %v3717_v49 = vpop.f32.mrf.mxu0 }
 0x1c9   :  { %v266_v50 = vmul.f32 0.70710677, %v260_v48  ;;  %v264_v57 = vmul.f32 0.5, %v260_v48 }
 0x1cb   :  { %3891 = verf.f32 %v266_v50 }
 0x1d2   :  { %v3890_v51 = vpop.eup %3889 }
 0x1d3   :  { %v269_v53 = vadd.f32 1.0, %v3890_v51 }
 0x1d5   :  { %v271_v54 = vmul.f32 %v269_v53, %v263_v52 }
 0x1d7   :  { %275 = vrot.lane.b32.xlu1 %v271_v54, %s3973_s30  ;;  %284 = vrot.lane.b32.xlu0 %v271_v54, %s3974_s7  ;;  %v293_v62 = vrot.slane %v271_v54, 5 }
 0x1d8   :  { %v3892_v55 = vpop.eup %3891 }
 0x1d9   :  { %v270_v58 = vadd.f32 1.0, %v3892_v55 }
 0x1db   :  { %v272_v59 = vmul.f32 %v270_v58, %v264_v57  ;;  %v471_v57 = vld [vmem:[%s5993_s2] sm:$0x7] }
 0x1dd   :  { %277 = vrot.lane.b32.xlu1 %v272_v59, %s3973_s30  ;;  %286 = vrot.lane.b32.xlu0 %v272_v59, %s3974_s7  ;;  %v294_v9 = vrot.slane %v272_v59, 5 }
 0x1e1   :  { %311 = vperm.xlu0 %3846, %v308_v60  }
 0x1e5   :  { %3848 = vset.pattern.permute.xlu0 %v3977_v42  ;;  %v754_v42 = vld [vmem:[%s5992_s1 + $0xc] sm:$0xff] }
 0x249   :  { %v276_v61 = vpop.permute.xlu1 %275  ;;  %v285_v63 = vpop.permute.xlu0 %284 }
 0x24a   :  { %v282_v0 = vsel %vm281_vm7, 0.0, %v276_v61  ;;  %v291_v1 = vsel %vm290_vm8, %v285_v63, 0.0 }
 0x24b   :  { %v303_v2 = vsel %vm101_vm5, %v282_v0, %v293_v62  ;;  %v299_v3 = vrot.slane %v291_v1, 2 }
 0x24d   :  { %3719 = vmatpush3.msk.msra.mxu0 %vm118_vm2, %v299_v3  ;;  %v305_v4 = vsel %vm104_vm4, %v303_v2, %v299_v3 }
 0x24e   :  { %3720 = vmatprep.subr.mxu0 %v5998_v14 }
 0x24f   :  { %3721 = vmatpush3.msra.mxu0 %v305_v4  ;;  %v278_v8 = vpop.permute.xlu1 %277  ;;  %v287_v10 = vpop.permute.xlu0 %286 }
 0x250   :  { %v283_v11 = vsel %vm281_vm7, 0.0, %v278_v8  ;;  %v292_v12 = vsel %vm290_vm8, %v287_v10, 0.0  ;;  %3723 = vmatmul.mubr.msk.f32.vlgmr.msra.gmra.mxu0 %vm114_vm6, %v307_v6  ;;  %3725 = vmatprep.subr.mxu0 %v5998_v14 }
 0x251   :  { %v304_v15 = vsel %vm101_vm5, %v283_v11, %v294_v9  ;;  %v300_v16 = vrot.slane %v292_v12, 2  ;;  %3729 = vmatprep.mubr.msk.f32.mxu0 %vm3969_vm0, %v5998_v14  ;;  %v3978_v11 = vmov 6  }
 0x253   :  { %3726 = vmatpush3.msk.msra.mxu0 %vm118_vm2, %v300_v16  ;;  %v306_v17 = vsel %vm104_vm4, %v304_v15, %v300_v16  ;;  %v556_v15 = vld [vmem:[%s5993_s2] sm:$0x3f] }
 0x254   :  { %3727 = vmatprep.subr.mxu0 %v5998_v14 }
 0x255   :  { %3728 = vmatpush3.msra.mxu0 %v306_v17 }
 0x256   :  { %3730 = vmatmul.mubr.msk.f32.vlgmr.msra.gmra.mxu0 %vm114_vm6, %v307_v6  ;;  %3732 = vmatprep.subr.mxu0 %v5998_v14 }
 0x257   :  { %3736 = vmatprep.mubr.msk.f32.mxu0 %vm3969_vm0, %v5998_v14 }
 0x25c   :  { %v312_v18 = vpop.permute.xlu0 %311 }
 0x310   :  { %v385_v19 = vpop.f32.mrf.mxu0 }
 0x311   :  { %v386_v20 = vadd.f32 %v385_v19, %v312_v18 }
 0x312   :  { %v3724_v21 = vpop.f32.mrf.mxu0 }
 0x313   :  { %v463_v22 = vmul.f32 0.70710677, %v386_v20  ;;  %v461_v30 = vmul.f32 0.5, %v386_v20 }
 0x315   :  { %3893 = verf.f32 %v463_v22 }
 0x316   :  { %v457_v23 = vpop.f32.mrf.mxu0 }
 0x317   :  { %v458_v24 = vadd.f32 %v457_v23, %v312_v18  ;;  %v555_v23 = vld [vmem:[%s5992_s1 + $0x6] sm:$0x3f] }
 0x318   :  { %v3731_v25 = vpop.f32.mrf.mxu0 }
 0x319   :  { %v464_v26 = vmul.f32 0.70710677, %v458_v24  ;;  %v462_v36 = vmul.f32 0.5, %v458_v24 }
 0x31b   :  { %3895 = verf.f32 %v464_v26 }
 0x322   :  { %v3894_v29 = vpop.eup %3893 }
 0x323   :  { %v467_v31 = vadd.f32 1.0, %v3894_v29 }
 0x325   :  { %v469_v33 = vmul.f32 %v467_v31, %v461_v30 }
 0x327   :  { %v477_v34 = vmul.f32 %v476_v32, %v469_v33 }
 0x328   :  { %v3896_v35 = vpop.eup %3895 }
 0x329   :  { %v480_v37 = vsel %vm479_vm10, %v477_v34, 0.0  ;;  %v468_v38 = vadd.f32 1.0, %v3896_v35 }
 0x32a   :  { %481 = vadd.xlane.f32.xlu1 %v480_v37 }
 0x32b   :  { %v470_v5 = vmul.f32 %v468_v38, %v462_v36 }
 0x32d   :  { %v478_v39 = vmul.f32 %v476_v32, %v470_v5 }
 0x32f   :  { %v483_v40 = vsel %vm479_vm10, %v478_v39, 0.0 }
 0x330   :  { %484 = vadd.xlane.f32.xlu0 %v483_v40 }
 0x3b3   :  { %v482_v43 = vpop.xlane.xlu1 %481 }
 0x3b4   :  { %v486_v45 = vsel %vm101_vm5, %v482_v43, 0.0 }
 0x3b9   :  { %v485_v44 = vpop.xlane.xlu0 %484 }
 0x3ba   :  { %v487_v46 = vsel %vm101_vm5, %v485_v44, 0.0 }
 0x3bb   :  { %v488_v47 = vadd.f32 %v487_v46, %v486_v45 }
 0x3bd   :  { %v489_v48 = vmul.f32 0.008333334, %v488_v47 }
 0x3bf   :  { %v490_v49 = vsub.f32 %v469_v33, %v489_v48  ;;  %v491_v50 = vsub.f32 %v470_v5, %v489_v48 }
 0x3c1   :  { %v493_v51 = vmul.f32 %v491_v50, %v491_v50  ;;  %v492_v52 = vmul.f32 %v490_v49, %v490_v49 }
 0x3c3   :  { %v495_v53 = vmul.f32 %v493_v51, %v476_v32  ;;  %v494_v54 = vmul.f32 %v492_v52, %v476_v32  ;;  %v757_v52 = vld [vmem:[%s5993_s2 + $0x8] sm:$0xf] }
 0x3c5   :  { %v499_v55 = vsel %vm479_vm10, %v495_v53, 0.0  ;;  %v496_v56 = vsel %vm479_vm10, %v494_v54, 0.0  ;;  %v4172_v53 = vld [vmem:[%s5993_s2] sm:$0xff]  ;;  %vm1533_vm10 = vcmask 238712  }
 0x3c6   :  { %500 = vadd.xlane.f32.xlu0 %v499_v55  ;;  %497 = vadd.xlane.f32.xlu1 %v496_v56 }
 0x3d7   :  { %512 = vperm.xlu1 %3847, %v471_v57  }
 0x3db   :  { %3849 = vset.pattern.permute.xlu1 %v3978_v11 }
 0x3dc   :  { %518 = vperm.xlu0 %3848, %v471_v57  }
 0x44f   :  { %v501_v58 = vpop.xlane.xlu0 %500  ;;  %v498_v59 = vpop.xlane.xlu1 %497 }
 0x450   :  { %v503_v60 = vsel %vm101_vm5, %v501_v58, 0.0  ;;  %v502_v61 = vsel %vm101_vm5, %v498_v59, 0.0 }
 0x451   :  { %v504_v62 = vadd.f32 %v503_v60, %v502_v61 }
 0x453   :  { %v505_v63 = vmul.f32 0.008333334, %v504_v62  ;;  %v513_v2 = vpop.permute.xlu1 %512  ;;  %v755_v62 = vld [vmem:[%s5992_s1 + $0x14] sm:$0xf] }
 0x455   :  { %v506_v0 = vadd.f32 1e-05, %v505_v63 }
 0x457   :  { %3897 = vrsqrt.f32 %v506_v0  ;;  %v519_v4 = vpop.permute.xlu0 %518 }
 0x464   :  { %v3898_v1 = vpop.eup %3897 }
 0x465   :  { %v508_v3 = vmul.f32 %v3898_v1, %v490_v49  ;;  %v509_v8 = vmul.f32 %v3898_v1, %v491_v50  ;;  %v3981_v50 = vmov 7  }
 0x466   :  { %3851 = vset.pattern.permute.xlu0 %v3981_v50 }
 0x467   :  { %v515_v6 = vmul.f32 %v513_v2, %v508_v3  ;;  %v516_v10 = vmul.f32 %v513_v2, %v509_v8 }
 0x469   :  { %v521_v9 = vadd.f32 %v519_v4, %v515_v6  ;;  %v522_v12 = vadd.f32 %v519_v4, %v516_v10 }
 0x46b   :  { %533 = vrot.lane.b32.xlu1 %v521_v9, %s3974_s7  ;;  %v541_v19 = vrot.slane %v521_v9, 5  ;;  %v542_v29 = vrot.slane %v522_v12, 5 }
 0x46f   :  { %525 = vrot.lane.b32.xlu1 %v521_v9, %s3973_s30  ;;  %v3982_v9 = vmov 8  }
 0x473   :  { %535 = vrot.lane.b32.xlu1 %v522_v12, %s3974_s7  ;;  %s3993_s7 = smov 30  }
 0x477   :  { %527 = vrot.lane.b32.xlu1 %v522_v12, %s3973_s30  ;;  %s3992_s30 = smov 105  }
 0x47b   :  { %559 = vperm.xlu1 %3849, %v556_v15  }
 0x47f   :  { %3850 = vset.pattern.permute.xlu1 %v3981_v50 }
 0x4dd   :  { %v534_v16 = vpop.permute.xlu1 %533 }
 0x4de   :  { %v539_v17 = vsel %vm290_vm8, %v534_v16, 0.0 }
 0x4df   :  { %v547_v18 = vrot.slane %v539_v17, 2 }
 0x4e1   :  { %3733 = vmatpush3.msk.msra.mxu0 %vm118_vm2, %v547_v18  ;;  %v526_v20 = vpop.permute.xlu1 %525 }
 0x4e2   :  { %v531_v21 = vsel %vm281_vm7, 0.0, %v526_v20  ;;  %3734 = vmatprep.subr.mxu0 %v5998_v14 }
 0x4e3   :  { %v551_v22 = vsel %vm101_vm5, %v531_v21, %v541_v19 }
 0x4e4   :  { %v553_v24 = vsel %vm104_vm4, %v551_v22, %v547_v18 }
 0x4e5   :  { %v536_v25 = vpop.permute.xlu1 %535  ;;  %3735 = vmatpush3.msra.mxu0 %v553_v24 }
 0x4e6   :  { %v540_v26 = vsel %vm290_vm8, %v536_v25, 0.0  ;;  %3737 = vmatmul.mubr.msk.f32.vlgmr.msra.gmra.mxu0 %vm114_vm6, %v555_v23  ;;  %3739 = vmatprep.subr.mxu0 %v5998_v14  ;;  %v952_v25 = vand.u32 3, %v4116_v27  ;;  %vm1518_vm8 = vcmask 1047559  }
 0x4e7   :  { %v548_v28 = vrot.slane %v540_v26, 2  ;;  %3743 = vmatprep.mubr.msk.f32.mxu0 %vm3969_vm0, %v5998_v14 }
 0x4e8   :  { %vm953_vm1 = vcmp.eq.s32.totalorder %v952_v25, 0 }
 0x4e9   :  { %v528_v30 = vpop.permute.xlu1 %527  ;;  %3740 = vmatpush3.msk.msra.mxu0 %vm118_vm2, %v548_v28  ;;  %vm963_vm2 = vcmask 977920  }
 0x4ea   :  { %v532_v31 = vsel %vm281_vm7, 0.0, %v528_v30  ;;  %3741 = vmatprep.subr.mxu0 %v5998_v14  ;;  %vm1516_vm7 = vcmask 1045509  }
 0x4eb   :  { %v552_v32 = vsel %vm101_vm5, %v532_v31, %v542_v29  ;;  %vm1112_vm5 = vcmask 293888  }
 0x4ec   :  { %v554_v33 = vsel %vm104_vm4, %v552_v32, %v548_v28  ;;  %v954_v32 = vsel %vm953_vm1, 1.0, %v5998_v14  ;;  %vm1656_vm1 = vcmask 52226  }
 0x4ed   :  { %3742 = vmatpush3.msra.mxu0 %v554_v33 }
 0x4ee   :  { %3744 = vmatmul.mubr.msk.f32.vlgmr.msra.gmra.mxu0 %vm114_vm6, %v555_v23  ;;  %vm1514_vm6 = vcmask 1043459  }
 0x4ef   :  { %3752 = vmatprep.mubr.msk.f32.mxu0 %vm768_vm11, %v754_v42 }
 0x4f6   :  { %v560_v34 = vpop.permute.xlu1 %559 }
 0x5a6   :  { %v633_v35 = vpop.f32.mrf.mxu0 }
 0x5a7   :  { %v634_v36 = vadd.f32 %v633_v35, %v560_v34 }
 0x5a8   :  { %v3738_v37 = vpop.f32.mrf.mxu0 }
 0x5a9   :  { %v711_v38 = vmul.f32 0.70710677, %v634_v36  ;;  %v709_v44 = vmul.f32 0.5, %v634_v36 }
 0x5ab   :  { %3899 = verf.f32 %v711_v38 }
 0x5ae   :  { %v705_v5 = vpop.f32.mrf.mxu0 }
 0x5af   :  { %v706_v39 = vadd.f32 %v705_v5, %v560_v34 }
 0x5b0   :  { %v3745_v40 = vpop.f32.mrf.mxu0 }
 0x5b1   :  { %v712_v41 = vmul.f32 0.70710677, %v706_v39  ;;  %v710_v48 = vmul.f32 0.5, %v706_v39 }
 0x5b3   :  { %3901 = verf.f32 %v712_v41 }
 0x5b8   :  { %v3900_v43 = vpop.eup %3899 }
 0x5b9   :  { %v715_v45 = vadd.f32 1.0, %v3900_v43 }
 0x5bb   :  { %v717_v46 = vmul.f32 %v715_v45, %v709_v44 }
 0x5bd   :  { %730 = vrot.lane.b32.xlu1 %v717_v46, %s3979_s20  ;;  %v739_v57 = vrot.slane %v717_v46, 2 }
 0x5c0   :  { %v3902_v47 = vpop.eup %3901 }
 0x5c1   :  { %721 = vrot.lane.b32.xlu1 %v717_v46, %s3980_s21  ;;  %v716_v49 = vadd.f32 1.0, %v3902_v47 }
 0x5c3   :  { %v718_v51 = vmul.f32 %v716_v49, %v710_v48 }
 0x5c5   :  { %723 = vrot.lane.b32.xlu0 %v718_v51, %s3980_s21  ;;  %732 = vrot.lane.b32.xlu1 %v718_v51, %s3979_s20  ;;  %v740_v3 = vrot.slane %v718_v51, 2  ;;  %v951_v51 = vld [vmem:[%s5993_s2 + $0x8] sm:$0xf] }
 0x5c9   :  { %765 = vperm.xlu1 %3850, %v757_v52   ;;  %760 = vperm.xlu0 %3851, %v4172_v53   ;;  %v3983_v52 = vmov 9  }
 0x5cd   :  { %3852 = vset.pattern.permute.xlu1 %v3982_v9  ;;  %3853 = vset.pattern.permute.xlu0 %v3983_v52 }
 0x62f   :  { %v731_v54 = vpop.permute.xlu1 %730 }
 0x630   :  { %v737_v55 = vsel %vm736_vm12, %v731_v54, 0.0 }
 0x631   :  { %v745_v56 = vrot.slane %v737_v55, 4 }
 0x633   :  { %3746 = vmatprep.subr.msk.mxu0 %vm775_vm13, %v745_v56  ;;  %v722_v58 = vpop.permute.xlu1 %721  ;;  %v752_v59 = vsel %vm751_vm14, %v739_v57, %v745_v56 }
 0x634   :  { %v728_v60 = vsel %vm727_vm15, 0.0, %v722_v58  ;;  %3747 = vmatpush3.msk.msra.mxu0 %vm775_vm13, %v745_v56 }
 0x635   :  { %3748 = vmatprep.subr.mxu0 %v752_v59  ;;  %v749_v61 = vsel %vm104_vm4, %v728_v60, %v739_v57 }
 0x636   :  { %3749 = vmatpush3.msra.mxu0 %v752_v59 }
 0x637   :  { %3750 = vmatprep.subr.mxu0 %v749_v61  ;;  %v733_v63 = vpop.permute.xlu1 %732  ;;  %v724_v0 = vpop.permute.xlu0 %723 }
 0x638   :  { %v738_v1 = vsel %vm736_vm12, %v733_v63, 0.0  ;;  %3751 = vmatpush3.msra.mxu0 %v749_v61  ;;  %v729_v4 = vsel %vm727_vm15, 0.0, %v724_v0 }
 0x639   :  { %v746_v2 = vrot.slane %v738_v1, 4  ;;  %3753 = vmatmul.mubr.msk.f32.vlgmr.msra.gmra.mxu0 %vm768_vm11, %v755_v62  ;;  %v750_v8 = vsel %vm104_vm4, %v729_v4, %v740_v3  ;;  %vm4362_vm4 = vmneg %vm727_vm15 }
 0x63a   :  { %3761 = vmatprep.mubr.msk.f32.mxu0 %vm768_vm11, %v754_v42 }
 0x63b   :  { %3755 = vmatprep.subr.msk.mxu0 %vm775_vm13, %v746_v2  ;;  %v753_v6 = vsel %vm751_vm14, %v740_v3, %v746_v2 }
 0x63c   :  { %3756 = vmatpush3.msk.msra.mxu0 %vm775_vm13, %v746_v2  ;;  %vm1587_vm13 = vcmask 607712  }
 0x63d   :  { %3757 = vmatprep.subr.mxu0 %v753_v6 }
 0x63e   :  { %3758 = vmatpush3.msra.mxu0 %v753_v6 }
 0x63f   :  { %3759 = vmatprep.subr.mxu0 %v750_v8 }
 0x640   :  { %3760 = vmatpush3.msra.mxu0 %v750_v8 }
 0x641   :  { %3762 = vmatmul.mubr.msk.f32.vlgmr.msra.gmra.mxu0 %vm768_vm11, %v755_v62  ;;  %3764 = vmatprep.subr.mxu0 %v5998_v14 }
 0x642   :  { %3774 = vmatprep.mubr.msk.f32.mxu0 %vm3969_vm0, %v5998_v14 }
 0x644   :  { %v766_v10 = vpop.permute.xlu1 %765  ;;  %v761_v12 = vpop.permute.xlu0 %760 }
 0x6f9   :  { %v3754_v11 = vpop.f32.mrf.mxu0 }
 0x6fa   :  { %v850_v15 = vadd.f32 %v3754_v11, %v766_v10 }
 0x6fb   :  { %v844_v16 = vpop.f32.mrf.mxu0 }
 0x6fc   :  { %v935_v17 = vmul.f32 0.70710677, %v850_v15  ;;  %v845_v18 = vadd.f32 %v844_v16, %v761_v12  ;;  %v931_v29 = vmul.f32 0.5, %v850_v15 }
 0x6fe   :  { %3903 = verf.f32 %v935_v17  ;;  %v934_v19 = vmul.f32 0.70710677, %v845_v18  ;;  %v930_v33 = vmul.f32 0.5, %v845_v18 }
 0x700   :  { %3905 = verf.f32 %v934_v19 }
 0x701   :  { %v3763_v20 = vpop.f32.mrf.mxu0 }
 0x702   :  { %v927_v21 = vadd.f32 %v3763_v20, %v766_v10 }
 0x703   :  { %v921_v22 = vpop.f32.mrf.mxu0 }
 0x704   :  { %v937_v23 = vmul.f32 0.70710677, %v927_v21  ;;  %v922_v24 = vadd.f32 %v921_v22, %v761_v12  ;;  %v933_v39 = vmul.f32 0.5, %v927_v21 }
 0x706   :  { %3907 = verf.f32 %v937_v23  ;;  %v936_v26 = vmul.f32 0.70710677, %v922_v24  ;;  %v932_v42 = vmul.f32 0.5, %v922_v24 }
 0x708   :  { %3909 = verf.f32 %v936_v26 }
 0x70b   :  { %v3904_v28 = vpop.eup %3903 }
 0x70c   :  { %v943_v30 = vadd.f32 1.0, %v3904_v28 }
 0x70d   :  { %v3906_v31 = vpop.eup %3905 }
 0x70e   :  { %v947_v34 = vmul.f32 %v943_v30, %v931_v29  ;;  %v942_v35 = vadd.f32 1.0, %v3906_v31 }
 0x710   :  { %v956_v36 = vmul.f32 %v954_v32, %v947_v34  ;;  %v946_v37 = vmul.f32 %v942_v35, %v930_v33 }
 0x712   :  { %v964_v38 = vsel %vm963_vm2, %v956_v36, 0.0  ;;  %v955_v5 = vmul.f32 %v954_v32, %v946_v37 }
 0x713   :  { %v3908_v27 = vpop.eup %3907  ;;  %965 = vadd.xlane.f32.xlu1 %v964_v38 }
 0x714   :  { %v945_v40 = vadd.f32 1.0, %v3908_v27  ;;  %v960_v43 = vsel %vm959_vm3, %v955_v5, 0.0 }
 0x715   :  { %v3910_v41 = vpop.eup %3909 }
 0x716   :  { %v949_v44 = vmul.f32 %v945_v40, %v933_v39  ;;  %v944_v45 = vadd.f32 1.0, %v3910_v41 }
 0x717   :  { %961 = vadd.xlane.f32.xlu1 %v960_v43 }
 0x718   :  { %v958_v46 = vmul.f32 %v954_v32, %v949_v44  ;;  %v948_v47 = vmul.f32 %v944_v45, %v932_v42 }
 0x71a   :  { %v970_v48 = vsel %vm963_vm2, %v958_v46, 0.0  ;;  %v957_v49 = vmul.f32 %v954_v32, %v948_v47 }
 0x71b   :  { %971 = vadd.xlane.f32.xlu0 %v970_v48 }
 0x71c   :  { %v967_v50 = vsel %vm959_vm3, %v957_v49, 0.0 }
 0x71f   :  { %968 = vadd.xlane.f32.xlu0 %v967_v50 }
 0x728   :  { %1024 = vperm.xlu1 %3852, %v951_v51  }
 0x79c   :  { %v966_v54 = vpop.xlane.xlu1 %965 }
 0x79d   :  { %v974_v56 = vsel %vm751_vm14, %v966_v54, 0.0 }
 0x7a0   :  { %v962_v59 = vpop.xlane.xlu1 %961 }
 0x7a4   :  { %v972_v55 = vpop.xlane.xlu0 %971  ;;  %v1025_v20 = vpop.permute.xlu1 %1024 }
 0x7a5   :  { %v975_v57 = vsel %vm751_vm14, %v972_v55, 0.0 }
 0x7a6   :  { %v976_v58 = vadd.f32 %v975_v57, %v974_v56  ;;  %v1810_v57 = vld [vmem:[%s5993_s2 + $0x8] sm:$0xff] }
 0x7a8   :  { %v978_v60 = vmul.f32 0.016666668, %v976_v58  ;;  %v969_v61 = vpop.xlane.xlu0 %968  ;;  %v3985_v58 = vmov 11  }
 0x7a9   :  { %v973_v62 = vadd.f32 %v969_v61, %v962_v59  ;;  %v2101_v59 = vld [vmem:[%s5993_s2 + $0x88] sm:$0xff]  ;;  %v1096_v61 = vld [vmem:[%s5993_s2 + $0x10] sm:$0x3] }
 0x7aa   :  { %v980_v63 = vsub.f32 %v947_v34, %v978_v60  ;;  %v982_v0 = vsub.f32 %v949_v44, %v978_v60  ;;  %v3984_v34 = vmov 10   ;;  %v1812_v60 = vld [vmem:[%s5993_s2 + $0x18] sm:$0xff] }
 0x7ab   :  { %v977_v1 = vmul.f32 0.016666668, %v973_v62  ;;  %v1814_v62 = vld [vmem:[%s5993_s2 + $0x28] sm:$0xff] }
 0x7ac   :  { %v986_v2 = vmul.f32 %v982_v0, %v982_v0  ;;  %v984_v3 = vmul.f32 %v980_v63, %v980_v63 }
 0x7ad   :  { %v979_v4 = vsub.f32 %v946_v37, %v977_v1  ;;  %v981_v6 = vsub.f32 %v948_v47, %v977_v1  ;;  %v1818_v1 = vld [vmem:[%s5993_s2 + $0x48] sm:$0xff] }
 0x7ae   :  { %v990_v8 = vmul.f32 %v986_v2, %v954_v32  ;;  %v988_v9 = vmul.f32 %v984_v3, %v954_v32  ;;  %v1820_v2 = vld [vmem:[%s5993_s2 + $0x58] sm:$0xff]  ;;  %v3986_v3 = vmov 12  }
 0x7af   :  { %v985_v10 = vmul.f32 %v981_v6, %v981_v6  ;;  %v983_v11 = vmul.f32 %v979_v4, %v979_v4 }
 0x7b0   :  { %v1000_v12 = vsel %vm963_vm2, %v990_v8, 0.0  ;;  %v994_v15 = vsel %vm963_vm2, %v988_v9, 0.0  ;;  %v4285_v8 = vld [vmem:[%s5993_s2 + $0x78] sm:$0xff]  ;;  %v1827_v9 = vld [vmem:[%s5993_s2 + $0x90] sm:$0xff]  ;;  %vm1613_vm2 = vcmask 853712  }
 0x7b1   :  { %1001 = vadd.xlane.f32.xlu0 %v1000_v12  ;;  %995 = vadd.xlane.f32.xlu1 %v994_v15  ;;  %v989_v16 = vmul.f32 %v985_v10, %v954_v32  ;;  %v987_v17 = vmul.f32 %v983_v11, %v954_v32  ;;  %v1813_v10 = vld [vmem:[%s5993_s2 + $0x20] sm:$0xff]  ;;  %v1831_v12 = vld [vmem:[%s5993_s2 + $0xb0] sm:$0xff]  ;;  %v1830_v15 = vld [vmem:[%s5993_s2 + $0xa8] sm:$0xff] }
 0x7b2   :  { %v1829_v11 = vld [vmem:[%s5993_s2 + $0xa0] sm:$0xff] }
 0x7b3   :  { %v997_v18 = vsel %vm959_vm3, %v989_v16, 0.0  ;;  %v991_v19 = vsel %vm959_vm3, %v987_v17, 0.0  ;;  %v1833_v16 = vld [vmem:[%s5993_s2 + $0xc0] sm:$0xff]  ;;  %v1815_v17 = vld [vmem:[%s5993_s2 + $0x30] sm:$0xff] }
 0x7b5   :  { %998 = vadd.xlane.f32.xlu0 %v997_v18  ;;  %992 = vadd.xlane.f32.xlu1 %v991_v19  ;;  %v4324_v18 = vld [vmem:[%s5993_s2 + $0xd0] sm:$0xff]  ;;  %v4331_v19 = vld [vmem:[%s5993_s2 + $0xe0] sm:$0xff] }
 0x7c6   :  { %1019 = vperm.xlu1 %3852, %v4172_v53  }
 0x7ca   :  { %3854 = vset.pattern.permute.xlu1 %v3983_v52 }
 0x7cb   :  { %1036 = vperm.xlu0 %3853, %v951_v51   ;;  %1032 = vperm.xlu1 %3854, %v4172_v53  }
 0x7cf   :  { %3855 = vset.pattern.permute.xlu1 %v3984_v34  ;;  %3856 = vset.pattern.permute.xlu0 %v3984_v34 }
 0x83a   :  { %v1002_v21 = vpop.xlane.xlu0 %1001  ;;  %v996_v22 = vpop.xlane.xlu1 %995 }
 0x83b   :  { %v1005_v23 = vsel %vm751_vm14, %v1002_v21, 0.0  ;;  %v1004_v24 = vsel %vm751_vm14, %v996_v22, 0.0  ;;  %v4341_v21 = vld [vmem:[%s5993_s2 + $0xf0] sm:$0xff] }
 0x83c   :  { %v1006_v25 = vadd.f32 %v1005_v23, %v1004_v24  ;;  %v1817_v24 = vld [vmem:[%s5993_s2 + $0x40] sm:$0xff] }
 0x83e   :  { %v1008_v26 = vmul.f32 0.016666668, %v1006_v25  ;;  %v999_v28 = vpop.xlane.xlu0 %998  ;;  %v993_v29 = vpop.xlane.xlu1 %992 }
 0x83f   :  { %v1003_v30 = vadd.f32 %v999_v28, %v993_v29 }
 0x840   :  { %v1010_v31 = vadd.f32 1e-05, %v1008_v26 }
 0x841   :  { %v1007_v32 = vmul.f32 0.016666668, %v1003_v30 }
 0x842   :  { %3911 = vrsqrt.f32 %v1010_v31  ;;  %v1020_v36 = vpop.permute.xlu1 %1019  ;;  %v1091_v31 = vld [vmem:[%s5992_s1 + $0x18] sm:$0xff] }
 0x843   :  { %v1009_v33 = vadd.f32 1e-05, %v1007_v32 }
 0x845   :  { %3913 = vrsqrt.f32 %v1009_v33  ;;  %v1092_v33 = vld [vmem:[%s5992_s1 + $0x20] sm:$0xff] }
 0x846   :  { %v1037_v5 = vpop.permute.xlu0 %1036  ;;  %v1033_v44 = vpop.permute.xlu1 %1032 }
 0x84f   :  { %v3912_v35 = vpop.eup %3911 }
 0x850   :  { %v1014_v37 = vmul.f32 %v3912_v35, %v980_v63  ;;  %v1016_v38 = vmul.f32 %v3912_v35, %v982_v0  ;;  %v1816_v63 = vld [vmem:[%s5993_s2 + $0x38] sm:$0xff]  ;;  %v1825_v0 = vld [vmem:[%s5993_s2 + $0x80] sm:$0xff] }
 0x852   :  { %v3914_v27 = vpop.eup %3913  ;;  %v1028_v39 = vmul.f32 %v1025_v20, %v1014_v37  ;;  %v1030_v40 = vmul.f32 %v1025_v20, %v1016_v38  ;;  %v1832_v20 = vld [vmem:[%s5993_s2 + $0xb8] sm:$0xff]  ;;  %v1093_v37 = vld [vmem:[%s5992_s1 + $0x28] sm:$0x3]  ;;  %s4002_s1 = smov 82  }
 0x853   :  { %v1013_v41 = vmul.f32 %v3914_v27, %v979_v4  ;;  %v1015_v42 = vmul.f32 %v3914_v27, %v981_v6  ;;  %v1822_v4 = vld [vmem:[%s5993_s2 + $0x68] sm:$0xff]  ;;  %v1811_v6 = vld [vmem:[%s5993_s2 + $0x10] sm:$0xff] }
 0x854   :  { %v1040_v43 = vadd.f32 %v1037_v5, %v1028_v39  ;;  %v1042_v47 = vadd.f32 %v1037_v5, %v1030_v40 }
 0x855   :  { %v1027_v45 = vmul.f32 %v1020_v36, %v1013_v41  ;;  %v1029_v46 = vmul.f32 %v1020_v36, %v1015_v42  ;;  %v1834_v36 = vld [vmem:[%s5993_s2 + $0xc8] sm:$0xff]  ;;  %v1819_v41 = vld [vmem:[%s5993_s2 + $0x50] sm:$0xff]  ;;  %v1836_v42 = vld [vmem:[%s5993_s2 + $0xd8] sm:$0xff] }
 0x856   :  { %1065 = vrot.lane.b32.xlu1 %v1040_v43, %s3979_s20  ;;  %v1080_v52 = vrot.slane %v1040_v43, 4  ;;  %v1083_v54 = vrot.slane %v1042_v47, 4 }
 0x857   :  { %v4216_v48 = vadd.f32 %v1033_v44, %v1027_v45  ;;  %v4218_v49 = vadd.f32 %v1033_v44, %v1029_v46  ;;  %v1838_v44 = vld [vmem:[%s5993_s2 + $0xe8] sm:$0xff]  ;;  %v1823_v45 = vld [vmem:[%s5993_s2 + $0x70] sm:$0xff]  ;;  %v1840_v46 = vld [vmem:[%s5993_s2 + $0xf8] sm:$0xff] }
 0x859   :  { %v1079_v50 = vrot.slane %v4216_v48, 4  ;;  %v1082_v51 = vrot.slane %v4218_v49, 4  ;;  %1067 = vrot.lane.b32.xlu0 %v4218_v49, %s3979_s20 }
 0x85a   :  { %1063 = vrot.lane.b32.xlu1 %v4216_v48, %s3979_s20 }
 0x85b   :  { %v4229_v55 = vsel %vm751_vm14, %v1079_v50, %v1080_v52  ;;  %v4234_v56 = vsel %vm751_vm14, %v1082_v51, %v1083_v54 }
 0x85d   :  { %1051 = vrot.lane.b32.xlu0 %v4218_v49, %s3980_s21 }
 0x85e   :  { %1049 = vrot.lane.b32.xlu1 %v1040_v43, %s3980_s21  ;;  %v1821_v43 = vld [vmem:[%s5993_s2 + $0x60] sm:$0xff] }
 0x861   :  { %1104 = vperm.xlu0 %3856, %v1810_v57  }
 0x862   :  { %1047 = vrot.lane.b32.xlu1 %v4216_v48, %s3980_s21 }
 0x865   :  { %3857 = vset.pattern.permute.xlu0 %v3985_v58 }
 0x866   :  { %1069 = vrot.lane.b32.xlu1 %v1042_v47, %s3979_s20  ;;  %1852 = vperm.xlu0 %3857, %v4172_v53  }
 0x86a   :  { %1053 = vrot.lane.b32.xlu1 %v1042_v47, %s3980_s21  ;;  %1937 = vperm.xlu0 %3857, %v2101_v59  }
 0x86e   :  { %1099 = vperm.xlu1 %3855, %v4172_v53   ;;  %1867 = vperm.xlu0 %3857, %v1812_v60  }
 0x872   :  { %1109 = vperm.xlu1 %3855, %v1096_v61   ;;  %1877 = vperm.xlu0 %3857, %v1814_v62  }
 0x876   :  { %3858 = vset.pattern.permute.xlu1 %v3985_v58  ;;  %1887 = vperm.xlu0 %3857, %v1816_v63  }
 0x877   :  { %1932 = vperm.xlu1 %3858, %v1825_v0  }
 0x87a   :  { %1897 = vperm.xlu0 %3857, %v1818_v1  }
 0x87b   :  { %1857 = vperm.xlu1 %3858, %v1810_v57  }
 0x87e   :  { %1907 = vperm.xlu0 %3857, %v1820_v2  }
 0x87f   :  { %3859 = vset.pattern.permute.xlu1 %v3986_v3 }
 0x880   :  { %2118 = vperm.xlu1 %3859, %v4172_v53   ;;  %v1828_v53 = vld [vmem:[%s5993_s2 + $0x98] sm:$0xff]  ;;  %s3988_s2 = smov 15  }
 0x882   :  { %1917 = vperm.xlu0 %3857, %v1822_v4  }
 0x884   :  { %3860 = vset.pattern.permute.xlu1 %v3985_v58 }
 0x885   :  { %1862 = vperm.xlu1 %3860, %v1811_v6  }
 0x886   :  { %1927 = vperm.xlu0 %3857, %v4285_v8  }
 0x889   :  { %1942 = vperm.xlu1 %3860, %v1827_v9  }
 0x88a   :  { %3886 = vset.pattern.permute.xlu0 %v3986_v3 }
 0x88b   :  { %2198 = vperm.xlu0 %3886, %v1825_v0  }
 0x88d   :  { %3861 = vset.pattern.permute.xlu1 %v3986_v3 }
 0x88e   :  { %2203 = vperm.xlu1 %3861, %v2101_v59  }
 0x88f   :  { %2123 = vperm.xlu0 %3886, %v1810_v57  }
 0x892   :  { %3862 = vset.pattern.permute.xlu1 %v3985_v58 }
 0x893   :  { %1947 = vperm.xlu1 %3862, %v1828_v53   ;;  %2208 = vperm.xlu0 %3886, %v1827_v9  }
 0x897   :  { %3863 = vset.pattern.permute.xlu1 %v3986_v3  ;;  %2133 = vperm.xlu0 %3886, %v1812_v60  }
 0x898   :  { %2128 = vperm.xlu1 %3863, %v1811_v6  }
 0x89b   :  { %2218 = vperm.xlu0 %3886, %v1829_v11  }
 0x89c   :  { %3864 = vset.pattern.permute.xlu1 %v3985_v58 }
 0x89d   :  { %1872 = vperm.xlu1 %3864, %v1813_v10  }
 0x89f   :  { %2143 = vperm.xlu0 %3886, %v1814_v62  }
 0x8a1   :  { %1952 = vperm.xlu1 %3864, %v1829_v11  }
 0x8a3   :  { %2228 = vperm.xlu0 %3886, %v1831_v12  }
 0x8a5   :  { %3865 = vset.pattern.permute.xlu1 %v3986_v3 }
 0x8a6   :  { %2213 = vperm.xlu1 %3865, %v1828_v53  }
 0x8a7   :  { %2153 = vperm.xlu0 %3886, %v1816_v63  }
 0x8aa   :  { %3866 = vset.pattern.permute.xlu1 %v3985_v58 }
 0x8ab   :  { %1957 = vperm.xlu1 %3866, %v1830_v15   ;;  %2238 = vperm.xlu0 %3886, %v1833_v16  }
 0x8af   :  { %3867 = vset.pattern.permute.xlu1 %v3986_v3  ;;  %2163 = vperm.xlu0 %3886, %v1818_v1  }
 0x8b0   :  { %2138 = vperm.xlu1 %3867, %v1813_v10  }
 0x8b3   :  { %2248 = vperm.xlu0 %3886, %v4324_v18  }
 0x8b4   :  { %3868 = vset.pattern.permute.xlu1 %v3985_v58 }
 0x8b5   :  { %1882 = vperm.xlu1 %3868, %v1815_v17  }
 0x8b7   :  { %2173 = vperm.xlu0 %3886, %v1820_v2  }
 0x8b9   :  { %1962 = vperm.xlu1 %3868, %v1831_v12  }
 0x8bb   :  { %2258 = vperm.xlu0 %3886, %v4331_v19  }
 0x8bd   :  { %3869 = vset.pattern.permute.xlu1 %v3986_v3 }
 0x8be   :  { %2223 = vperm.xlu1 %3869, %v1830_v15  }
 0x8bf   :  { %2183 = vperm.xlu0 %3886, %v1822_v4  }
 0x8c2   :  { %3870 = vset.pattern.permute.xlu1 %v3985_v58 }
 0x8c3   :  { %1967 = vperm.xlu1 %3870, %v1832_v20   ;;  %2268 = vperm.xlu0 %3886, %v4341_v21  }
 0x8c7   :  { %3871 = vset.pattern.permute.xlu1 %v3986_v3 }
 0x8c8   :  { %v1066_v22 = vpop.permute.xlu1 %1065  ;;  %2148 = vperm.xlu1 %3871, %v1815_v17  }
 0x8c9   :  { %v1076_v23 = vsel %vm736_vm12, %v1066_v22, 0.0 }
 0x8ca   :  { %3765 = vmatpush3.msk.msra.mxu0 %vm751_vm14, %v1076_v23 }
 0x8cb   :  { %3766 = vmatprep.subr.mxu0 %v5998_v14  ;;  %v1068_v38 = vpop.permute.xlu0 %1067 }
 0x8cc   :  { %v1064_v25 = vpop.permute.xlu1 %1063  ;;  %3872 = vset.pattern.permute.xlu1 %v3985_v58 }
 0x8cd   :  { %3767 = vmatpush3.msk.msra.mxu0 %vm736_vm12, %v1064_v25  ;;  %1892 = vperm.xlu1 %3872, %v1817_v24  }
 0x8ce   :  { %3768 = vmatprep.subr.mxu0 %v5998_v14 }
 0x8cf   :  { %3769 = vmatpush3.msra.mxu0 %v4229_v55  ;;  %v1052_v40 = vpop.permute.xlu0 %1051 }
 0x8d0   :  { %v1050_v26 = vpop.permute.xlu1 %1049  ;;  %3770 = vmatprep.subr.mxu0 %v5998_v14 }
 0x8d1   :  { %v1060_v28 = vsel %vm727_vm15, 0.0, %v1050_v26  ;;  %1972 = vperm.xlu1 %3872, %v1833_v16  }
 0x8d2   :  { %v1089_v29 = vsel %vm751_vm14, %v1060_v28, %v1079_v50 }
 0x8d3   :  { %3771 = vmatpush3.msra.mxu0 %v1089_v29 }
 0x8d4   :  { %3772 = vmatprep.subr.mxu0 %v5998_v14  ;;  %v1048_v32 = vpop.permute.xlu1 %1047 }
 0x8d5   :  { %3773 = vmatpush3.msk.msra.mxu0 %vm4362_vm4, %v1048_v32  ;;  %3873 = vset.pattern.permute.xlu1 %v3986_v3 }
 0x8d6   :  { %3775 = vmatmul.mubr.msk.f32.vlgmr.msra.gmra.mxu0 %vm1112_vm5, %v1091_v31  ;;  %3783 = vmatprep.subr.mxu0 %v5998_v14 }
 0x8d7   :  { %3777 = vmatprep.mubr.msk.f32.mxu0 %vm3969_vm0, %v5998_v14  ;;  %2233 = vperm.xlu1 %3873, %v1832_v20  }
 0x8d8   :  { %v1070_v34 = vpop.permute.xlu1 %1069 }
 0x8d9   :  { %v1078_v35 = vsel %vm736_vm12, %v1070_v34, 0.0 }
 0x8da   :  { %3778 = vmatmul.mubr.msk.f32.gmra.mxu0 %vm1112_vm5, %v1092_v33 }
 0x8db   :  { %3784 = vmatpush3.msk.msra.mxu0 %vm751_vm14, %v1078_v35  ;;  %3780 = vmatprep.mubr.msk.f32.mxu0 %vm3969_vm0, %v5998_v14 }
 0x8dc   :  { %3785 = vmatprep.subr.mxu0 %v5998_v14  ;;  %v1054_v5 = vpop.permute.xlu1 %1053  ;;  %3874 = vset.pattern.permute.xlu1 %v3985_v58  ;;  %v1105_v62 = vpop.permute.xlu0 %1104 }
 0x8dd   :  { %3786 = vmatpush3.msk.msra.mxu0 %vm736_vm12, %v1068_v38  ;;  %v1062_v27 = vsel %vm727_vm15, 0.0, %v1054_v5  ;;  %1977 = vperm.xlu1 %3874, %v1834_v36   ;;  %vm1559_vm12 = vcmask 484712   ;;  %vm1655_vm15 = vcmask 1042368  }
 0x8de   :  { %v1090_v39 = vsel %vm751_vm14, %v1062_v27, %v1082_v51  ;;  %3787 = vmatprep.subr.mxu0 %v5998_v14  ;;  %3781 = vmatmul.mubr.msk.f32.gmra.mxu0 %vm1112_vm5, %v1093_v37  ;;  %vm1599_vm14 = vcmask 730712  }
 0x8df   :  { %3788 = vmatpush3.msra.mxu0 %v4234_v56  ;;  %3793 = vmatprep.mubr.msk.f32.mxu0 %vm3969_vm0, %v5998_v14 }
 0x8e0   :  { %3789 = vmatprep.subr.mxu0 %v5998_v14 }
 0x8e1   :  { %3790 = vmatpush3.msra.mxu0 %v1090_v39  ;;  %3875 = vset.pattern.permute.xlu1 %v3986_v3  ;;  %v4475_v6 = vpop.permute.xlu0 %1852 }
 0x8e2   :  { %3791 = vmatprep.subr.mxu0 %v5998_v14  ;;  %2158 = vperm.xlu1 %3875, %v1817_v24  }
 0x8e3   :  { %3792 = vmatpush3.msk.msra.mxu0 %vm4362_vm4, %v1052_v40  ;;  %vm1625_vm4 = vcmask 976712  }
 0x8e4   :  { %3794 = vmatmul.mubr.msk.f32.vlgmr.msra.gmra.mxu0 %vm1112_vm5, %v1091_v31 }
 0x8e5   :  { %3796 = vmatprep.mubr.msk.f32.mxu0 %vm3969_vm0, %v5998_v14  ;;  %v4479_v16 = vpop.permute.xlu0 %1937 }
 0x8e6   :  { %3876 = vset.pattern.permute.xlu1 %v3985_v58 }
 0x8e7   :  { %1902 = vperm.xlu1 %3876, %v1819_v41  }
 0x8e8   :  { %3797 = vmatmul.mubr.msk.f32.gmra.mxu0 %vm1112_vm5, %v1092_v33 }
 0x8e9   :  { %3799 = vmatprep.mubr.msk.f32.mxu0 %vm3969_vm0, %v5998_v14  ;;  %v1100_v47 = vpop.permute.xlu1 %1099  ;;  %v4483_v22 = vpop.permute.xlu0 %1867  ;;  %vm1512_vm0 = vcmask 1041409  }
 0x8eb   :  { %1982 = vperm.xlu1 %3876, %v4324_v18  }
 0x8ec   :  { %3800 = vmatmul.mubr.msk.f32.gmra.mxu0 %vm1112_vm5, %v1093_v37  ;;  %vm1657_vm5 = vmor %vm1656_vm1, %vm1655_vm15  ;;  %vm3010_vm1 = vcmask 916480  }
 0x8ed   :  { %v1110_v48 = vpop.permute.xlu1 %1109 }
 0x8ef   :  { %3877 = vset.pattern.permute.xlu1 %v3986_v3 }
 0x8f0   :  { %2243 = vperm.xlu1 %3877, %v1834_v36   ;;  %v4487_v36 = vpop.permute.xlu0 %1877 }
 0x8f2   :  { %v4449_v49 = vpop.permute.xlu1 %1932 }
 0x8f4   :  { %3878 = vset.pattern.permute.xlu1 %v3985_v58 }
 0x8f5   :  { %1987 = vperm.xlu1 %3878, %v1836_v42  }
 0x8f6   :  { %v4451_v50 = vpop.permute.xlu1 %1857 }
 0x8f9   :  { %3879 = vset.pattern.permute.xlu1 %v3986_v3 }
 0x8fa   :  { %2168 = vperm.xlu1 %3879, %v1819_v41  }
 0x8fb   :  { %v4453_v51 = vpop.permute.xlu1 %2118 }
 0x8fe   :  { %3880 = vset.pattern.permute.xlu1 %v3985_v58 }
 0x8ff   :  { %1912 = vperm.xlu1 %3880, %v1821_v43  }
 0x900   :  { %v4455_v52 = vpop.permute.xlu1 %1862 }
 0x903   :  { %1992 = vperm.xlu1 %3880, %v4331_v19  }
 0x904   :  { %v4457_v54 = vpop.permute.xlu1 %1942 }
 0x907   :  { %3881 = vset.pattern.permute.xlu1 %v3986_v3 }
 0x908   :  { %2253 = vperm.xlu1 %3881, %v1836_v42  }
 0x909   :  { %v4459_v55 = vpop.permute.xlu1 %2203 }
 0x90c   :  { %3882 = vset.pattern.permute.xlu1 %v3985_v58 }
 0x90d   :  { %1997 = vperm.xlu1 %3882, %v1838_v44  }
 0x90e   :  { %v4461_v56 = vpop.permute.xlu1 %1947 }
 0x911   :  { %3883 = vset.pattern.permute.xlu1 %v3986_v3 }
 0x912   :  { %2178 = vperm.xlu1 %3883, %v1821_v43  }
 0x913   :  { %v4463_v57 = vpop.permute.xlu1 %2128 }
 0x916   :  { %3884 = vset.pattern.permute.xlu1 %v3985_v58 }
 0x917   :  { %1922 = vperm.xlu1 %3884, %v1823_v45  }
 0x91b   :  { %2002 = vperm.xlu1 %3884, %v4341_v21  }
 0x91f   :  { %3885 = vset.pattern.permute.xlu1 %v3986_v3 }
 0x920   :  { %2263 = vperm.xlu1 %3885, %v1838_v44  }
 0x924   :  { %3887 = vset.pattern.permute.xlu1 %v3985_v58  ;;  %v4465_v58 = vpop.permute.xlu1 %1872 }
 0x925   :  { %2007 = vperm.xlu1 %3887, %v1840_v46  }
 0x928   :  { %v4467_v59 = vpop.permute.xlu1 %1952 }
 0x929   :  { %3888 = vset.pattern.permute.xlu1 %v3986_v3 }
 0x92a   :  { %2188 = vperm.xlu1 %3888, %v1823_v45   ;;  %v4491_v45 = vpop.permute.xlu0 %1887 }
 0x92c   :  { %v4469_v60 = vpop.permute.xlu1 %2213 }
 0x92e   :  { %2193 = vperm.xlu1 %3888, %v4285_v8  }
 0x930   :  { %v4471_v61 = vpop.permute.xlu1 %1957 }
 0x932   :  { %2273 = vperm.xlu1 %3888, %v1840_v46  }
 0x934   :  { %v4473_v2 = vpop.permute.xlu1 %2138 }
 0x938   :  { %v4477_v11 = vpop.permute.xlu1 %1882 }
 0x93c   :  { %v4481_v19 = vpop.permute.xlu1 %1962 }
 0x940   :  { %v4485_v29 = vpop.permute.xlu1 %2223 }
 0x944   :  { %v4489_v40 = vpop.permute.xlu1 %1967 }
 0x996   :  { %v1191_v63 = vpop.f32.mrf.mxu0 }
 0x997   :  { %v1192_v0 = vadd.f32 %v1191_v63, %v1100_v47 }
 0x998   :  { %v3776_v1 = vpop.f32.mrf.mxu0 }
 0x999   :  { %v1294_v3 = vmul.f32 0.70710677, %v1192_v0  ;;  %v1288_v26 = vmul.f32 0.5, %v1192_v0  ;;  %v4495_v0 = vpop.permute.xlu0 %1897 }
 0x99a   :  { %v1196_v4 = vpop.f32.mrf.mxu0  ;;  %6040 = vst [vmem:[#allocation8_spill] sm:$0xff] %v4495_v0 }
 0x99b   :  { %3915 = verf.f32 %v1294_v3  ;;  %v1197_v8 = vadd.f32 %v1196_v4, %v1105_v62 }
 0x99c   :  { %v3779_v9 = vpop.f32.mrf.mxu0 }
 0x99d   :  { %v1295_v53 = vmul.f32 0.70710677, %v1197_v8  ;;  %v1289_v37 = vmul.f32 0.5, %v1197_v8 }
 0x99e   :  { %v1201_v10 = vpop.f32.mrf.mxu0 }
 0x99f   :  { %3917 = verf.f32 %v1295_v53  ;;  %v1202_v12 = vadd.f32 %v1201_v10, %v1110_v48 }
 0x9a0   :  { %v3782_v15 = vpop.f32.mrf.mxu0 }
 0x9a1   :  { %v1296_v17 = vmul.f32 0.70710677, %v1202_v12  ;;  %v1290_v43 = vmul.f32 0.5, %v1202_v12  ;;  %v4499_v12 = vpop.permute.xlu0 %1907 }
 0x9a2   :  { %6041 = vst [vmem:[#allocation9_spill] sm:$0xff] %v4499_v12 }
 0x9a3   :  { %3919 = verf.f32 %v1296_v17 }
 0x9a4   :  { %v1274_v18 = vpop.f32.mrf.mxu0 }
 0x9a5   :  { %v1275_v20 = vadd.f32 %v1274_v18, %v1100_v47  ;;  %v4493_v47 = vpop.permute.xlu1 %2148 }
 0x9a6   :  { %v3795_v21 = vpop.f32.mrf.mxu0 }
 0x9a7   :  { %v1297_v23 = vmul.f32 0.70710677, %v1275_v20  ;;  %v1291_v63 = vmul.f32 0.5, %v1275_v20  ;;  %v4503_v20 = vpop.permute.xlu0 %1917 }
 0x9a8   :  { %v3916_v24 = vpop.eup %3915  ;;  %v1279_v25 = vpop.f32.mrf.mxu0  ;;  %6042 = vst [vmem:[#allocation10_spill] sm:$0xff] %v4503_v20 }
 0x9a9   :  { %v1306_v28 = vadd.f32 1.0, %v3916_v24  ;;  %3921 = verf.f32 %v1297_v23  ;;  %v1280_v30 = vadd.f32 %v1279_v25, %v1105_v62  ;;  %v4497_v9 = vpop.permute.xlu1 %1892 }
 0x9aa   :  { %v3798_v31 = vpop.f32.mrf.mxu0 }
 0x9ab   :  { %v1312_v32 = vmul.f32 %v1306_v28, %v1288_v26  ;;  %v1298_v33 = vmul.f32 0.70710677, %v1280_v30  ;;  %v1292_v4 = vmul.f32 0.5, %v1280_v30  ;;  %v4507_v24 = vpop.permute.xlu0 %1927 }
 0x9ac   :  { %v3918_v34 = vpop.eup %3917  ;;  %v1284_v35 = vpop.f32.mrf.mxu0  ;;  %6043 = vst [vmem:[#allocation11_spill] sm:$0xff] %v4507_v24 }
 0x9ad   :  { %v1307_v38 = vadd.f32 1.0, %v3918_v34  ;;  %3923 = verf.f32 %v1298_v33  ;;  %v1285_v5 = vadd.f32 %v1284_v35, %v1110_v48  ;;  %1318 = vxpose.xlu0.b32.start [1/3] (short) (narrow) %v1312_v32, 120  ;;  %v4501_v21 = vpop.permute.xlu1 %1972 }
 0x9ae   :  { %v3801_v27 = vpop.f32.mrf.mxu0 }
 0x9af   :  { %v1313_v39 = vmul.f32 %v1307_v38, %v1289_v37  ;;  %v1299_v41 = vmul.f32 0.70710677, %v1285_v5  ;;  %v1293_v15 = vmul.f32 0.5, %v1285_v5  ;;  %v4511_v26 = vpop.permute.xlu0 %2198 }
 0x9b0   :  { %v3920_v42 = vpop.eup %3919 }
 0x9b1   :  { %v1308_v44 = vadd.f32 1.0, %v3920_v42  ;;  %3925 = verf.f32 %v1299_v41  ;;  %1319 = vxpose.xlu0.b32.cont [2/3] (short) (narrow) %v1313_v39, 120  ;;  %v4505_v23 = vpop.permute.xlu1 %2233 }
 0x9b3   :  { %v1314_v46 = vmul.f32 %v1308_v44, %v1290_v43  ;;  %v4515_v30 = vpop.permute.xlu0 %2123 }
 0x9b5   :  { %1320 = vxpose.xlu0.b32.end [3/3] (short) (narrow) %v1314_v46, 120  ;;  %v4509_v25 = vpop.permute.xlu1 %1977 }
 0x9b6   :  { %v3922_v62 = vpop.eup %3921  ;;  %6044 = vst [vmem:[#allocation12_spill] sm:$0xff] %v4509_v25 }
 0x9b7   :  { %v1309_v48 = vadd.f32 1.0, %v3922_v62  ;;  %v4519_v32 = vpop.permute.xlu0 %2208 }
 0x9b9   :  { %v1315_v1 = vmul.f32 %v1309_v48, %v1291_v63  ;;  %v4513_v28 = vpop.permute.xlu1 %2158 }
 0x9ba   :  { %v3924_v3 = vpop.eup %3923  ;;  %6045 = vst [vmem:[#allocation13_spill] sm:$0xff] %v4513_v28 }
 0x9bb   :  { %v1310_v8 = vadd.f32 1.0, %v3924_v3  ;;  %1350 = vxpose.xlu1.b32.start [1/3] (short) (narrow) %v1315_v1, 120  ;;  %v4525_v35 = vpop.permute.xlu0 %2133 }
 0x9bd   :  { %v1316_v53 = vmul.f32 %v1310_v8, %v1292_v4  ;;  %v4517_v31 = vpop.permute.xlu1 %1902 }
 0x9be   :  { %v3926_v10 = vpop.eup %3925  ;;  %6046 = vst [vmem:[#allocation14_spill] sm:$0xff] %v4517_v31 }
 0x9bf   :  { %v1311_v17 = vadd.f32 1.0, %v3926_v10  ;;  %1351 = vxpose.xlu1.b32.cont [2/3] (short) (narrow) %v1316_v53, 120  ;;  %v4529_v38 = vpop.permute.xlu0 %2218 }
 0x9c1   :  { %v1317_v18 = vmul.f32 %v1311_v17, %v1293_v15  ;;  %v4521_v33 = vpop.permute.xlu1 %1982 }
 0x9c2   :  { %6047 = vst [vmem:[#allocation15_spill] sm:$0xff] %v4521_v33 }
 0x9c3   :  { %1352 = vxpose.xlu1.b32.end [3/3] (short) (narrow) %v1317_v18, 120  ;;  %v4533_v27 = vpop.permute.xlu0 %2143 }
 0x9c5   :  { %v4523_v34 = vpop.permute.xlu1 %2243 }
 0x9c6   :  { %6048 = vst [vmem:[#allocation16_spill] sm:$0xff] %v4523_v34 }
 0x9c7   :  { %v4537_v41 = vpop.permute.xlu0 %2228 }
 0x9c9   :  { %v4527_v37 = vpop.permute.xlu1 %1987 }
 0x9ca   :  { %6049 = vst [vmem:[#allocation17_spill] sm:$0xff] %v4527_v37 }
 0x9cb   :  { %v4541_v43 = vpop.permute.xlu0 %2153 }
 0x9cc   :  { %6053 = vst [vmem:[#allocation21_spill] sm:$0xff] %v4541_v43 }
 0x9cd   :  { %v4531_v5 = vpop.permute.xlu1 %2168 }
 0x9ce   :  { %6050 = vst [vmem:[#allocation18_spill] sm:$0xff] %v4531_v5 }
 0x9cf   :  { %v4545_v46 = vpop.permute.xlu0 %2238 }
 0x9d0   :  { %6055 = vst [vmem:[#allocation23_spill] sm:$0xff] %v4545_v46 }
 0x9d1   :  { %v4535_v39 = vpop.permute.xlu1 %1912 }
 0x9d2   :  { %6051 = vst [vmem:[#allocation19_spill] sm:$0xff] %v4535_v39 }
 0x9d3   :  { %v4549_v63 = vpop.permute.xlu0 %2163 }
 0x9d4   :  { %6057 = vst [vmem:[#allocation25_spill] sm:$0xff] %v4549_v63 }
 0x9d5   :  { %v4539_v42 = vpop.permute.xlu1 %1992 }
 0x9d6   :  { %6052 = vst [vmem:[#allocation20_spill] sm:$0xff] %v4539_v42 }
 0x9d7   :  { %v4553_v1 = vpop.permute.xlu0 %2248 }
 0x9d8   :  { %6059 = vst [vmem:[#allocation27_spill] sm:$0xff] %v4553_v1 }
 0x9d9   :  { %v4543_v44 = vpop.permute.xlu1 %2253 }
 0x9da   :  { %6054 = vst [vmem:[#allocation22_spill] sm:$0xff] %v4543_v44 }
 0x9db   :  { %v4557_v4 = vpop.permute.xlu0 %2173 }
 0x9dc   :  { %6061 = vst [vmem:[#allocation29_spill] sm:$0xff] %v4557_v4 }
 0x9dd   :  { %v4547_v62 = vpop.permute.xlu1 %1997 }
 0x9de   :  { %6056 = vst [vmem:[#allocation24_spill] sm:$0xff] %v4547_v62 }
 0x9df   :  { %v4561_v53 = vpop.permute.xlu0 %2258 }
 0x9e0   :  { %6063 = vst [vmem:[#allocation31_spill] sm:$0xff] %v4561_v53 }
 0x9e1   :  { %v4551_v48 = vpop.permute.xlu1 %2178 }
 0x9e2   :  { %6058 = vst [vmem:[#allocation26_spill] sm:$0xff] %v4551_v48 }
 0x9e3   :  { %v4565_v15 = vpop.permute.xlu0 %2183 }
 0x9e4   :  { %6065 = vst [vmem:[#allocation33_spill] sm:$0xff] %v4565_v15 }
 0x9e5   :  { %v4555_v3 = vpop.permute.xlu1 %1922 }
 0x9e6   :  { %6060 = vst [vmem:[#allocation28_spill] sm:$0xff] %v4555_v3 }
 0x9e7   :  { %v4569_v18 = vpop.permute.xlu0 %2268 }
 0x9e8   :  { %6067 = vst [vmem:[#allocation35_spill] sm:$0xff] %v4569_v18 }
 0x9e9   :  { %v4559_v8 = vpop.permute.xlu1 %2002 }
 0x9ea   :  { %6062 = vst [vmem:[#allocation30_spill] sm:$0xff] %v4559_v8 }
 0x9ed   :  { %v4563_v10 = vpop.permute.xlu1 %2263 }
 0x9ee   :  { %6064 = vst [vmem:[#allocation32_spill] sm:$0xff] %v4563_v10 }
 0x9f1   :  { %v4567_v17 = vpop.permute.xlu1 %2007 }
 0x9f2   :  { %6066 = vst [vmem:[#allocation34_spill] sm:$0xff] %v4567_v17 }
 0x9f5   :  { %v4571_v14 = vpop.permute.xlu1 %2188 }
 0x9f6   :  { %6068 = vst [vmem:[#allocation36_spill] sm:$0xff] %v4571_v14 }
 0x9f9   :  { %v4574_v3 = vpop.permute.xlu1 %2193 }
 0x9fa   :  { %6069 = vst [vmem:[#allocation37_spill] sm:$0xff] %v4574_v3 }
 0x9fd   :  { %v4578_v10 = vpop.permute.xlu1 %2273 }
 0x9fe   :  { %6070 = vst [vmem:[#allocation38_spill] sm:$0xff] %v4578_v10 }
 0xa29   :  { %v1334_v24 = vpop.trf.xlu0 }
 0xa2a   :  { %1382 = vst.msk [vmem:[#allocation2] sm:$0xff] %vm768_vm11, %v1334_v24 }
 0xa2d   :  { %v1335_v48 = vpop.trf.xlu0 }
 0xa2e   :  { %1383 = vst.msk [vmem:[#allocation2 + $0x8] sm:$0xff] %vm768_vm11, %v1335_v48 }
 0xa31   :  { %v1336_v8 = vpop.trf.xlu0 }
 0xa32   :  { %1384 = vst.msk [vmem:[#allocation2 + $0x10] sm:$0xff] %vm768_vm11, %v1336_v8 }
 0xa35   :  { %v1337_v15 = vpop.trf.xlu0 }
 0xa36   :  { %1385 = vst.msk [vmem:[#allocation2 + $0x18] sm:$0xff] %vm768_vm11, %v1337_v15 }
 0xa37   :  { %v1366_v17 = vpop.trf.xlu1 }
 0xa38   :  { %1397 = vst.msk [vmem:[#allocation2 + $0x78] sm:$0xff] %vm768_vm11, %v1366_v17 }
 0xa39   :  { %v1338_v14 = vpop.trf.xlu0 }
 0xa3a   :  { %1386 = vst.msk [vmem:[#allocation2 + $0x20] sm:$0xff] %vm768_vm11, %v1338_v14 }
 0xa3b   :  { %v1367_v24 = vpop.trf.xlu1 }
 0xa3c   :  { %1398 = vst.msk [vmem:[#allocation2 + $0x80] sm:$0xff] %vm768_vm11, %v1367_v24 }
 0xa3d   :  { %v1339_v3 = vpop.trf.xlu0 }
 0xa3e   :  { %1387 = vst.msk [vmem:[#allocation2 + $0x28] sm:$0xff] %vm768_vm11, %v1339_v3 }
 0xa3f   :  { %v1368_v48 = vpop.trf.xlu1 }
 0xa40   :  { %1399 = vst.msk [vmem:[#allocation2 + $0x88] sm:$0xff] %vm768_vm11, %v1368_v48  ;;  %v1412_v48 = vld [vmem:[#allocation2] ss:$8 sm:$0xf] }
 0xa41   :  { %v1340_v8 = vpop.trf.xlu0 }
 0xa42   :  { %1388 = vst.msk [vmem:[#allocation2 + $0x30] sm:$0xff] %vm768_vm11, %v1340_v8 }
 0xa43   :  { %v1369_v10 = vpop.trf.xlu1 }
 0xa44   :  { %1400 = vst.msk [vmem:[#allocation2 + $0x90] sm:$0xff] %vm768_vm11, %v1369_v10 }
 0xa45   :  { %v1341_v15 = vpop.trf.xlu0 }
 0xa46   :  { %1389 = vst.msk [vmem:[#allocation2 + $0x38] sm:$0xff] %vm768_vm11, %v1341_v15 }
 0xa47   :  { %v1370_v17 = vpop.trf.xlu1 }
 0xa48   :  { %1401 = vst.msk [vmem:[#allocation2 + $0x98] sm:$0xff] %vm768_vm11, %v1370_v17 }
 0xa49   :  { %v1342_v14 = vpop.trf.xlu0 }
 0xa4a   :  { %1390 = vst.msk [vmem:[#allocation2 + $0x40] sm:$0xff] %vm768_vm11, %v1342_v14 }
 0xa4b   :  { %v1371_v24 = vpop.trf.xlu1 }
 0xa4c   :  { %1402 = vst.msk [vmem:[#allocation2 + $0xa0] sm:$0xff] %vm768_vm11, %v1371_v24 }
 0xa4d   :  { %v1343_v3 = vpop.trf.xlu0  ;;  %v1413_v18 = vld [vmem:[#allocation2] ss:$8 sm:$0xf0] }
 0xa4e   :  { %1391 = vst.msk [vmem:[#allocation2 + $0x48] sm:$0xff] %vm768_vm11, %v1343_v3  ;;  %v1414_v8 = vor.u32 %v1413_v18, %v1412_v48  ;;  %v1420_v3 = vld [vmem:[#allocation2 + $0x78] ss:$8 sm:$0xf] }
 0xa4f   :  { %v1372_v20 = vpop.trf.xlu1 }
 0xa50   :  { %1403 = vst.msk [vmem:[#allocation2 + $0xa8] sm:$0xff] %vm768_vm11, %v1372_v20  ;;  %1427 = vxpose.xlu1.b32.start [1/2] (short) (narrow) %v1414_v8, 24 }
 0xa51   :  { %v1344_v10 = vpop.trf.xlu0 }
 0xa52   :  { %1392 = vst.msk [vmem:[#allocation2 + $0x50] sm:$0xff] %vm768_vm11, %v1344_v10 }
 0xa53   :  { %v1373_v15 = vpop.trf.xlu1 }
 0xa54   :  { %1404 = vst.msk [vmem:[#allocation2 + $0xb0] sm:$0xff] %vm768_vm11, %v1373_v15 }
 0xa55   :  { %v1345_v17 = vpop.trf.xlu0 }
 0xa56   :  { %1393 = vst.msk [vmem:[#allocation2 + $0x58] sm:$0xff] %vm768_vm11, %v1345_v17 }
 0xa57   :  { %v1374_v14 = vpop.trf.xlu1 }
 0xa58   :  { %1405 = vst.msk [vmem:[#allocation2 + $0xb8] sm:$0xff] %vm768_vm11, %v1374_v14 }
 0xa59   :  { %v1346_v24 = vpop.trf.xlu0 }
 0xa5a   :  { %1394 = vst.msk [vmem:[#allocation2 + $0x60] sm:$0xff] %vm768_vm11, %v1346_v24 }
 0xa5b   :  { %v1375_v18 = vpop.trf.xlu1  ;;  %v1421_v48 = vld [vmem:[#allocation2 + $0x78] ss:$8 sm:$0xf0] }
 0xa5c   :  { %1406 = vst.msk [vmem:[#allocation2 + $0xc0] sm:$0xff] %vm768_vm11, %v1375_v18  ;;  %v1422_v20 = vor.u32 %v1421_v48, %v1420_v3 }
 0xa5d   :  { %v1347_v8 = vpop.trf.xlu0  ;;  %v1416_v24 = vld [vmem:[#allocation2 + $0x40] ss:$8 sm:$0xf] }
 0xa5e   :  { %1395 = vst.msk [vmem:[#allocation2 + $0x68] sm:$0xff] %vm768_vm11, %v1347_v8  ;;  %1459 = vxpose.xlu0.b32.start [1/2] (short) (narrow) %v1422_v20, 24 }
 0xa5f   :  { %v1376_v10 = vpop.trf.xlu1 }
 0xa60   :  { %1407 = vst.msk [vmem:[#allocation2 + $0xc8] sm:$0xff] %vm768_vm11, %v1376_v10 }
 0xa61   :  { %v1348_v15 = vpop.trf.xlu0 }
 0xa62   :  { %1396 = vst.msk [vmem:[#allocation2 + $0x70] sm:$0xff] %vm768_vm11, %v1348_v15  ;;  %v3987_v15 = vmov 1983009808  }
 0xa63   :  { %v1377_v17 = vpop.trf.xlu1  ;;  %v1494_v62 = vunpack.c.l.s4 %v3987_v15 }
 0xa64   :  { %1408 = vst.msk [vmem:[#allocation2 + $0xd0] sm:$0xff] %vm768_vm11, %v1377_v17 }
 0xa65   :  { %v1495_v17 = vunpack.c.0.s8 %v1494_v62 }
 0xa67   :  { %v1378_v14 = vpop.trf.xlu1  ;;  %v4608_v4 = vsub.s32 %v1495_v17, %v4045_v7 }
 0xa68   :  { %1409 = vst.msk [vmem:[#allocation2 + $0xd8] sm:$0xff] %vm768_vm11, %v1378_v14 }
 0xa69   :  { %v1417_v53 = vld [vmem:[#allocation2 + $0x40] ss:$8 sm:$0x70]  ;;  %6071 = vst [vmem:[#allocation39_spill] sm:$0xff] %v4608_v4 }
 0xa6a   :  { %v1418_v18 = vor.u32 %v1417_v53, %v1416_v24 }
 0xa6b   :  { %v1379_v3 = vpop.trf.xlu1  ;;  %v1424_v20 = vld [vmem:[#allocation2 + $0xb8] ss:$8 sm:$0xf] }
 0xa6c   :  { %1410 = vst.msk [vmem:[#allocation2 + $0xe0] sm:$0xff] %vm768_vm11, %v1379_v3  ;;  %1428 = vxpose.xlu1.b32.end [2/2] (short) (narrow) %v1418_v18, 24 }
 0xa6f   :  { %v1380_v48 = vpop.trf.xlu1 }
 0xa70   :  { %1411 = vst.msk [vmem:[#allocation2 + $0xe8] sm:$0xff] %vm768_vm11, %v1380_v48  ;;  %vm1547_vm11 = vcmask 361712  }
 0xa77   :  { %v1425_v8 = vld [vmem:[#allocation2 + $0xb8] ss:$8 sm:$0x70] }
 0xa78   :  { %v1426_v10 = vor.u32 %v1425_v8, %v1424_v20 }
 0xa7a   :  { %1460 = vxpose.xlu0.b32.end [2/2] (short) (narrow) %v1426_v10, 24 }
 0xae4   :  { %v1443_v14 = vpop.trf.xlu1 }
 0xae5   :  { %v1561_v39 = vcombine.high %v1443_v14, %v1443_v14  ;;  %v4611_v53 = vrot.slane %v1443_v14, %v4608_v4 }
 0xae7   :  { %v1568_v24 = vrot.slane %v1561_v39, %v4608_v4  ;;  %v1535_v18 = vcombine.high %v4611_v53, %v4611_v53  ;;  %v1523_v3 = vrot.slane %v4611_v53, 1 }
 0xae8   :  { %v1444_v48 = vpop.trf.xlu1 }
 0xae9   :  { %v4617_v20 = vcombine.high %v1568_v24, %v1568_v24  ;;  %v1549_v62 = vrot.slane %v1535_v18, 1  ;;  %v1589_v17 = vrot.slane %v1568_v24, 1  ;;  %v1635_v39 = vrot.slane %v1444_v48, %v4608_v4 }
 0xaea   :  { %v1697_v42 = vcombine.high %v1444_v48, %v1444_v48 }
 0xaeb   :  { %v1615_v5 = vrot.slane %v4617_v20, 1  ;;  %v1659_v33 = vrot.slane %v1635_v39, 1  ;;  %v1671_v46 = vcombine.high %v1635_v39, %v1635_v39 }
 0xaf2   :  { %v1475_v8 = vpop.trf.xlu0 }
 0xaf3   :  { %v4620_v10 = vrot.slane %v1475_v8, %v4608_v4  ;;  %v1569_v15 = vcombine.high %v1475_v8, %v1475_v8 }
 0xaf5   :  { %v1576_v14 = vrot.slane %v1569_v15, %v4608_v4  ;;  %v1526_v7 = vsel %vm1512_vm0, %v4620_v10, %v1523_v3  ;;  %v1536_v44 = vcombine.high %v4620_v10, %v4620_v10 }
 0xaf6   :  { %v1527_v8 = vsel %vm1514_vm6, %v4620_v10, %v1526_v7  ;;  %v1476_v12 = vpop.trf.xlu0 }
 0xaf7   :  { %v1528_v1 = vsel %vm1516_vm7, %v4620_v10, %v1527_v8  ;;  %v1552_v37 = vsel %vm1512_vm0, %v1536_v44, %v1549_v62  ;;  %v4635_v15 = vrot.slane %v1476_v12, %v4608_v4  ;;  %v1705_v63 = vcombine.high %v1476_v12, %v1476_v12 }
 0xaf8   :  { %v1529_v3 = vsel %vm1518_vm8, %v4620_v10, %v1528_v1  ;;  %v1553_v48 = vsel %vm1514_vm6, %v1536_v44, %v1552_v37  ;;  %v1579_v31 = vrot.slane %v1576_v14, 7  ;;  %v1592_v34 = vsel %vm1512_vm0, %v1576_v14, %v1589_v17 }
 0xaf9   :  { %1530 = vrot.lane.b32.xlu0 %v1529_v3, %s3988_s2  ;;  %v1554_v7 = vsel %vm1516_vm7, %v1536_v44, %v1553_v48  ;;  %v1645_v8 = vrot.slane %v4635_v15, 7  ;;  %v4644_v62 = vrot.slane %v1697_v42, %v4608_v4  ;;  %v1593_v1 = vsel %vm1514_vm6, %v1576_v14, %v1592_v34 }
 0xafa   :  { %v1555_v12 = vsel %vm1518_vm8, %v1536_v44, %v1554_v7  ;;  %v1580_v28 = vsel %vm1512_vm0, %v1579_v31, %v1568_v24  ;;  %v1602_v37 = vcombine.high %v1576_v14, %v1576_v14  ;;  %v4650_v17 = vrot.slane %v1705_v63, %v4608_v4 }
 0xafb   :  { %1556 = vrot.lane.b32.xlu1 %v1555_v12, %s3989_s27  ;;  %v1581_v3 = vsel %vm1514_vm6, %v1579_v31, %v1580_v28  ;;  %v1646_v48 = vsel %vm1512_vm0, %v1645_v8, %v1635_v39  ;;  %v1594_v0 = vsel %vm1516_vm7, %v1576_v14, %v1593_v1  ;;  %v4657_v42 = vcombine.high %v4635_v15, %v4635_v15 }
 0xafc   :  { %v1582_v24 = vsel %vm1516_vm7, %v1579_v31, %v1581_v3  ;;  %v1618_v34 = vsel %vm1512_vm0, %v1602_v37, %v1615_v5  ;;  %v1539_v7 = vrot.slane %v1536_v44, 7  ;;  %v1647_v28 = vsel %vm1514_vm6, %v1645_v8, %v1646_v48 }
 0xafd   :  { %v1583_v12 = vsel %vm1518_vm8, %v1579_v31, %v1582_v24  ;;  %v1619_v63 = vsel %vm1514_vm6, %v1602_v37, %v1618_v34  ;;  %v1595_v1 = vsel %vm1518_vm8, %v1576_v14, %v1594_v0  ;;  %v1662_v3 = vsel %vm1512_vm0, %v4635_v15, %v1659_v33 }
 0xafe   :  { %1584 = vrot.lane.b32.xlu0 %v1583_v12, %s3990_s28  ;;  %v1620_v25 = vsel %vm1516_vm7, %v1602_v37, %v1619_v63  ;;  %v1540_v43 = vsel %vm1512_vm0, %v1539_v7, %v1535_v18  ;;  %v1715_v5 = vrot.slane %v4650_v17, 7  ;;  %v1737_v31 = vcombine.high %v4644_v62, %v4644_v62  ;;  %v1445_v63 = vpop.trf.xlu1 }
 0xaff   :  { %1596 = vrot.lane.b32.xlu1 %v1595_v1, %s3991_s29  ;;  %v1541_v44 = vsel %vm1514_vm6, %v1539_v7, %v1540_v43  ;;  %v1648_v39 = vsel %vm1516_vm7, %v1645_v8, %v1647_v28  ;;  %v1663_v14 = vsel %vm1514_vm6, %v4635_v15, %v1662_v3  ;;  %v1675_v18 = vrot.slane %v4657_v42, 7 }
 0xb00   :  { %v1542_v0 = vsel %vm1516_vm7, %v1539_v7, %v1541_v44  ;;  %v1605_v48 = vrot.slane %v1602_v37, 7  ;;  %v1685_v33 = vrot.slane %v1671_v46, 1  ;;  %v1621_v24 = vsel %vm1518_vm8, %v1602_v37, %v1620_v25 }
 0xb01   :  { %v1543_v34 = vsel %vm1518_vm8, %v1539_v7, %v1542_v0  ;;  %v1676_v12 = vsel %vm1512_vm0, %v1675_v18, %v1671_v46  ;;  %v1649_v28 = vsel %vm1518_vm8, %v1645_v8, %v1648_v39  ;;  %v1664_v1 = vsel %vm1516_vm7, %v4635_v15, %v1663_v14  ;;  %v1477_v14 = vpop.trf.xlu0 }
 0xb02   :  { %1622 = vrot.lane.b32.xlu0 %v1621_v24, %s3992_s30  ;;  %v1606_v43 = vsel %vm1512_vm0, %v1605_v48, %v4617_v20  ;;  %v1677_v3 = vsel %vm1514_vm6, %v1675_v18, %v1676_v12  ;;  %v1716_v25 = vsel %vm1512_vm0, %v1715_v5, %v4644_v62  ;;  %v1751_v37 = vrot.slane %v1737_v31, 1 }
 0xb03   :  { %1544 = vrot.lane.b32.xlu1 %v1543_v34, %s3993_s7  ;;  %v1607_v7 = vsel %vm1514_vm6, %v1605_v48, %v1606_v43  ;;  %v1738_v46 = vcombine.high %v4650_v17, %v4650_v17  ;;  %v1725_v20 = vrot.slane %v4644_v62, 1  ;;  %v1771_v44 = vrot.slane %v1445_v63, %v4608_v4 }
 0xb04   :  { %v1688_v8 = vsel %vm1512_vm0, %v4657_v42, %v1685_v33  ;;  %v1665_v39 = vsel %vm1518_vm8, %v4635_v15, %v1664_v1  ;;  %v1678_v0 = vsel %vm1516_vm7, %v1675_v18, %v1677_v3  ;;  %v1511_v24 = vrot.slane %v4620_v10, 7 }
 0xb05   :  { %v1608_v34 = vsel %vm1516_vm7, %v1605_v48, %v1607_v7  ;;  %v1717_v62 = vsel %vm1514_vm6, %v1715_v5, %v1716_v25  ;;  %v1689_v12 = vsel %vm1514_vm6, %v4657_v42, %v1688_v8  ;;  %v1754_v33 = vsel %vm1512_vm0, %v1738_v46, %v1751_v37 }
 0xb06   :  { %1650 = vrot.lane.b32.xlu0 %v1649_v28, %s3994_s8  ;;  %v1741_v43 = vrot.slane %v1738_v46, 7  ;;  %v1679_v63 = vsel %vm1518_vm8, %v1675_v18, %v1678_v0  ;;  %v1791_v15 = vrot.slane %v1771_v44, 1  ;;  %v1778_v28 = vrot.slane %v1477_v14, %v4608_v4 }
 0xb07   :  { %1666 = vrot.lane.b32.xlu1 %v1665_v39, %s3995_s9  ;;  %v1728_v10 = vsel %vm1512_vm0, %v4650_v17, %v1725_v20  ;;  %v1609_v1 = vsel %vm1518_vm8, %v1605_v48, %v1608_v34  ;;  %v1718_v3 = vsel %vm1516_vm7, %v1715_v5, %v1717_v62  ;;  %v1513_v25 = vsel %vm1512_vm0, %v1511_v24, %v4611_v53 }
 0xb08   :  { %v1690_v18 = vsel %vm1516_vm7, %v4657_v42, %v1689_v12  ;;  %v1755_v37 = vsel %vm1514_vm6, %v1738_v46, %v1754_v33  ;;  %v1515_v7 = vsel %vm1514_vm6, %v1511_v24, %v1513_v25  ;;  %v1729_v20 = vsel %vm1514_vm6, %v4650_v17, %v1728_v10 }
 0xb09   :  { %v1742_v48 = vsel %vm1512_vm0, %v1741_v43, %v1737_v31  ;;  %v1517_v8 = vsel %vm1516_vm7, %v1511_v24, %v1515_v7  ;;  %v1719_v39 = vsel %vm1518_vm8, %v1715_v5, %v1718_v3  ;;  %v1794_v53 = vsel %vm1512_vm0, %v1778_v28, %v1791_v15 }
 0xb0a   :  { %1680 = vrot.lane.b32.xlu0 %v1679_v63, %s3996_s10  ;;  %v1781_v0 = vrot.slane %v1778_v28, 7  ;;  %v1519_v14 = vsel %vm1518_vm8, %v1511_v24, %v1517_v8  ;;  %v1691_v34 = vsel %vm1518_vm8, %v4657_v42, %v1690_v18  ;;  %v1756_v62 = vsel %vm1516_vm7, %v1738_v46, %v1755_v37 }
 0xb0b   :  { %1610 = vrot.lane.b32.xlu1 %v1609_v1, %s3997_s11  ;;  %1522 = vst.msk [vmem:[#allocation3] sm:$0x3] %vm1521_vm9, %v1519_v14  ;;  %v1730_v31 = vsel %vm1516_vm7, %v4650_v17, %v1729_v20  ;;  %v1743_v5 = vsel %vm1514_vm6, %v1741_v43, %v1742_v48  ;;  %v1795_v12 = vsel %vm1514_vm6, %v1778_v28, %v1794_v53  ;;  %vm1735_vm9 = vcmask 665112   ;;  %s4005_s11 = smov [#allocation3]  }
 0xb0c   :  { %v1757_v33 = vsel %vm1518_vm8, %v1738_v46, %v1756_v62  ;;  %v1782_v24 = vsel %vm1512_vm0, %v1781_v0, %v1771_v44  ;;  %v1731_v42 = vsel %vm1518_vm8, %v4650_v17, %v1730_v31  ;;  %v1744_v63 = vsel %vm1516_vm7, %v1741_v43, %v1743_v5 }
 0xb0d   :  { %v1796_v15 = vsel %vm1516_vm7, %v1778_v28, %v1795_v12  ;;  %v1783_v10 = vsel %vm1514_vm6, %v1781_v0, %v1782_v24  ;;  %v1745_v1 = vsel %vm1518_vm8, %v1741_v43, %v1744_v63  ;;  %vm1669_vm0 = vcmask 173112  }
 0xb0e   :  { %1720 = vrot.lane.b32.xlu0 %v1719_v39, %s3998_s12  ;;  %v1797_v46 = vsel %vm1518_vm8, %v1778_v28, %v1796_v15  ;;  %v1784_v44 = vsel %vm1516_vm7, %v1781_v0, %v1783_v10  ;;  %vm1683_vm6 = vcmask 296112   ;;  %vm1695_vm7 = vcmask 419112   ;;  %s3607_s12 = sshll.u32 %s4005_s11, 4  ;;  %s3608_s12 = int_to_ptr.vmem [resolvable:$true] %s3607_s12 }
 0xb0f   :  { %1692 = vrot.lane.b32.xlu1 %v1691_v34, %s3999_s13  ;;  %v1785_v17 = vsel %vm1518_vm8, %v1781_v0, %v1784_v44  ;;  %vm1723_vm8 = vcmask 542112   ;;  %s3943_s13 = scalar_lea.vmem %s3608_s12, 96  ;;  %p3948_p1 = scmp.lt.s32.totalorder %s3608_s12, %s3608_s12 }
 0xb10   :  { %p3944_p0 = scmp.ne.s32.totalorder %s3608_s12, %s3943_s13  ;;  %p3949_p2 = scmp.lt.s32.totalorder %s3943_s13, %s3943_s13 }
 0xb12   :  { %1758 = vrot.lane.b32.xlu0 %v1757_v33, %s4000_s14  ;;  %p3950_p3 = por %p3949_p2, %p3948_p1 }
 0xb13   :  { %1732 = vrot.lane.b32.xlu1 %v1731_v42, %s4001_s15 }
 0xb14   :  { %p3951_p4 = pnand %p3950_p3, %p3944_p0 }
 0xb16   :  { %1746 = vrot.lane.b32.xlu0 %v1745_v1, %s4002_s1 }
 0xb17   :  { %1798 = vrot.lane.b32.xlu1 %v1797_v46, %s3971_s25  ;;  %s4004_s25 = smov 122  }
 0xb1b   :  { %1786 = vrot.lane.b32.xlu1 %v1785_v17, %s4003_s16 }
 0xb6b   :  { %v1531_v3 = vpop.permute.xlu0 %1530 }
 0xb6c   :  { %1534 = vst.msk [vmem:[#allocation3] sm:$0x3] %vm1533_vm10, %v1531_v3  ;;  %vm1749_vm10 = vcmask 788112  }
 0xb6d   :  { %v1557_v25 = vpop.permute.xlu1 %1556 }
 0xb70   :  { %v1585_v18 = vpop.permute.xlu0 %1584 }
 0xb71   :  { %v1597_v37 = vpop.permute.xlu1 %1596 }
 0xb74   :  { %v1623_v43 = vpop.permute.xlu0 %1622 }
 0xb75   :  { %v1545_v7 = vpop.permute.xlu1 %1544 }
 0xb76   :  { %1548 = vst.msk [vmem:[#allocation3] sm:$0x3] %vm1547_vm11, %v1545_v7  ;;  %vm1761_vm11 = vcmask 911112  }
 0xb77   :  { %1560 = vst.msk [vmem:[#allocation3] sm:$0x3] %vm1559_vm12, %v1557_v25  ;;  %vm1805_vm12 = vcmask 109570  }
 0xb78   :  { %v1651_v28 = vpop.permute.xlu0 %1650  ;;  %1588 = vst.msk [vmem:[#allocation3] sm:$0x3] %vm1587_vm13, %v1585_v18  ;;  %vm1801_vm13 = vcmask 1039360  }
 0xb79   :  { %v1667_v20 = vpop.permute.xlu1 %1666  ;;  %1600 = vst.msk [vmem:[#allocation3] sm:$0x3] %vm1599_vm14, %v1597_v37  ;;  %v1652_v48 = vrot.slane %v1651_v28, 6  ;;  %vm1789_vm14 = vcmask 1034112  }
 0xb7b   :  { %v1653_v53 = vsel %vm959_vm3, %v1652_v48, %v1651_v28  ;;  %vm1804_vm3 = vcmask 1042424  }
 0xb7c   :  { %v1681_v8 = vpop.permute.xlu0 %1680  ;;  %vm1806_vm15 = vmor %vm1805_vm12, %vm1804_vm3 }
 0xb7d   :  { %v1611_v39 = vpop.permute.xlu1 %1610 }
 0xb7e   :  { %1614 = vst.msk [vmem:[#allocation3] sm:$0x3] %vm1613_vm2, %v1611_v39  ;;  %vm3598_vm2 = vcmask 647168  }
 0xb7f   :  { %1626 = vst.msk [vmem:[#allocation3] sm:$0x3] %vm1625_vm4, %v1623_v43 }
 0xb80   :  { %1658 = vst.msk [vmem:[#allocation3] sm:$0xf] %vm1657_vm5, %v1653_v53  ;;  %v1721_v0 = vpop.permute.xlu0 %1720 }
 0xb81   :  { %1670 = vst.msk [vmem:[#allocation3 + $0x2] sm:$0x3] %vm1669_vm0, %v1667_v20  ;;  %v1693_v14 = vpop.permute.xlu1 %1692 }
 0xb82   :  { %1684 = vst.msk [vmem:[#allocation3 + $0x2] sm:$0x3] %vm1683_vm6, %v1681_v8 }
 0xb83   :  { %1696 = vst.msk [vmem:[#allocation3 + $0x2] sm:$0x3] %vm1695_vm7, %v1693_v14 }
 0xb84   :  { %v1759_v34 = vpop.permute.xlu0 %1758  ;;  %1724 = vst.msk [vmem:[#allocation3 + $0x2] sm:$0x3] %vm1723_vm8, %v1721_v0 }
 0xb85   :  { %v1733_v62 = vpop.permute.xlu1 %1732 }
 0xb86   :  { %1736 = vst.msk [vmem:[#allocation3 + $0x2] sm:$0x3] %vm1735_vm9, %v1733_v62 }
 0xb88   :  { %v1747_v31 = vpop.permute.xlu0 %1746 }
 0xb89   :  { %1750 = vst.msk [vmem:[#allocation3 + $0x2] sm:$0x3] %vm1749_vm10, %v1747_v31  ;;  %v1799_v5 = vpop.permute.xlu1 %1798 }
 0xb8a   :  { %v1800_v12 = vrot.slane %v1799_v5, 6  ;;  %1762 = vst.msk [vmem:[#allocation3 + $0x2] sm:$0x3] %vm1761_vm11, %v1759_v34 }
 0xb8c   :  { %v1802_v24 = vsel %vm1801_vm13, %v1800_v12, %v1799_v5 }
 0xb8d   :  { %v1787_v33 = vpop.permute.xlu1 %1786 }
 0xb8e   :  { %1790 = vst.msk [vmem:[#allocation3 + $0x2] sm:$0x3] %vm1789_vm14, %v1787_v33 }
 0xb8f   :  { %1807 = vst.msk [vmem:[#allocation3 + $0x2] sm:$0xf] %vm1806_vm15, %v1802_v24 }
 0xb96   :  { %v4744_v42 = vld.sshfl [vmem:[#allocation3 + $0x2] sm:$0x11 pattern:$0x75316420] }
 0xb97   :  { %v4748_v63 = vrot.slane %v4744_v42, %v4052_v13 }
 0xb99   :  { %v2020_v15 = vmul.f32 %v4748_v63, %v4475_v6  ;;  %v2036_v10 = vmul.f32 %v4748_v63, %v4449_v49  ;;  %v2037_v1 = vmul.f32 %v4748_v63, %v4479_v16  ;;  %v2021_v17 = vmul.f32 %v4748_v63, %v4451_v50 }
 0xb9a   :  { %v2038_v3 = vmul.f32 %v4748_v63, %v4457_v54  ;;  %v2022_v18 = vmul.f32 %v4748_v63, %v4455_v52  ;;  %v2039_v43 = vmul.f32 %v4748_v63, %v4461_v56  ;;  %v2023_v28 = vmul.f32 %v4748_v63, %v4483_v22 }
 0xb9b   :  { %v2292_v46 = vadd.f32 %v4511_v26, %v2036_v10  ;;  %v2276_v44 = vadd.f32 %v4453_v51, %v2020_v15  ;;  %v2293_v25 = vadd.f32 %v4459_v55, %v2037_v1  ;;  %v2277_v37 = vadd.f32 %v4515_v30, %v2021_v17 }
 0xb9c   :  { %v2294_v7 = vadd.f32 %v4519_v32, %v2038_v3  ;;  %v2278_v20 = vadd.f32 %v4463_v57, %v2022_v18  ;;  %v2040_v48 = vmul.f32 %v4748_v63, %v4467_v59  ;;  %v2295_v8 = vadd.f32 %v4469_v60, %v2039_v43  ;;  %v6072_v3 = vld [vmem:[#allocation21_spill] sm:$0xff]  ;;  %v6073_v18 = vld [vmem:[#allocation12_spill] sm:$0xff]  ;;  %v6074_v43 = vld [vmem:[#allocation23_spill] sm:$0xff] }
 0xb9d   :  { %2436 = vrot.lane.b32.xlu1 %v2292_v46, %s4004_s25  ;;  %2404 = vrot.lane.b32.xlu0 %v2276_v44, %s4004_s25  ;;  %v2024_v39 = vmul.f32 %v4748_v63, %v4465_v58  ;;  %v2279_v53 = vadd.f32 %v4525_v35, %v2023_v28  ;;  %v2041_v0 = vmul.f32 %v4748_v63, %v4471_v61  ;;  %v6075_v28 = vld [vmem:[#allocation8_spill] sm:$0xff] }
 0xb9e   :  { %v2296_v14 = vadd.f32 %v4529_v38, %v2040_v48  ;;  %v2025_v34 = vmul.f32 %v4748_v63, %v4487_v36  ;;  %v2042_v31 = vmul.f32 %v4748_v63, %v4481_v19  ;;  %v2026_v12 = vmul.f32 %v4748_v63, %v4477_v11  ;;  %v6076_v48 = vld [vmem:[#allocation13_spill] sm:$0xff] }
 0xb9f   :  { %v2280_v62 = vadd.f32 %v4473_v2, %v2024_v39  ;;  %v2297_v5 = vadd.f32 %v4485_v29, %v2041_v0  ;;  %v2043_v24 = vmul.f32 %v4748_v63, %v4489_v40  ;;  %v2027_v10 = vmul.f32 %v4748_v63, %v4491_v45  ;;  %v6077_v39 = vld [vmem:[#allocation15_spill] sm:$0xff]  ;;  %v6078_v0 = vld [vmem:[#allocation16_spill] sm:$0xff] }
 0xba0   :  { %v2281_v33 = vadd.f32 %v4533_v27, %v2025_v34  ;;  %v2298_v15 = vadd.f32 %v4537_v41, %v2042_v31  ;;  %v2282_v1 = vadd.f32 %v4493_v47, %v2026_v12  ;;  %v2044_v46 = vmul.f32 %v4748_v63, %v4501_v21  ;;  %v6079_v34 = vld [vmem:[#allocation14_spill] sm:$0xff]  ;;  %v6080_v31 = vld [vmem:[#allocation25_spill] sm:$0xff] }
 0xba1   :  { %2438 = vrot.lane.b32.xlu1 %v2293_v25, %s4004_s25  ;;  %2406 = vrot.lane.b32.xlu0 %v2277_v37, %s4004_s25  ;;  %v2299_v44 = vadd.f32 %v4505_v23, %v2043_v24  ;;  %v2028_v17 = vmul.f32 %v4748_v63, %v4497_v9  ;;  %v2283_v25 = vadd.f32 %v6072_v3, %v2027_v10  ;;  %v6081_v12 = vld [vmem:[#allocation17_spill] sm:$0xff]  ;;  %v6082_v24 = vld [vmem:[#allocation27_spill] sm:$0xff] }
 0xba2   :  { %v2045_v37 = vmul.f32 %v4748_v63, %v6073_v18  ;;  %v6083_v10 = vld [vmem:[#allocation9_spill] sm:$0xff] }
 0xba5   :  { %2440 = vrot.lane.b32.xlu1 %v2294_v7, %s4004_s25  ;;  %2408 = vrot.lane.b32.xlu0 %v2278_v20, %s4004_s25  ;;  %v2300_v7 = vadd.f32 %v6074_v43, %v2044_v46  ;;  %v2029_v20 = vmul.f32 %v4748_v63, %v6075_v28  ;;  %v6084_v46 = vld [vmem:[#allocation18_spill] sm:$0xff] }
 0xba9   :  { %2442 = vrot.lane.b32.xlu1 %v2295_v8, %s4004_s25  ;;  %2410 = vrot.lane.b32.xlu0 %v2279_v53, %s4004_s25  ;;  %v2284_v8 = vadd.f32 %v6076_v48, %v2028_v17  ;;  %v2046_v53 = vmul.f32 %v4748_v63, %v6077_v39  ;;  %v6085_v17 = vld [vmem:[#allocation20_spill] sm:$0xff] }
 0xbad   :  { %2444 = vrot.lane.b32.xlu1 %v2296_v14, %s4004_s25  ;;  %2412 = vrot.lane.b32.xlu0 %v2280_v62, %s4004_s25  ;;  %v2301_v14 = vadd.f32 %v6078_v0, %v2045_v37  ;;  %v2030_v62 = vmul.f32 %v4748_v63, %v6079_v34  ;;  %v6086_v37 = vld [vmem:[#allocation22_spill] sm:$0xff] }
 0xbb1   :  { %2446 = vrot.lane.b32.xlu1 %v2297_v5, %s4004_s25  ;;  %2414 = vrot.lane.b32.xlu0 %v2281_v33, %s4004_s25  ;;  %v2285_v5 = vadd.f32 %v6080_v31, %v2029_v20  ;;  %v2047_v33 = vmul.f32 %v4748_v63, %v6081_v12  ;;  %v6087_v20 = vld [vmem:[#allocation19_spill] sm:$0xff] }
 0xbb5   :  { %2448 = vrot.lane.b32.xlu1 %v2298_v15, %s4004_s25  ;;  %2416 = vrot.lane.b32.xlu0 %v2282_v1, %s4004_s25  ;;  %v2302_v15 = vadd.f32 %v6082_v24, %v2046_v53  ;;  %v2031_v1 = vmul.f32 %v4748_v63, %v6083_v10  ;;  %v6089_v53 = vld [vmem:[#allocation24_spill] sm:$0xff] }
 0xbb9   :  { %2450 = vrot.lane.b32.xlu1 %v2299_v44, %s4004_s25  ;;  %2418 = vrot.lane.b32.xlu0 %v2283_v25, %s4004_s25  ;;  %v2286_v44 = vadd.f32 %v6084_v46, %v2030_v62  ;;  %v2048_v25 = vmul.f32 %v4748_v63, %v6085_v17  ;;  %v2049_v62 = vmul.f32 %v4748_v63, %v6089_v53  ;;  %v6092_v17 = vld [vmem:[#allocation26_spill] sm:$0xff]  ;;  %v6095_v53 = vld [vmem:[#allocation28_spill] sm:$0xff] }
 0xbbd   :  { %2452 = vrot.lane.b32.xlu1 %v2300_v7, %s4004_s25  ;;  %2420 = vrot.lane.b32.xlu0 %v2284_v8, %s4004_s25  ;;  %v2303_v7 = vadd.f32 %v6086_v37, %v2047_v33  ;;  %v2032_v8 = vmul.f32 %v4748_v63, %v6087_v20  ;;  %v1849_v33 = vcombine.high %v4744_v42, %v4744_v42 }
 0xbbf   :  { %v2288_v10 = vadd.f32 %v6092_v17, %v2032_v8  ;;  %v6098_v8 = vld [vmem:[#allocation35_spill] sm:$0xff] }
 0xbc1   :  { %2454 = vrot.lane.b32.xlu1 %v2301_v14, %s4004_s25  ;;  %2422 = vrot.lane.b32.xlu0 %v2285_v5, %s4004_s25  ;;  %v6088_v14 = vld [vmem:[#allocation29_spill] sm:$0xff] }
 0xbc2   :  { %v2287_v5 = vadd.f32 %v6088_v14, %v2031_v1  ;;  %v6093_v1 = vld [vmem:[#allocation30_spill] sm:$0xff] }
 0xbc5   :  { %2456 = vrot.lane.b32.xlu1 %v2302_v15, %s4004_s25  ;;  %2424 = vrot.lane.b32.xlu0 %v2286_v44, %s4004_s25  ;;  %v6090_v15 = vld [vmem:[#allocation31_spill] sm:$0xff]  ;;  %v6091_v44 = vld [vmem:[#allocation10_spill] sm:$0xff] }
 0xbc6   :  { %v2304_v4 = vadd.f32 %v6090_v15, %v2048_v25  ;;  %v2033_v46 = vmul.f32 %v4748_v63, %v6091_v44  ;;  %v2034_v25 = vmul.f32 %v4748_v63, %v6095_v53  ;;  %v6096_v15 = vld [vmem:[#allocation33_spill] sm:$0xff] }
 0xbc8   :  { %v2289_v20 = vadd.f32 %v6096_v15, %v2033_v46 }
 0xbc9   :  { %2458 = vrot.lane.b32.xlu1 %v2303_v7, %s4004_s25  ;;  %2426 = vrot.lane.b32.xlu0 %v2287_v5, %s4004_s25  ;;  %v2050_v7 = vmul.f32 %v4748_v63, %v6093_v1  ;;  %v6094_v5 = vld [vmem:[#allocation32_spill] sm:$0xff]  ;;  %v6099_v1 = vld [vmem:[#allocation11_spill] sm:$0xff] }
 0xbca   :  { %v2305_v14 = vadd.f32 %v6094_v5, %v2049_v62  ;;  %v2035_v62 = vmul.f32 %v4748_v63, %v6099_v1  ;;  %v6100_v5 = vld [vmem:[#allocation36_spill] sm:$0xff] }
 0xbcb   :  { %v2306_v17 = vadd.f32 %v6098_v8, %v2050_v7  ;;  %v2290_v44 = vadd.f32 %v6100_v5, %v2034_v25 }
 0xbcd   :  { %2460 = vrot.lane.b32.xlu1 %v2304_v4, %s4004_s25  ;;  %2428 = vrot.lane.b32.xlu0 %v2288_v10, %s4004_s25  ;;  %v4869_v4 = vrot.slane %v1849_v33, %v4052_v13  ;;  %v6097_v10 = vld [vmem:[#allocation34_spill] sm:$0xff]  ;;  %v6102_v13 = vld [vmem:[#allocation37_spill] sm:$0xff] }
 0xbce   :  { %v2051_v42 = vmul.f32 %v4748_v63, %v6097_v10  ;;  %v2291_v10 = vadd.f32 %v6102_v13, %v2035_v62  ;;  %v6106_v62 = vld [vmem:[#allocation19_spill] sm:$0xff] }
 0xbcf   :  { %v2068_v46 = vmul.f32 %v4869_v4, %v4449_v49  ;;  %v2052_v33 = vmul.f32 %v4869_v4, %v4475_v6  ;;  %v2069_v63 = vmul.f32 %v4869_v4, %v4479_v16  ;;  %v2070_v6 = vmul.f32 %v4869_v4, %v4457_v54 }
 0xbd0   :  { %v2054_v25 = vmul.f32 %v4869_v4, %v4455_v52  ;;  %v2072_v52 = vmul.f32 %v4869_v4, %v4467_v59 }
 0xbd1   :  { %2462 = vrot.lane.b32.xlu1 %v2305_v14, %s4004_s25  ;;  %2430 = vrot.lane.b32.xlu0 %v2289_v20, %s4004_s25  ;;  %v6101_v20 = vld [vmem:[#allocation38_spill] sm:$0xff]  ;;  %v2308_v49 = vadd.f32 %v4453_v51, %v2052_v33  ;;  %v2325_v7 = vadd.f32 %v4459_v55, %v2069_v63  ;;  %v2326_v51 = vadd.f32 %v4519_v32, %v2070_v6  ;;  %v6109_v63 = vld [vmem:[#allocation31_spill] sm:$0xff] }
 0xbd2   :  { %v2307_v14 = vadd.f32 %v6101_v20, %v2051_v42  ;;  %v2310_v54 = vadd.f32 %v4463_v57, %v2054_v25  ;;  %v2073_v57 = vmul.f32 %v4869_v4, %v4471_v61  ;;  %v2057_v32 = vmul.f32 %v4869_v4, %v4487_v36  ;;  %v6111_v6 = vld [vmem:[#allocation26_spill] sm:$0xff] }
 0xbd4   :  { %v2313_v61 = vadd.f32 %v4533_v27, %v2057_v32  ;;  %v2060_v27 = vmul.f32 %v4869_v4, %v4497_v9  ;;  %v2078_v9 = vmul.f32 %v4869_v4, %v6077_v39  ;;  %v6104_v39 = vld [vmem:[#allocation18_spill] sm:$0xff] }
 0xbd5   :  { %2464 = vrot.lane.b32.xlu1 %v2306_v17, %s4004_s25  ;;  %2432 = vrot.lane.b32.xlu0 %v2290_v44, %s4004_s25  ;;  %v2324_v17 = vadd.f32 %v4511_v26, %v2068_v46  ;;  %v2053_v44 = vmul.f32 %v4869_v4, %v4451_v50  ;;  %v2071_v50 = vmul.f32 %v4869_v4, %v4461_v56 }
 0xbd6   :  { %v2055_v26 = vmul.f32 %v4869_v4, %v4483_v22  ;;  %v2328_v22 = vadd.f32 %v4529_v38, %v2072_v52  ;;  %v2059_v38 = vmul.f32 %v4869_v4, %v4491_v45  ;;  %v2077_v45 = vmul.f32 %v4869_v4, %v6073_v18 }
 0xbd7   :  { %v2309_v16 = vadd.f32 %v4515_v30, %v2053_v44  ;;  %v2327_v55 = vadd.f32 %v4469_v60, %v2071_v50  ;;  %v2056_v30 = vmul.f32 %v4869_v4, %v4465_v58  ;;  %v2074_v58 = vmul.f32 %v4869_v4, %v4481_v19  ;;  %v6110_v44 = vld [vmem:[#allocation10_spill] sm:$0xff] }
 0xbd8   :  { %v2311_v56 = vadd.f32 %v4525_v35, %v2055_v26  ;;  %v2329_v60 = vadd.f32 %v4485_v29, %v2073_v57  ;;  %v2058_v35 = vmul.f32 %v4869_v4, %v4477_v11  ;;  %v2076_v11 = vmul.f32 %v4869_v4, %v4501_v21 }
 0xbd9   :  { %2466 = vrot.lane.b32.xlu1 %v2307_v14, %s4004_s25  ;;  %2434 = vrot.lane.b32.xlu0 %v2291_v10, %s4004_s25  ;;  %v2312_v59 = vadd.f32 %v4473_v2, %v2056_v30  ;;  %v2075_v2 = vmul.f32 %v4869_v4, %v4489_v40  ;;  %v2330_v36 = vadd.f32 %v4537_v41, %v2074_v58 }
 0xbda   :  { %v2314_v19 = vadd.f32 %v4493_v47, %v2058_v35  ;;  %v2315_v40 = vadd.f32 %v6072_v3, %v2059_v38  ;;  %v2332_v47 = vadd.f32 %v6074_v43, %v2076_v11  ;;  %v2061_v41 = vmul.f32 %v4869_v4, %v6075_v28 }
 0xbdb   :  { %v2331_v29 = vadd.f32 %v4505_v23, %v2075_v2  ;;  %v2316_v21 = vadd.f32 %v6076_v48, %v2060_v27  ;;  %v2333_v23 = vadd.f32 %v6078_v0, %v2077_v45  ;;  %v2062_v3 = vmul.f32 %v4869_v4, %v6079_v34  ;;  %v6103_v48 = vld [vmem:[#allocation9_spill] sm:$0xff]  ;;  %v6105_v0 = vld [vmem:[#allocation20_spill] sm:$0xff]  ;;  %v2755_v45 = vld [vmem:[%s5995_s4 + $0xf8] sm:$0xff] }
 0xbdc   :  { %v2317_v18 = vadd.f32 %v6080_v31, %v2061_v41  ;;  %v2079_v43 = vmul.f32 %v4869_v4, %v6081_v12  ;;  %v2334_v28 = vadd.f32 %v6082_v24, %v2078_v9  ;;  %v2063_v10 = vmul.f32 %v4869_v4, %v6103_v48  ;;  %v6107_v12 = vld [vmem:[#allocation29_spill] sm:$0xff]  ;;  %v6108_v24 = vld [vmem:[#allocation24_spill] sm:$0xff]  ;;  %2831 = vmatprep.subr.mxu0 %v2755_v45  ;;  %v2747_v48 = vld [vmem:[%s5995_s4 + $0xb8] sm:$0xff] }
 0xbdd   :  { %2500 = vrot.lane.b32.xlu1 %v2324_v17, %s4004_s25  ;;  %2468 = vrot.lane.b32.xlu0 %v2308_v49, %s4004_s25  ;;  %v2318_v42 = vadd.f32 %v6104_v39, %v2062_v3  ;;  %v2080_v34 = vmul.f32 %v4869_v4, %v6105_v0  ;;  %v2064_v46 = vmul.f32 %v4869_v4, %v6106_v62  ;;  %v2753_v41 = vld [vmem:[%s5995_s4 + $0xe8] sm:$0xff]  ;;  %v2752_v9 = vld [vmem:[%s5995_s4 + $0xe0] sm:$0xff] }
 0xbde   :  { %v2335_v31 = vadd.f32 %v6086_v37, %v2079_v43  ;;  %v2319_v14 = vadd.f32 %v6107_v12, %v2063_v10  ;;  %v2081_v33 = vmul.f32 %v4869_v4, %v6108_v24  ;;  %v2065_v49 = vmul.f32 %v4869_v4, %v6110_v44  ;;  %v6112_v37 = vld [vmem:[#allocation30_spill] sm:$0xff]  ;;  %v2749_v43 = vld [vmem:[%s5995_s4 + $0xc8] sm:$0xff]  ;;  %v2736_v44 = vld [vmem:[%s5995_s4 + $0x60] sm:$0xff] }
 0xbdf   :  { %v2336_v17 = vadd.f32 %v6109_v63, %v2080_v34  ;;  %v2082_v25 = vmul.f32 %v4869_v4, %v6112_v37  ;;  %v2066_v26 = vmul.f32 %v4869_v4, %v6095_v53  ;;  %v2746_v39 = vld [vmem:[%s5995_s4 + $0xb0] sm:$0xff]  ;;  %v2744_v34 = vld [vmem:[%s5995_s4 + $0xa0] sm:$0xff]  ;;  %v2739_v24 = vld [vmem:[%s5995_s4 + $0x78] sm:$0xff] }
 0xbe0   :  { %v2742_v62 = vld [vmem:[%s5995_s4 + $0x90] sm:$0xff]  ;;  %v2733_v37 = vld [vmem:[%s5995_s4 + $0x48] sm:$0xff]  ;;  %v2771_v45 = vld [vmem:[%s5995_s4 + $0x178] sm:$0xff] }
 0xbe1   :  { %2502 = vrot.lane.b32.xlu1 %v2325_v7, %s4004_s25  ;;  %2470 = vrot.lane.b32.xlu0 %v2309_v16, %s4004_s25  ;;  %v2320_v7 = vadd.f32 %v6111_v6, %v2064_v46  ;;  %v6113_v16 = vld [vmem:[#allocation32_spill] sm:$0xff]  ;;  %v2322_v32 = vadd.f32 %v6100_v5, %v2066_v26  ;;  %v2738_v63 = vld [vmem:[%s5995_s4 + $0x70] sm:$0xff] }
 0xbe2   :  { %v2337_v50 = vadd.f32 %v6113_v16, %v2081_v33  ;;  %v2741_v46 = vld [vmem:[%s5995_s4 + $0x88] sm:$0xff]  ;;  %v2732_v16 = vld [vmem:[%s5995_s4 + $0x40] sm:$0xff] }
 0xbe3   :  { %v2729_v26 = vld [vmem:[%s5995_s4 + $0x28] sm:$0xff] }
 0xbe5   :  { %2504 = vrot.lane.b32.xlu1 %v2326_v51, %s4004_s25  ;;  %2472 = vrot.lane.b32.xlu0 %v2310_v54, %s4004_s25  ;;  %v2321_v54 = vadd.f32 %v6096_v15, %v2065_v49  ;;  %v2735_v49 = vld [vmem:[%s5995_s4 + $0x58] sm:$0xff] }
 0xbe9   :  { %2506 = vrot.lane.b32.xlu1 %v2327_v55, %s4004_s25  ;;  %2474 = vrot.lane.b32.xlu0 %v2311_v56, %s4004_s25  ;;  %v6114_v55 = vld [vmem:[#allocation34_spill] sm:$0xff]  ;;  %v2338_v56 = vadd.f32 %v6098_v8, %v2082_v25 }
 0xbea   :  { %v2083_v30 = vmul.f32 %v4869_v4, %v6114_v55  ;;  %v2727_v55 = vld [vmem:[%s5995_s4 + $0x18] sm:$0xff] }
 0xbec   :  { %v2339_v53 = vadd.f32 %v6101_v20, %v2083_v30 }
 0xbed   :  { %2508 = vrot.lane.b32.xlu1 %v2328_v22, %s4004_s25  ;;  %2476 = vrot.lane.b32.xlu0 %v2312_v59, %s4004_s25  ;;  %v2067_v22 = vmul.f32 %v4869_v4, %v6099_v1 }
 0xbef   :  { %v2323_v58 = vadd.f32 %v6102_v13, %v2067_v22  ;;  %v2724_v22 = vld [vmem:[%s5995_s4] sm:$0xff] }
 0xbf1   :  { %2510 = vrot.lane.b32.xlu1 %v2329_v60, %s4004_s25  ;;  %2478 = vrot.lane.b32.xlu0 %v2313_v61, %s4004_s25 }
 0xbf5   :  { %2512 = vrot.lane.b32.xlu1 %v2330_v36, %s4004_s25  ;;  %2480 = vrot.lane.b32.xlu0 %v2314_v19, %s4004_s25 }
 0xbf9   :  { %2514 = vrot.lane.b32.xlu1 %v2331_v29, %s4004_s25  ;;  %2482 = vrot.lane.b32.xlu0 %v2315_v40, %s4004_s25 }
 0xbfd   :  { %2516 = vrot.lane.b32.xlu1 %v2332_v47, %s4004_s25  ;;  %2484 = vrot.lane.b32.xlu0 %v2316_v21, %s4004_s25  ;;  %v2754_v47 = vld [vmem:[%s5995_s4 + $0xf0] sm:$0xff] }
 0xbfe   :  { %2832 = vmatpush1.msra.mxu0 %v2754_v47  ;;  %v2770_v47 = vld [vmem:[%s5995_s4 + $0x170] sm:$0xff] }
 0xbff   :  { %2833 = vmatprep.subr.mxu0 %v2753_v41  ;;  %v2769_v41 = vld [vmem:[%s5995_s4 + $0x168] sm:$0xff] }
 0xc00   :  { %2834 = vmatpush1.msra.mxu0 %v2752_v9  ;;  %v2768_v9 = vld [vmem:[%s5995_s4 + $0x160] sm:$0xff] }
 0xc01   :  { %2518 = vrot.lane.b32.xlu1 %v2333_v23, %s4004_s25  ;;  %2486 = vrot.lane.b32.xlu0 %v2317_v18, %s4004_s25  ;;  %v2751_v23 = vld [vmem:[%s5995_s4 + $0xd8] sm:$0xff]  ;;  %v2750_v18 = vld [vmem:[%s5995_s4 + $0xd0] sm:$0xff] }
 0xc02   :  { %2835 = vmatprep.subr.mxu0 %v2751_v23  ;;  %v2767_v23 = vld [vmem:[%s5995_s4 + $0x158] sm:$0xff] }
 0xc03   :  { %2836 = vmatpush1.msra.mxu0 %v2750_v18 }
 0xc04   :  { %2837 = vmatprep.subr.mxu0 %v2749_v43 }
 0xc05   :  { %2520 = vrot.lane.b32.xlu1 %v2334_v28, %s4004_s25  ;;  %2488 = vrot.lane.b32.xlu0 %v2318_v42, %s4004_s25  ;;  %v2748_v28 = vld [vmem:[%s5995_s4 + $0xc0] sm:$0xff]  ;;  %v2745_v42 = vld [vmem:[%s5995_s4 + $0xa8] sm:$0xff] }
 0xc06   :  { %2838 = vmatpush1.msra.mxu0 %v2748_v28 }
 0xc07   :  { %2839 = vmatprep.subr.mxu0 %v2747_v48 }
 0xc08   :  { %2840 = vmatpush1.msra.mxu0 %v2746_v39 }
 0xc09   :  { %2522 = vrot.lane.b32.xlu1 %v2335_v31, %s4004_s25  ;;  %2490 = vrot.lane.b32.xlu0 %v2319_v14, %s4004_s25  ;;  %v2743_v31 = vld [vmem:[%s5995_s4 + $0x98] sm:$0xff]  ;;  %v2740_v14 = vld [vmem:[%s5995_s4 + $0x80] sm:$0xff] }
 0xc0a   :  { %2841 = vmatprep.subr.mxu0 %v2745_v42  ;;  %v2766_v42 = vld [vmem:[%s5995_s4 + $0x150] sm:$0xff] }
 0xc0b   :  { %2842 = vmatpush1.msra.mxu0 %v2744_v34  ;;  %v2764_v34 = vld [vmem:[%s5995_s4 + $0x140] sm:$0xff] }
 0xc0c   :  { %2843 = vmatprep.subr.mxu0 %v2743_v31  ;;  %v2763_v31 = vld [vmem:[%s5995_s4 + $0x138] sm:$0xff] }
 0xc0d   :  { %2524 = vrot.lane.b32.xlu1 %v2336_v17, %s4004_s25  ;;  %2492 = vrot.lane.b32.xlu0 %v2320_v7, %s4004_s25  ;;  %v2737_v17 = vld [vmem:[%s5995_s4 + $0x68] sm:$0xff]  ;;  %v2734_v7 = vld [vmem:[%s5995_s4 + $0x50] sm:$0xff] }
 0xc0e   :  { %2844 = vmatpush1.msra.mxu0 %v2742_v62  ;;  %v2762_v62 = vld [vmem:[%s5995_s4 + $0x130] sm:$0xff] }
 0xc0f   :  { %v2437_v51 = vpop.permute.xlu1 %2436  ;;  %v2405_v52 = vpop.permute.xlu0 %2404  ;;  %2845 = vmatprep.subr.mxu0 %v2741_v46  ;;  %v2761_v46 = vld [vmem:[%s5995_s4 + $0x128] sm:$0xff] }
 0xc10   :  { %2846 = vmatpush1.msra.mxu0 %v2740_v14  ;;  %v2760_v14 = vld [vmem:[%s5995_s4 + $0x120] sm:$0xff] }
 0xc11   :  { %2526 = vrot.lane.b32.xlu1 %v2337_v50, %s4004_s25  ;;  %2494 = vrot.lane.b32.xlu0 %v2321_v54, %s4004_s25  ;;  %v2731_v50 = vld [vmem:[%s5995_s4 + $0x38] sm:$0xff] }
 0xc12   :  { %2847 = vmatprep.subr.mxu0 %v2739_v24  ;;  %v2759_v24 = vld [vmem:[%s5995_s4 + $0x118] sm:$0xff] }
 0xc13   :  { %v2439_v57 = vpop.permute.xlu1 %2438  ;;  %v2407_v59 = vpop.permute.xlu0 %2406  ;;  %2848 = vmatpush1.msra.mxu0 %v2738_v63  ;;  %v2758_v63 = vld [vmem:[%s5995_s4 + $0x110] sm:$0xff] }
 0xc14   :  { %2849 = vmatprep.subr.mxu0 %v2737_v17  ;;  %v2757_v17 = vld [vmem:[%s5995_s4 + $0x108] sm:$0xff] }
 0xc15   :  { %2528 = vrot.lane.b32.xlu1 %v2338_v56, %s4004_s25  ;;  %2496 = vrot.lane.b32.xlu0 %v2322_v32, %s4004_s25  ;;  %v2726_v56 = vld [vmem:[%s5995_s4 + $0x10] sm:$0xff]  ;;  %v2787_v32 = vld [vmem:[%s5995_s4 + $0x1f8] sm:$0xff] }
 0xc16   :  { %2850 = vmatpush1.msra.mxu0 %v2736_v44  ;;  %v2956_v44 = vld [vmem:[%s5995_s4 + $0x2f8] sm:$0xff] }
 0xc17   :  { %v2441_v15 = vpop.permute.xlu1 %2440  ;;  %v2409_v60 = vpop.permute.xlu0 %2408  ;;  %2851 = vmatprep.subr.mxu0 %v2735_v49  ;;  %v2955_v49 = vld [vmem:[%s5995_s4 + $0x2f0] sm:$0xff]  ;;  %3013 = vmatprep.subr.mxu1 %v2956_v44  ;;  %v2981_v44 = vld [vmem:[%s5995_s4 + $0x3c0] sm:$0xff] }
 0xc18   :  { %2852 = vmatpush1.msra.mxu0 %v2734_v7  ;;  %v2954_v7 = vld [vmem:[%s5995_s4 + $0x2e8] sm:$0xff]  ;;  %3014 = vmatpush1.msra.mxu1 %v2955_v49  ;;  %v2980_v49 = vld [vmem:[%s5995_s4 + $0x3b8] sm:$0xff] }
 0xc19   :  { %2530 = vrot.lane.b32.xlu1 %v2339_v53, %s4004_s25  ;;  %2498 = vrot.lane.b32.xlu0 %v2323_v58, %s4004_s25  ;;  %v2786_v53 = vld [vmem:[%s5995_s4 + $0x1f0] sm:$0xff] }
 0xc1a   :  { %2853 = vmatprep.subr.mxu0 %v2733_v37  ;;  %3015 = vmatprep.subr.mxu1 %v2954_v7  ;;  %v2978_v7 = vld [vmem:[%s5995_s4 + $0x3a8] sm:$0xff] }
 0xc1b   :  { %v5011_v8 = vpop.permute.xlu1 %2442  ;;  %v2411_v1 = vpop.permute.xlu0 %2410  ;;  %2854 = vmatpush1.msra.mxu0 %v2732_v16  ;;  %v2952_v16 = vld [vmem:[%s5995_s4 + $0x2d8] sm:$0xff] }
 0xc1c   :  { %2855 = vmatprep.subr.mxu0 %v2731_v50 }
 0xc1f   :  { %v5013_v4 = vpop.permute.xlu1 %2444  ;;  %v2413_v5 = vpop.permute.xlu0 %2412 }
 0xc23   :  { %v5015_v35 = vpop.permute.xlu1 %2446  ;;  %v2415_v61 = vpop.permute.xlu0 %2414 }
 0xc27   :  { %v5017_v2 = vpop.permute.xlu1 %2448  ;;  %v2417_v20 = vpop.permute.xlu0 %2416 }
 0xc2b   :  { %v5019_v36 = vpop.permute.xlu0 %2418  ;;  %v5021_v13 = vpop.permute.xlu1 %2450 }
 0xc2f   :  { %v5023_v38 = vpop.permute.xlu0 %2420  ;;  %v5025_v19 = vpop.permute.xlu1 %2452 }
 0xc33   :  { %v5027_v11 = vpop.permute.xlu0 %2422  ;;  %v5031_v27 = vpop.permute.xlu1 %2454 }
 0xc37   :  { %v5029_v29 = vpop.permute.xlu0 %2424  ;;  %2596 = vxpose.xlu0.b32.start [1/16] (narrow) %v2405_v52, 8  ;;  %v5044_v21 = vpop.permute.xlu1 %2456  ;;  %v2728_v52 = vld [vmem:[%s5995_s4 + $0x20] sm:$0xff] }
 0xc3b   :  { %v5033_v40 = vpop.permute.xlu0 %2426  ;;  %2597 = vxpose.xlu0.b32.cont [2/16] (narrow) %v2407_v59, 8  ;;  %v5066_v10 = vpop.permute.xlu1 %2458 }
 0xc3f   :  { %2598 = vxpose.xlu0.b32.cont [3/16] (narrow) %v2409_v60, 8  ;;  %v5052_v3 = vpop.permute.xlu0 %2428  ;;  %v5088_v12 = vpop.permute.xlu1 %2460  ;;  %v2784_v60 = vld [vmem:[%s5995_s4 + $0x1e0] sm:$0xff] }
 0xc42   :  { %2628 = vxpose.xlu1.b32.start [1/16] (narrow) %v2437_v51, 8  ;;  %v2730_v51 = vld [vmem:[%s5995_s4 + $0x30] sm:$0xff] }
 0xc43   :  { %2599 = vxpose.xlu0.b32.cont [4/16] (narrow) %v2411_v1, 8  ;;  %v5074_v0 = vpop.permute.xlu0 %2430  ;;  %v5111_v6 = vpop.permute.xlu1 %2462  ;;  %2856 = vmatpush1.msra.mxu0 %v2730_v51  ;;  %v2782_v1 = vld [vmem:[%s5995_s4 + $0x1d0] sm:$0xff] }
 0xc44   :  { %2857 = vmatprep.subr.mxu0 %v2729_v26  ;;  %v2951_v51 = vld [vmem:[%s5995_s4 + $0x2d0] sm:$0xff]  ;;  %v2950_v26 = vld [vmem:[%s5995_s4 + $0x2c8] sm:$0xff] }
 0xc45   :  { %2858 = vmatpush1.msra.mxu0 %v2728_v52  ;;  %v2948_v52 = vld [vmem:[%s5995_s4 + $0x2b8] sm:$0xff] }
 0xc46   :  { %2629 = vxpose.xlu1.b32.cont [2/16] (narrow) %v2439_v57, 8  ;;  %v2725_v57 = vld [vmem:[%s5995_s4 + $0x8] sm:$0xff]  ;;  %2859 = vmatprep.subr.mxu0 %v2727_v55 }
 0xc47   :  { %2600 = vxpose.xlu0.b32.cont [5/16] (narrow) %v2413_v5, 8  ;;  %v5096_v33 = vpop.permute.xlu0 %2432  ;;  %v5136_v54 = vpop.permute.xlu1 %2464  ;;  %2860 = vmatpush1.msra.mxu0 %v2726_v56  ;;  %v2946_v56 = vld [vmem:[%s5995_s4 + $0x2a8] sm:$0xff] }
 0xc48   :  { %2861 = vmatprep.subr.mxu0 %v2725_v57 }
 0xc49   :  { %2862 = vmatpush1.msra.mxu0 %v2724_v22  ;;  %v2945_v22 = vld [vmem:[%s5995_s4 + $0x2a0] sm:$0xff] }
 0xc4a   :  { %2630 = vxpose.xlu1.b32.cont [3/16] (narrow) %v2441_v15, 8  ;;  %v2785_v15 = vld [vmem:[%s5995_s4 + $0x1e8] sm:$0xff]  ;;  %2863 = vmatprep.subr.mxu0 %v2787_v32  ;;  %v2944_v32 = vld [vmem:[%s5995_s4 + $0x298] sm:$0xff] }
 0xc4b   :  { %2601 = vxpose.xlu0.b32.cont [6/16] (narrow) %v2415_v61, 8  ;;  %v5120_v25 = vpop.permute.xlu0 %2434  ;;  %v5161_v59 = vpop.permute.xlu1 %2466  ;;  %2864 = vmatpush2.msra.mxu0 %v2786_v53  ;;  %v2779_v61 = vld [vmem:[%s5995_s4 + $0x1b8] sm:$0xff]  ;;  %v2942_v53 = vld [vmem:[%s5995_s4 + $0x288] sm:$0xff] }
 0xc4c   :  { %2865 = vmatprep.subr.mxu0 %v2785_v15 }
 0xc4d   :  { %2866 = vmatpush2.msra.mxu0 %v2784_v60  ;;  %v2940_v60 = vld [vmem:[%s5995_s4 + $0x278] sm:$0xff] }
 0xc4e   :  { %2631 = vxpose.xlu1.b32.cont [4/16] (narrow) %v5011_v8, 8  ;;  %v2783_v8 = vld [vmem:[%s5995_s4 + $0x1d8] sm:$0xff] }
 0xc4f   :  { %2602 = vxpose.xlu0.b32.cont [7/16] (narrow) %v2417_v20, 8  ;;  %v5145_v30 = vpop.permute.xlu0 %2468  ;;  %v2501_v5 = vpop.permute.xlu1 %2500  ;;  %2867 = vmatprep.subr.mxu0 %v2783_v8  ;;  %v2778_v20 = vld [vmem:[%s5995_s4 + $0x1b0] sm:$0xff] }
 0xc50   :  { %2868 = vmatpush2.msra.mxu0 %v2782_v1  ;;  %v2939_v1 = vld [vmem:[%s5995_s4 + $0x270] sm:$0xff] }
 0xc52   :  { %2632 = vxpose.xlu1.b32.cont [5/16] (narrow) %v5013_v4, 8  ;;  %v2781_v4 = vld [vmem:[%s5995_s4 + $0x1c8] sm:$0xff] }
 0xc53   :  { %2603 = vxpose.xlu0.b32.cont [8/16] (narrow) %v5019_v36, 8  ;;  %v2471_v58 = vpop.permute.xlu0 %2470  ;;  %2869 = vmatprep.subr.mxu0 %v2781_v4  ;;  %v2777_v36 = vld [vmem:[%s5995_s4 + $0x1a8] sm:$0xff] }
 0xc54   :  { %v2938_v4 = vld [vmem:[%s5995_s4 + $0x268] sm:$0xff] }
 0xc56   :  { %2633 = vxpose.xlu1.b32.cont [6/16] (narrow) %v5015_v35, 8  ;;  %v2780_v35 = vld [vmem:[%s5995_s4 + $0x1c0] sm:$0xff] }
 0xc57   :  { %2604 = vxpose.xlu0.b32.cont [9/16] (narrow) %v5023_v38, 8  ;;  %2870 = vmatpush2.msra.mxu0 %v2780_v35  ;;  %v2775_v38 = vld [vmem:[%s5995_s4 + $0x198] sm:$0xff] }
 0xc58   :  { %2871 = vmatprep.subr.mxu0 %v2779_v61  ;;  %v2936_v35 = vld [vmem:[%s5995_s4 + $0x258] sm:$0xff] }
 0xc59   :  { %2872 = vmatpush2.msra.mxu0 %v2778_v20 }
 0xc5a   :  { %2634 = vxpose.xlu1.b32.cont [7/16] (narrow) %v5017_v2, 8  ;;  %v2473_v2 = vpop.permute.xlu0 %2472  ;;  %2873 = vmatprep.subr.mxu0 %v2777_v36 }
 0xc5b   :  { %2605 = vxpose.xlu0.b32.cont [10/16] (narrow) %v5027_v11, 8  ;;  %v2774_v11 = vld [vmem:[%s5995_s4 + $0x190] sm:$0xff] }
 0xc5e   :  { %2635 = vxpose.xlu1.b32.cont [8/16] (narrow) %v5021_v13, 8  ;;  %v2776_v13 = vld [vmem:[%s5995_s4 + $0x1a0] sm:$0xff] }
 0xc5f   :  { %2606 = vxpose.xlu0.b32.cont [11/16] (narrow) %v5029_v29, 8  ;;  %2874 = vmatpush2.msra.mxu0 %v2776_v13  ;;  %v2773_v29 = vld [vmem:[%s5995_s4 + $0x188] sm:$0xff] }
 0xc60   :  { %2875 = vmatprep.subr.mxu0 %v2775_v38 }
 0xc61   :  { %2876 = vmatpush2.msra.mxu0 %v2774_v11 }
 0xc62   :  { %2636 = vxpose.xlu1.b32.cont [9/16] (narrow) %v5025_v19, 8  ;;  %v2503_v19 = vpop.permute.xlu1 %2502  ;;  %2877 = vmatprep.subr.mxu0 %v2773_v29 }
 0xc63   :  { %2607 = vxpose.xlu0.b32.cont [12/16] (narrow) %v5033_v40, 8  ;;  %v2772_v40 = vld [vmem:[%s5995_s4 + $0x180] sm:$0xff] }
 0xc64   :  { %2878 = vmatpush2.msra.mxu0 %v2772_v40 }
 0xc65   :  { %2879 = vmatprep.subr.mxu0 %v2771_v45 }
 0xc66   :  { %2637 = vxpose.xlu1.b32.cont [10/16] (narrow) %v5031_v27, 8  ;;  %v2475_v27 = vpop.permute.xlu0 %2474  ;;  %2880 = vmatpush2.msra.mxu0 %v2770_v47 }
 0xc67   :  { %2608 = vxpose.xlu0.b32.cont [13/16] (narrow) %v5052_v3, 8  ;;  %2881 = vmatprep.subr.mxu0 %v2769_v41 }
 0xc68   :  { %2882 = vmatpush2.msra.mxu0 %v2768_v9 }
 0xc69   :  { %2883 = vmatprep.subr.mxu0 %v2767_v23 }
 0xc6a   :  { %2638 = vxpose.xlu1.b32.cont [11/16] (narrow) %v5044_v21, 8  ;;  %v2505_v21 = vpop.permute.xlu1 %2504  ;;  %v2477_v3 = vpop.permute.xlu0 %2476  ;;  %2884 = vmatpush2.msra.mxu0 %v2766_v42  ;;  %v2933_v42 = vld [vmem:[%s5995_s4 + $0x240] sm:$0xff] }
 0xc6b   :  { %2609 = vxpose.xlu0.b32.cont [14/16] (narrow) %v5074_v0, 8  ;;  %v2765_v0 = vld [vmem:[%s5995_s4 + $0x148] sm:$0xff] }
 0xc6c   :  { %2885 = vmatprep.subr.mxu0 %v2765_v0  ;;  %v2932_v0 = vld [vmem:[%s5995_s4 + $0x238] sm:$0xff] }
 0xc6d   :  { %2886 = vmatpush2.msra.mxu0 %v2764_v34  ;;  %v2931_v34 = vld [vmem:[%s5995_s4 + $0x230] sm:$0xff] }
 0xc6e   :  { %2639 = vxpose.xlu1.b32.cont [12/16] (narrow) %v5066_v10, 8  ;;  %v2507_v18 = vpop.permute.xlu1 %2506  ;;  %v2479_v43 = vpop.permute.xlu0 %2478  ;;  %2887 = vmatprep.subr.mxu0 %v2763_v31  ;;  %v2930_v31 = vld [vmem:[%s5995_s4 + $0x228] sm:$0xff] }
 0xc6f   :  { %2610 = vxpose.xlu0.b32.cont [15/16] (narrow) %v5096_v33, 8  ;;  %2888 = vmatpush2.msra.mxu0 %v2762_v62  ;;  %v2929_v62 = vld [vmem:[%s5995_s4 + $0x220] sm:$0xff] }
 0xc70   :  { %2889 = vmatprep.subr.mxu0 %v2761_v46  ;;  %v2928_v46 = vld [vmem:[%s5995_s4 + $0x218] sm:$0xff] }
 0xc71   :  { %2890 = vmatpush2.msra.mxu0 %v2760_v14  ;;  %v2926_v14 = vld [vmem:[%s5995_s4 + $0x208] sm:$0xff] }
 0xc72   :  { %2640 = vxpose.xlu1.b32.cont [13/16] (narrow) %v5088_v12, 8  ;;  %v2509_v28 = vpop.permute.xlu1 %2508  ;;  %v2481_v48 = vpop.permute.xlu0 %2480  ;;  %2891 = vmatprep.subr.mxu0 %v2759_v24  ;;  %v2925_v24 = vld [vmem:[%s5995_s4 + $0x200] sm:$0xff] }
 0xc73   :  { %2611 = vxpose.xlu0.b32.end [16/16] (narrow) %v5120_v25, 8  ;;  %2892 = vmatpush2.msra.mxu0 %v2758_v63  ;;  %v2953_v25 = vld [vmem:[%s5995_s4 + $0x2e0] sm:$0xff]  ;;  %v2983_v63 = vld [vmem:[%s5995_s4 + $0x3d0] sm:$0xff] }
 0xc74   :  { %2893 = vmatprep.subr.mxu0 %v2757_v17  ;;  %3016 = vmatpush1.msra.mxu1 %v2953_v25  ;;  %v2982_v17 = vld [vmem:[%s5995_s4 + $0x3c8] sm:$0xff]  ;;  %v2976_v25 = vld [vmem:[%s5995_s4 + $0x398] sm:$0xff] }
 0xc75   :  { %3017 = vmatprep.subr.mxu1 %v2952_v16  ;;  %v2975_v16 = vld [vmem:[%s5995_s4 + $0x390] sm:$0xff] }
 0xc76   :  { %2641 = vxpose.xlu1.b32.cont [14/16] (narrow) %v5111_v6, 8  ;;  %v2511_v10 = vpop.permute.xlu1 %2510  ;;  %v2483_v39 = vpop.permute.xlu0 %2482  ;;  %v2756_v6 = vld [vmem:[%s5995_s4 + $0x100] sm:$0xff]  ;;  %3018 = vmatpush1.msra.mxu1 %v2951_v51 }
 0xc77   :  { %2660 = vxpose.xlu0.b32.start [1/16] (narrow) %v5145_v30, 8  ;;  %2894 = vmatpush2.msra.mxu0 %v2756_v6  ;;  %v2947_v30 = vld [vmem:[%s5995_s4 + $0x2b0] sm:$0xff]  ;;  %v2973_v51 = vld [vmem:[%s5995_s4 + $0x380] sm:$0xff] }
 0xc78   :  { %3019 = vmatprep.subr.mxu1 %v2950_v26  ;;  %v2979_v6 = vld [vmem:[%s5995_s4 + $0x3b0] sm:$0xff]  ;;  %v2972_v26 = vld [vmem:[%s5995_s4 + $0x378] sm:$0xff] }
 0xc7a   :  { %2642 = vxpose.xlu1.b32.cont [15/16] (narrow) %v5136_v54, 8  ;;  %v2513_v12 = vpop.permute.xlu1 %2512  ;;  %v2485_v33 = vpop.permute.xlu0 %2484  ;;  %v2949_v54 = vld [vmem:[%s5995_s4 + $0x2c0] sm:$0xff] }
 0xc7b   :  { %2661 = vxpose.xlu0.b32.cont [2/16] (narrow) %v2471_v58, 8  ;;  %3020 = vmatpush1.msra.mxu1 %v2949_v54  ;;  %v2941_v58 = vld [vmem:[%s5995_s4 + $0x280] sm:$0xff]  ;;  %v2971_v54 = vld [vmem:[%s5995_s4 + $0x370] sm:$0xff] }
 0xc7c   :  { %3021 = vmatprep.subr.mxu1 %v2948_v52  ;;  %v2970_v52 = vld [vmem:[%s5995_s4 + $0x368] sm:$0xff] }
 0xc7d   :  { %3022 = vmatpush1.msra.mxu1 %v2947_v30  ;;  %v2968_v30 = vld [vmem:[%s5995_s4 + $0x358] sm:$0xff] }
 0xc7e   :  { %2643 = vxpose.xlu1.b32.end [16/16] (narrow) %v5161_v59, 8  ;;  %v2515_v37 = vpop.permute.xlu1 %2514  ;;  %v2487_v50 = vpop.permute.xlu0 %2486  ;;  %3023 = vmatprep.subr.mxu1 %v2946_v56  ;;  %v2943_v59 = vld [vmem:[%s5995_s4 + $0x290] sm:$0xff] }
 0xc7f   :  { %2662 = vxpose.xlu0.b32.cont [3/16] (narrow) %v2473_v2, 8  ;;  %3024 = vmatpush1.msra.mxu1 %v2945_v22  ;;  %v2935_v2 = vld [vmem:[%s5995_s4 + $0x250] sm:$0xff]  ;;  %v2965_v22 = vld [vmem:[%s5995_s4 + $0x340] sm:$0xff] }
 0xc80   :  { %3025 = vmatprep.subr.mxu1 %v2944_v32  ;;  %v2967_v56 = vld [vmem:[%s5995_s4 + $0x350] sm:$0xff]  ;;  %v2964_v32 = vld [vmem:[%s5995_s4 + $0x338] sm:$0xff] }
 0xc81   :  { %3026 = vmatpush1.msra.mxu1 %v2943_v59  ;;  %v2963_v59 = vld [vmem:[%s5995_s4 + $0x330] sm:$0xff] }
 0xc82   :  { %2692 = vxpose.xlu1.b32.start [1/16] (narrow) %v2501_v5, 8  ;;  %v2517_v55 = vpop.permute.xlu1 %2516  ;;  %v2489_v57 = vpop.permute.xlu0 %2488  ;;  %3027 = vmatprep.subr.mxu1 %v2942_v53  ;;  %v2937_v5 = vld [vmem:[%s5995_s4 + $0x260] sm:$0xff]  ;;  %v2962_v53 = vld [vmem:[%s5995_s4 + $0x328] sm:$0xff] }
 0xc83   :  { %2663 = vxpose.xlu0.b32.cont [4/16] (narrow) %v2475_v27, 8  ;;  %3028 = vmatpush1.msra.mxu1 %v2941_v58  ;;  %v2960_v58 = vld [vmem:[%s5995_s4 + $0x318] sm:$0xff] }
 0xc84   :  { %3029 = vmatprep.subr.mxu1 %v2940_v60  ;;  %v2959_v60 = vld [vmem:[%s5995_s4 + $0x310] sm:$0xff] }
 0xc85   :  { %3030 = vmatpush1.msra.mxu1 %v2939_v1  ;;  %v2957_v1 = vld [vmem:[%s5995_s4 + $0x300] sm:$0xff] }
 0xc86   :  { %2693 = vxpose.xlu1.b32.cont [2/16] (narrow) %v2503_v19, 8  ;;  %v2519_v15 = vpop.permute.xlu1 %2518  ;;  %v2491_v8 = vpop.permute.xlu0 %2490  ;;  %3031 = vmatprep.subr.mxu1 %v2938_v4  ;;  %v3138_v4 = vld [vmem:[%s5995_s4 + $0x4d8] sm:$0xff] }
 0xc87   :  { %2664 = vxpose.xlu0.b32.cont [5/16] (narrow) %v2477_v3, 8  ;;  %3032 = vmatpush1.msra.mxu1 %v2937_v5  ;;  %v6115_v3 = vld [vmem:[#allocation39_spill] sm:$0xff]  ;;  %v6116_v5 = vld [vmem:[#allocation6_spill] sm:$0xff] }
 0xc88   :  { %3033 = vmatprep.subr.mxu1 %v2936_v35  ;;  %v5459_v35 = vsub.s32 1, %v6116_v5  ;;  %v3160_v5 = vld [vmem:[%s5995_s4 + $0x588] sm:$0xff] }
 0xc89   :  { %3034 = vmatpush1.msra.mxu1 %v2935_v2  ;;  %v6117_v2 = vld [vmem:[#allocation7_spill] sm:$0xff] }
 0xc8a   :  { %2694 = vxpose.xlu1.b32.cont [3/16] (narrow) %v2505_v21, 8  ;;  %v2521_v61 = vpop.permute.xlu1 %2520  ;;  %v2493_v20 = vpop.permute.xlu0 %2492 }
 0xc8b   :  { %2665 = vxpose.xlu0.b32.cont [6/16] (narrow) %v2479_v43, 8 }
 0xc8e   :  { %2695 = vxpose.xlu1.b32.cont [4/16] (narrow) %v2507_v18, 8  ;;  %v2523_v36 = vpop.permute.xlu1 %2522  ;;  %v2495_v13 = vpop.permute.xlu0 %2494 }
 0xc8f   :  { %2666 = vxpose.xlu0.b32.cont [7/16] (narrow) %v2481_v48, 8 }
 0xc92   :  { %2696 = vxpose.xlu1.b32.cont [5/16] (narrow) %v2509_v28, 8  ;;  %v2525_v38 = vpop.permute.xlu1 %2524  ;;  %v2497_v19 = vpop.permute.xlu0 %2496 }
 0xc93   :  { %2667 = vxpose.xlu0.b32.cont [8/16] (narrow) %v2483_v39, 8  ;;  %v2934_v39 = vld [vmem:[%s5995_s4 + $0x248] sm:$0xff] }
 0xc94   :  { %3035 = vmatprep.subr.mxu1 %v2934_v39 }
 0xc95   :  { %3036 = vmatpush1.msra.mxu1 %v2933_v42 }
 0xc96   :  { %2697 = vxpose.xlu1.b32.cont [6/16] (narrow) %v2511_v10, 8  ;;  %v2527_v11 = vpop.permute.xlu1 %2526  ;;  %v2499_v29 = vpop.permute.xlu0 %2498  ;;  %3037 = vmatprep.subr.mxu1 %v2932_v0  ;;  %v3137_v0 = vld [vmem:[%s5995_s4 + $0x4d0] sm:$0xff] }
 0xc97   :  { %2668 = vxpose.xlu0.b32.cont [9/16] (narrow) %v2485_v33, 8  ;;  %3038 = vmatpush1.msra.mxu1 %v2931_v34  ;;  %v2984_v33 = vld [vmem:[%s5995_s4 + $0x3d8] sm:$0xff]  ;;  %v3136_v34 = vld [vmem:[%s5995_s4 + $0x4c8] sm:$0xff] }
 0xc98   :  { %3039 = vmatprep.subr.mxu1 %v2930_v31  ;;  %v3135_v31 = vld [vmem:[%s5995_s4 + $0x4c0] sm:$0xff] }
 0xc99   :  { %3040 = vmatpush1.msra.mxu1 %v2929_v62  ;;  %v3134_v62 = vld [vmem:[%s5995_s4 + $0x4b8] sm:$0xff] }
 0xc9a   :  { %2698 = vxpose.xlu1.b32.cont [7/16] (narrow) %v2513_v12, 8  ;;  %v2529_v27 = vpop.permute.xlu1 %2528  ;;  %v2927_v12 = vld [vmem:[%s5995_s4 + $0x210] sm:$0xff]  ;;  %3041 = vmatprep.subr.mxu1 %v2928_v46 }
 0xc9b   :  { %2669 = vxpose.xlu0.b32.cont [10/16] (narrow) %v2487_v50, 8  ;;  %3042 = vmatpush1.msra.mxu1 %v2927_v12  ;;  %v2974_v50 = vld [vmem:[%s5995_s4 + $0x388] sm:$0xff]  ;;  %v3133_v46 = vld [vmem:[%s5995_s4 + $0x4b0] sm:$0xff] }
 0xc9c   :  { %3043 = vmatprep.subr.mxu1 %v2926_v14  ;;  %v3132_v12 = vld [vmem:[%s5995_s4 + $0x4a8] sm:$0xff]  ;;  %v3131_v14 = vld [vmem:[%s5995_s4 + $0x4a0] sm:$0xff] }
 0xc9d   :  { %3044 = vmatpush1.msra.mxu1 %v2925_v24  ;;  %v3130_v24 = vld [vmem:[%s5995_s4 + $0x498] sm:$0xff] }
 0xc9e   :  { %2699 = vxpose.xlu1.b32.cont [8/16] (narrow) %v2515_v37, 8  ;;  %v2531_v40 = vpop.permute.xlu1 %2530  ;;  %3049 = vmatprep.subr.mxu1 %v2984_v33  ;;  %v2977_v37 = vld [vmem:[%s5995_s4 + $0x3a0] sm:$0xff]  ;;  %v3129_v33 = vld [vmem:[%s5995_s4 + $0x490] sm:$0xff] }
 0xc9f   :  { %2670 = vxpose.xlu0.b32.cont [11/16] (narrow) %v2489_v57, 8  ;;  %3050 = vmatpush2.msra.mxu1 %v2983_v63  ;;  %v2966_v57 = vld [vmem:[%s5995_s4 + $0x348] sm:$0xff] }
 0xca0   :  { %3051 = vmatprep.subr.mxu1 %v2982_v17  ;;  %v3128_v63 = vld [vmem:[%s5995_s4 + $0x488] sm:$0xff]  ;;  %v3127_v17 = vld [vmem:[%s5995_s4 + $0x480] sm:$0xff] }
 0xca1   :  { %3052 = vmatpush2.msra.mxu1 %v2981_v44  ;;  %v3126_v44 = vld [vmem:[%s5995_s4 + $0x478] sm:$0xff] }
 0xca2   :  { %2700 = vxpose.xlu1.b32.cont [9/16] (narrow) %v2517_v55, 8  ;;  %3053 = vmatprep.subr.mxu1 %v2980_v49  ;;  %v2969_v55 = vld [vmem:[%s5995_s4 + $0x360] sm:$0xff]  ;;  %v3125_v49 = vld [vmem:[%s5995_s4 + $0x470] sm:$0xff] }
 0xca3   :  { %2671 = vxpose.xlu0.b32.cont [12/16] (narrow) %v2491_v8, 8  ;;  %3054 = vmatpush2.msra.mxu1 %v2979_v6  ;;  %v2958_v8 = vld [vmem:[%s5995_s4 + $0x308] sm:$0xff] }
 0xca4   :  { %3055 = vmatprep.subr.mxu1 %v2978_v7  ;;  %v3124_v6 = vld [vmem:[%s5995_s4 + $0x468] sm:$0xff]  ;;  %v3123_v7 = vld [vmem:[%s5995_s4 + $0x460] sm:$0xff] }
 0xca5   :  { %3056 = vmatpush2.msra.mxu1 %v2977_v37  ;;  %v3122_v37 = vld [vmem:[%s5995_s4 + $0x458] sm:$0xff] }
 0xca6   :  { %2701 = vxpose.xlu1.b32.cont [10/16] (narrow) %v2519_v15, 8  ;;  %3057 = vmatprep.subr.mxu1 %v2976_v25  ;;  %v2961_v15 = vld [vmem:[%s5995_s4 + $0x320] sm:$0xff]  ;;  %v3121_v25 = vld [vmem:[%s5995_s4 + $0x450] sm:$0xff] }
 0xca7   :  { %2672 = vxpose.xlu0.b32.cont [13/16] (narrow) %v2493_v20, 8  ;;  %3058 = vmatpush2.msra.mxu1 %v2975_v16  ;;  %v3120_v16 = vld [vmem:[%s5995_s4 + $0x448] sm:$0xff] }
 0xca8   :  { %3059 = vmatprep.subr.mxu1 %v2974_v50  ;;  %v3119_v50 = vld [vmem:[%s5995_s4 + $0x440] sm:$0xff] }
 0xca9   :  { %3060 = vmatpush2.msra.mxu1 %v2973_v51  ;;  %v3118_v51 = vld [vmem:[%s5995_s4 + $0x438] sm:$0xff] }
 0xcaa   :  { %2702 = vxpose.xlu1.b32.cont [11/16] (narrow) %v2521_v61, 8  ;;  %3061 = vmatprep.subr.mxu1 %v2972_v26  ;;  %v2788_v61 = vld [vmem:[%s5994_s3] ss:$8 sm:$0x3]  ;;  %v3117_v26 = vld [vmem:[%s5995_s4 + $0x430] sm:$0xff] }
 0xcab   :  { %2673 = vxpose.xlu0.b32.cont [14/16] (narrow) %v2495_v13, 8  ;;  %3062 = vmatpush2.msra.mxu1 %v2971_v54  ;;  %v2813_v20 = vrot.slane %v2788_v61, %v6117_v2  ;;  %v3116_v54 = vld [vmem:[%s5995_s4 + $0x428] sm:$0xff] }
 0xcac   :  { %3063 = vmatprep.subr.mxu1 %v2970_v52  ;;  %v3115_v52 = vld [vmem:[%s5995_s4 + $0x420] sm:$0xff] }
 0xcad   :  { %3064 = vmatpush2.msra.mxu1 %v2969_v55  ;;  %v3114_v55 = vld [vmem:[%s5995_s4 + $0x418] sm:$0xff] }
 0xcae   :  { %2703 = vxpose.xlu1.b32.cont [12/16] (narrow) %v2523_v36, 8  ;;  %3065 = vmatprep.subr.mxu1 %v2968_v30  ;;  %v2817_v36 = vrot.slane %v2788_v61, %v5459_v35  ;;  %v3113_v30 = vld [vmem:[%s5995_s4 + $0x410] sm:$0xff]  ;;  %v3159_v61 = vld [vmem:[%s5995_s4 + $0x580] sm:$0xff] }
 0xcaf   :  { %2674 = vxpose.xlu0.b32.cont [15/16] (narrow) %v2497_v19, 8  ;;  %3066 = vmatpush2.msra.mxu1 %v2967_v56  ;;  %v3112_v56 = vld [vmem:[%s5995_s4 + $0x408] sm:$0xff] }
 0xcb0   :  { %3067 = vmatprep.subr.mxu1 %v2966_v57  ;;  %v3111_v57 = vld [vmem:[%s5995_s4 + $0x400] sm:$0xff] }
 0xcb1   :  { %3068 = vmatpush2.msra.mxu1 %v2965_v22  ;;  %v3110_v22 = vld [vmem:[%s5995_s4 + $0x3f8] sm:$0xff] }
 0xcb2   :  { %2704 = vxpose.xlu1.b32.cont [13/16] (narrow) %v2525_v38, 8  ;;  %3069 = vmatprep.subr.mxu1 %v2964_v32  ;;  %v3109_v32 = vld [vmem:[%s5995_s4 + $0x3f0] sm:$0xff] }
 0xcb3   :  { %2675 = vxpose.xlu0.b32.end [16/16] (narrow) %v2499_v29, 8  ;;  %v2612_v45 = vpop.trf.xlu0  ;;  %3070 = vmatpush2.msra.mxu1 %v2963_v59  ;;  %v3108_v59 = vld [vmem:[%s5995_s4 + $0x3e8] sm:$0xff] }
 0xcb4   :  { %3071 = vmatprep.subr.mxu1 %v2962_v53  ;;  %v3107_v53 = vld [vmem:[%s5995_s4 + $0x3e0] sm:$0xff] }
 0xcb5   :  { %3072 = vmatpush2.msra.mxu1 %v2961_v15  ;;  %v3166_v15 = vld [vmem:[%s5995_s4 + $0x5b8] sm:$0xff] }
 0xcb6   :  { %2705 = vxpose.xlu1.b32.cont [14/16] (narrow) %v2527_v11, 8  ;;  %3073 = vmatprep.subr.mxu1 %v2960_v58  ;;  %v3165_v58 = vld [vmem:[%s5995_s4 + $0x5b0] sm:$0xff] }
 0xcb7   :  { %3074 = vmatpush2.msra.mxu1 %v2959_v60  ;;  %v3164_v60 = vld [vmem:[%s5995_s4 + $0x5a8] sm:$0xff] }
 0xcb8   :  { %3075 = vmatprep.subr.mxu1 %v2958_v8  ;;  %v3163_v8 = vld [vmem:[%s5995_s4 + $0x5a0] sm:$0xff] }
 0xcb9   :  { %3076 = vmatpush2.msra.mxu1 %v2957_v1  ;;  %v3162_v1 = vld [vmem:[%s5995_s4 + $0x598] sm:$0xff] }
 0xcba   :  { %2706 = vxpose.xlu1.b32.cont [15/16] (narrow) %v2529_v27, 8  ;;  %3194 = vmatprep.subr.mxu1 %v3138_v4  ;;  %v3161_v4 = vld [vmem:[%s5995_s4 + $0x590] sm:$0xff] }
 0xcbe   :  { %2707 = vxpose.xlu1.b32.end [16/16] (narrow) %v2531_v40, 8  ;;  %v2644_v47 = vpop.trf.xlu1 }
 0xcbf   :  { %v2793_v21 = vcombine.low %v2612_v45, %v2644_v47 }
 0xcc1   :  { %v2800_v18 = vrot.slane %v2793_v21, %v6115_v3 }
 0xcf3   :  { %v2676_v41 = vpop.trf.xlu0 }
 0xcfe   :  { %v2708_v9 = vpop.trf.xlu1 }
 0xcff   :  { %v2801_v23 = vcombine.low %v2676_v41, %v2708_v9 }
 0xd01   :  { %v2808_v43 = vrot.slane %v2801_v23, %v6115_v3 }
 0xd03   :  { %v2820_v28 = vcombine.low %v2800_v18, %v2808_v43 }
 0xd05   :  { %v2827_v48 = vrot.slane %v2820_v28, %v6115_v3 }
 0xd07   :  { %v2828_v10 = vcombine.high %v2827_v48, %v2827_v48 }
 0xd09   :  { %2895 = vmatprep.mubr.f32.mxu0 %v2828_v10 }
 0xd0a   :  { %2896 = vmatmul.mubr.f32.vlgmr.msra.gmra.mxu0 %v2827_v48 }
 0xdca   :  { %v2897_v13 = vpop.f32.mrf.mxu0 }
 0xdcb   :  { %v2898_v19 = vadd.f32 %v2897_v13, %v2813_v20  ;;  %v3158_v20 = vld [vmem:[%s5995_s4 + $0x578] sm:$0xff]  ;;  %v3156_v13 = vld [vmem:[%s5995_s4 + $0x568] sm:$0xff] }
 0xdcc   :  { %v2899_v38 = vpop.f32.mrf.mxu0 }
 0xdcd   :  { %v2900_v11 = vadd.f32 %v2899_v38, %v2817_v36  ;;  %v3157_v36 = vld [vmem:[%s5995_s4 + $0x570] sm:$0xff]  ;;  %v3155_v38 = vld [vmem:[%s5995_s4 + $0x560] sm:$0xff] }
 0xdcf   :  { %v2904_v29 = vcombine.low %v2898_v19, %v2900_v11  ;;  %v3154_v19 = vld [vmem:[%s5995_s4 + $0x558] sm:$0xff]  ;;  %v3153_v11 = vld [vmem:[%s5995_s4 + $0x550] sm:$0xff] }
 0xdd1   :  { %v2911_v27 = vrot.slane %v2904_v29, %v6115_v3  ;;  %v3152_v29 = vld [vmem:[%s5995_s4 + $0x548] sm:$0xff] }
 0xdd3   :  { %v2912_v40 = vcombine.high %v2911_v27, %v2911_v27  ;;  %v2917_v45 = vmul.f32 0.70710677, %v2911_v27  ;;  %v2915_v23 = vmul.f32 0.5, %v2911_v27  ;;  %v3151_v27 = vld [vmem:[%s5995_s4 + $0x540] sm:$0xff] }
 0xdd5   :  { %v2918_v47 = vmul.f32 0.70710677, %v2912_v40  ;;  %3927 = verf.f32 %v2917_v45  ;;  %v2916_v18 = vmul.f32 0.5, %v2912_v40  ;;  %v3150_v40 = vld [vmem:[%s5995_s4 + $0x538] sm:$0xff]  ;;  %v3149_v45 = vld [vmem:[%s5995_s4 + $0x530] sm:$0xff] }
 0xdd7   :  { %3929 = verf.f32 %v2918_v47  ;;  %v3319_v47 = vld [vmem:[%s5995_s4 + $0x6b8] sm:$0xff] }
 0xdd8   :  { %3375 = vmatprep.subr.mxu0 %v3319_v47  ;;  %v3292_v47 = vld [vmem:[%s5995_s4 + $0x5e0] sm:$0xff] }
 0xde2   :  { %v3928_v41 = vpop.eup %3927 }
 0xde3   :  { %v2921_v21 = vadd.f32 1.0, %v3928_v41  ;;  %v3318_v41 = vld [vmem:[%s5995_s4 + $0x6b0] sm:$0xff] }
 0xde4   :  { %v3930_v9 = vpop.eup %3929  ;;  %3376 = vmatpush1.msra.mxu0 %v3318_v41  ;;  %v3291_v41 = vld [vmem:[%s5995_s4 + $0x5d8] sm:$0xff] }
 0xde5   :  { %v2922_v43 = vadd.f32 1.0, %v3930_v9  ;;  %v2923_v28 = vmul.f32 %v2921_v21, %v2915_v23  ;;  %v3317_v21 = vld [vmem:[%s5995_s4 + $0x6a8] sm:$0xff]  ;;  %v3316_v23 = vld [vmem:[%s5995_s4 + $0x6a0] sm:$0xff] }
 0xde6   :  { %v3148_v9 = vld [vmem:[%s5995_s4 + $0x528] sm:$0xff]  ;;  %3377 = vmatprep.subr.mxu0 %v3317_v21  ;;  %v3290_v21 = vld [vmem:[%s5995_s4 + $0x5d0] sm:$0xff] }
 0xde7   :  { %v2924_v48 = vmul.f32 %v2922_v43, %v2916_v18  ;;  %v3147_v18 = vld [vmem:[%s5995_s4 + $0x520] sm:$0xff]  ;;  %v3315_v43 = vld [vmem:[%s5995_s4 + $0x698] sm:$0xff]  ;;  %3378 = vmatpush1.msra.mxu0 %v3316_v23 }
 0xde8   :  { %3379 = vmatprep.subr.mxu0 %v3315_v43  ;;  %v3288_v23 = vld [vmem:[%s5995_s4 + $0x5c0] sm:$0xff]  ;;  %v3346_v43 = vld [vmem:[%s5995_s4 + $0x790] sm:$0xff] }
 0xde9   :  { %v3000_v10 = vcombine.low %v2923_v28, %v2924_v48  ;;  %v3146_v28 = vld [vmem:[%s5995_s4 + $0x518] sm:$0xff]  ;;  %v3314_v48 = vld [vmem:[%s5995_s4 + $0x690] sm:$0xff] }
 0xdea   :  { %3380 = vmatpush1.msra.mxu0 %v3314_v48  ;;  %v3344_v48 = vld [vmem:[%s5995_s4 + $0x780] sm:$0xff] }
 0xdeb   :  { %v3007_v39 = vrot.slane %v3000_v10, %v6115_v3  ;;  %v3145_v10 = vld [vmem:[%s5995_s4 + $0x510] sm:$0xff] }
 0xded   :  { %v3008_v42 = vcombine.high %v3007_v39, %v3007_v39 }
 0xdef   :  { %3654 = vmatprep.mubr.msk.f32.mxu1 %vm3010_vm1, %v3008_v42  ;;  %v3144_v42 = vld [vmem:[%s5995_s4 + $0x508] sm:$0xff] }
 0xdf0   :  { %3078 = vmatmul.mubr.f32.vlgmr.msra.gmra.mxu1 %v3007_v39  ;;  %v3313_v39 = vld [vmem:[%s5995_s4 + $0x688] sm:$0xff] }
 0xdf1   :  { %3195 = vmatpush1.msra.mxu1 %v3137_v0  ;;  %v3312_v0 = vld [vmem:[%s5995_s4 + $0x680] sm:$0xff]  ;;  %3381 = vmatprep.subr.mxu0 %v3313_v39  ;;  %v3342_v39 = vld [vmem:[%s5995_s4 + $0x770] sm:$0xff] }
 0xdf2   :  { %3196 = vmatprep.subr.mxu1 %v3136_v34  ;;  %v3143_v34 = vld [vmem:[%s5995_s4 + $0x500] sm:$0xff]  ;;  %3382 = vmatpush1.msra.mxu0 %v3312_v0 }
 0xdf3   :  { %3197 = vmatpush1.msra.mxu1 %v3135_v31  ;;  %v3311_v31 = vld [vmem:[%s5995_s4 + $0x678] sm:$0xff]  ;;  %v3340_v0 = vld [vmem:[%s5995_s4 + $0x760] sm:$0xff] }
 0xdf4   :  { %3198 = vmatprep.subr.mxu1 %v3134_v62  ;;  %v3142_v62 = vld [vmem:[%s5995_s4 + $0x4f8] sm:$0xff]  ;;  %3383 = vmatprep.subr.mxu0 %v3311_v31  ;;  %v3338_v31 = vld [vmem:[%s5995_s4 + $0x750] sm:$0xff] }
 0xdf5   :  { %3199 = vmatpush1.msra.mxu1 %v3133_v46  ;;  %v3310_v46 = vld [vmem:[%s5995_s4 + $0x670] sm:$0xff] }
 0xdf6   :  { %3200 = vmatprep.subr.mxu1 %v3132_v12  ;;  %v3141_v12 = vld [vmem:[%s5995_s4 + $0x4f0] sm:$0xff]  ;;  %3384 = vmatpush1.msra.mxu0 %v3310_v46  ;;  %v3336_v46 = vld [vmem:[%s5995_s4 + $0x740] sm:$0xff] }
 0xdf7   :  { %3201 = vmatpush1.msra.mxu1 %v3131_v14  ;;  %v3309_v14 = vld [vmem:[%s5995_s4 + $0x668] sm:$0xff] }
 0xdf8   :  { %3202 = vmatprep.subr.mxu1 %v3130_v24  ;;  %v3140_v24 = vld [vmem:[%s5995_s4 + $0x4e8] sm:$0xff]  ;;  %3385 = vmatprep.subr.mxu0 %v3309_v14  ;;  %v3334_v14 = vld [vmem:[%s5995_s4 + $0x730] sm:$0xff] }
 0xdf9   :  { %3203 = vmatpush1.msra.mxu1 %v3129_v33  ;;  %v3308_v33 = vld [vmem:[%s5995_s4 + $0x660] sm:$0xff] }
 0xdfa   :  { %3204 = vmatprep.subr.mxu1 %v3128_v63  ;;  %v3139_v63 = vld [vmem:[%s5995_s4 + $0x4e0] sm:$0xff]  ;;  %3386 = vmatpush1.msra.mxu0 %v3308_v33 }
 0xdfb   :  { %3205 = vmatpush1.msra.mxu1 %v3127_v17  ;;  %v3307_v17 = vld [vmem:[%s5995_s4 + $0x658] sm:$0xff]  ;;  %v3332_v33 = vld [vmem:[%s5995_s4 + $0x720] sm:$0xff] }
 0xdfc   :  { %3206 = vmatprep.subr.mxu1 %v3126_v44  ;;  %v3306_v44 = vld [vmem:[%s5995_s4 + $0x650] sm:$0xff]  ;;  %3387 = vmatprep.subr.mxu0 %v3307_v17 }
 0xdfd   :  { %3207 = vmatpush1.msra.mxu1 %v3125_v49  ;;  %v3305_v49 = vld [vmem:[%s5995_s4 + $0x648] sm:$0xff]  ;;  %3388 = vmatpush1.msra.mxu0 %v3306_v44  ;;  %v3330_v17 = vld [vmem:[%s5995_s4 + $0x710] sm:$0xff] }
 0xdfe   :  { %3208 = vmatprep.subr.mxu1 %v3124_v6  ;;  %v3304_v6 = vld [vmem:[%s5995_s4 + $0x640] sm:$0xff]  ;;  %3389 = vmatprep.subr.mxu0 %v3305_v49  ;;  %v3484_v44 = vld [vmem:[%s5995_s4 + $0x890] sm:$0xff] }
 0xdff   :  { %3209 = vmatpush1.msra.mxu1 %v3123_v7  ;;  %v3303_v7 = vld [vmem:[%s5995_s4 + $0x638] sm:$0xff]  ;;  %3390 = vmatpush1.msra.mxu0 %v3304_v6  ;;  %v3483_v49 = vld [vmem:[%s5995_s4 + $0x880] sm:$0xff]  ;;  %v3329_v6 = vld [vmem:[%s5995_s4 + $0x708] sm:$0xff] }
 0xe00   :  { %3210 = vmatprep.subr.mxu1 %v3122_v37  ;;  %v6118_v37 = vmov 0.0   ;;  %3391 = vmatprep.subr.mxu0 %v3303_v7  ;;  %v3328_v7 = vld [vmem:[%s5995_s4 + $0x700] sm:$0xff] }
 0xe01   :  { %3211 = vmatpush1.msra.mxu1 %v3121_v25  ;;  %v3302_v25 = vld [vmem:[%s5995_s4 + $0x630] sm:$0xff]  ;;  %3599 = vst.msk [vmem:[%s5997_s6 + $0x2] sm:$0x1] %vm3598_vm2, %v6118_v37  ;;  %3600 = vst.msk [vmem:[%s5997_s6 + $0x6] sm:$0x1] %vm3598_vm2, %v6118_v37 }
 0xe02   :  { %3212 = vmatprep.subr.mxu1 %v3120_v16  ;;  %v3301_v16 = vld [vmem:[%s5995_s4 + $0x628] sm:$0xff]  ;;  %3392 = vmatpush1.msra.mxu0 %v3302_v25  ;;  %v3482_v25 = vld [vmem:[%s5995_s4 + $0x870] sm:$0xff] }
 0xe03   :  { %3213 = vmatpush1.msra.mxu1 %v3119_v50  ;;  %v3300_v50 = vld [vmem:[%s5995_s4 + $0x620] sm:$0xff]  ;;  %3393 = vmatprep.subr.mxu0 %v3301_v16  ;;  %v3327_v16 = vld [vmem:[%s5995_s4 + $0x6f8] sm:$0xff] }
 0xe04   :  { %3214 = vmatprep.subr.mxu1 %v3118_v51  ;;  %v3299_v51 = vld [vmem:[%s5995_s4 + $0x618] sm:$0xff]  ;;  %3394 = vmatpush1.msra.mxu0 %v3300_v50  ;;  %v3326_v50 = vld [vmem:[%s5995_s4 + $0x6f0] sm:$0xff] }
 0xe05   :  { %3215 = vmatpush1.msra.mxu1 %v3117_v26  ;;  %v3298_v26 = vld [vmem:[%s5995_s4 + $0x610] sm:$0xff]  ;;  %3395 = vmatprep.subr.mxu0 %v3299_v51  ;;  %v3481_v51 = vld [vmem:[%s5995_s4 + $0x860] sm:$0xff] }
 0xe06   :  { %3216 = vmatprep.subr.mxu1 %v3116_v54  ;;  %3396 = vmatpush1.msra.mxu0 %v3298_v26  ;;  %v3653_v54 = vld [vmem:[%s5994_s3 + $0x1] ss:$8 sm:$0x3] }
 0xe07   :  { %3217 = vmatpush1.msra.mxu1 %v3115_v52  ;;  %v2991_v52 = vrot.slane %v3653_v54, %v6117_v2  ;;  %v3325_v26 = vld [vmem:[%s5995_s4 + $0x6e8] sm:$0xff] }
 0xe08   :  { %3218 = vmatprep.subr.mxu1 %v3114_v55  ;;  %v2995_v55 = vrot.slane %v3653_v54, %v5459_v35  ;;  %v3324_v54 = vld [vmem:[%s5995_s4 + $0x6e0] sm:$0xff] }
 0xe09   :  { %3219 = vmatpush1.msra.mxu1 %v3113_v30 }
 0xe0a   :  { %3220 = vmatprep.subr.mxu1 %v3112_v56 }
 0xe0b   :  { %3221 = vmatpush1.msra.mxu1 %v3111_v57 }
 0xe0c   :  { %3222 = vmatprep.subr.mxu1 %v3110_v22 }
 0xe0d   :  { %3223 = vmatpush1.msra.mxu1 %v3109_v32 }
 0xe0e   :  { %3224 = vmatprep.subr.mxu1 %v3108_v59 }
 0xe0f   :  { %3225 = vmatpush1.msra.mxu1 %v3107_v53 }
 0xe10   :  { %3230 = vmatprep.subr.mxu1 %v3166_v15 }
 0xe11   :  { %3231 = vmatpush2.msra.mxu1 %v3165_v58 }
 0xe12   :  { %3232 = vmatprep.subr.mxu1 %v3164_v60 }
 0xe13   :  { %3233 = vmatpush2.msra.mxu1 %v3163_v8 }
 0xe14   :  { %3234 = vmatprep.subr.mxu1 %v3162_v1 }
 0xe15   :  { %3235 = vmatpush2.msra.mxu1 %v3161_v4 }
 0xe16   :  { %3236 = vmatprep.subr.mxu1 %v3160_v5 }
 0xe17   :  { %3237 = vmatpush2.msra.mxu1 %v3159_v61 }
 0xe18   :  { %3238 = vmatprep.subr.mxu1 %v3158_v20 }
 0xe19   :  { %3239 = vmatpush2.msra.mxu1 %v3157_v36 }
 0xe1a   :  { %3240 = vmatprep.subr.mxu1 %v3156_v13 }
 0xe1b   :  { %3241 = vmatpush2.msra.mxu1 %v3155_v38 }
 0xe1c   :  { %3242 = vmatprep.subr.mxu1 %v3154_v19 }
 0xe1d   :  { %3243 = vmatpush2.msra.mxu1 %v3153_v11  ;;  %v3297_v11 = vld [vmem:[%s5995_s4 + $0x608] sm:$0xff] }
 0xe1e   :  { %3244 = vmatprep.subr.mxu1 %v3152_v29  ;;  %v3296_v29 = vld [vmem:[%s5995_s4 + $0x600] sm:$0xff]  ;;  %3397 = vmatprep.subr.mxu0 %v3297_v11 }
 0xe1f   :  { %3245 = vmatpush2.msra.mxu1 %v3151_v27  ;;  %3398 = vmatpush1.msra.mxu0 %v3296_v29  ;;  %v3295_v27 = vld [vmem:[%s5995_s4 + $0x5f8] sm:$0xff] }
 0xe20   :  { %3246 = vmatprep.subr.mxu1 %v3150_v40  ;;  %3399 = vmatprep.subr.mxu0 %v3295_v27  ;;  %v3294_v40 = vld [vmem:[%s5995_s4 + $0x5f0] sm:$0xff] }
 0xe21   :  { %3247 = vmatpush2.msra.mxu1 %v3149_v45  ;;  %3400 = vmatpush1.msra.mxu0 %v3294_v40  ;;  %v3293_v45 = vld [vmem:[%s5995_s4 + $0x5e8] sm:$0xff] }
 0xe22   :  { %3248 = vmatprep.subr.mxu1 %v3148_v9  ;;  %3401 = vmatprep.subr.mxu0 %v3293_v45  ;;  %v3289_v9 = vld [vmem:[%s5995_s4 + $0x5c8] sm:$0xff] }
 0xe23   :  { %3249 = vmatpush2.msra.mxu1 %v3147_v18  ;;  %3402 = vmatpush1.msra.mxu0 %v3292_v47  ;;  %v3347_v18 = vld [vmem:[%s5995_s4 + $0x798] sm:$0xff] }
 0xe24   :  { %3250 = vmatprep.subr.mxu1 %v3146_v28  ;;  %3403 = vmatprep.subr.mxu0 %v3291_v41  ;;  %v3345_v28 = vld [vmem:[%s5995_s4 + $0x788] sm:$0xff] }
 0xe25   :  { %3251 = vmatpush2.msra.mxu1 %v3145_v10  ;;  %3404 = vmatpush1.msra.mxu0 %v3290_v21  ;;  %v3343_v10 = vld [vmem:[%s5995_s4 + $0x778] sm:$0xff] }
 0xe26   :  { %3252 = vmatprep.subr.mxu1 %v3144_v42  ;;  %3405 = vmatprep.subr.mxu0 %v3289_v9  ;;  %v3341_v42 = vld [vmem:[%s5995_s4 + $0x768] sm:$0xff] }
 0xe27   :  { %3253 = vmatpush2.msra.mxu1 %v3143_v34  ;;  %3406 = vmatpush1.msra.mxu0 %v3288_v23  ;;  %v3339_v34 = vld [vmem:[%s5995_s4 + $0x758] sm:$0xff] }
 0xe28   :  { %3254 = vmatprep.subr.mxu1 %v3142_v62  ;;  %3411 = vmatprep.subr.mxu0 %v3347_v18  ;;  %v3337_v62 = vld [vmem:[%s5995_s4 + $0x748] sm:$0xff] }
 0xe29   :  { %3255 = vmatpush2.msra.mxu1 %v3141_v12  ;;  %3412 = vmatpush2.msra.mxu0 %v3346_v43  ;;  %v3335_v12 = vld [vmem:[%s5995_s4 + $0x738] sm:$0xff] }
 0xe2a   :  { %3256 = vmatprep.subr.mxu1 %v3140_v24  ;;  %3413 = vmatprep.subr.mxu0 %v3345_v28  ;;  %v3333_v24 = vld [vmem:[%s5995_s4 + $0x728] sm:$0xff]  ;;  %v3473_v28 = vld [vmem:[%s5995_s4 + $0x7e0] sm:$0xff] }
 0xe2b   :  { %3257 = vmatpush2.msra.mxu1 %v3139_v63  ;;  %3414 = vmatpush2.msra.mxu0 %v3344_v48  ;;  %v3331_v63 = vld [vmem:[%s5995_s4 + $0x718] sm:$0xff]  ;;  %v3472_v48 = vld [vmem:[%s5995_s4 + $0x7d0] sm:$0xff] }
 0xe2c   :  { %3514 = vmatprep.subr.mxu1 %v6118_v37  ;;  %3415 = vmatprep.subr.mxu0 %v3343_v10  ;;  %v3471_v10 = vld [vmem:[%s5995_s4 + $0x7c0] sm:$0xff] }
 0xe2d   :  { %3416 = vmatpush2.msra.mxu0 %v3342_v39  ;;  %v3470_v39 = vld [vmem:[%s5995_s4 + $0x7b0] sm:$0xff] }
 0xe2e   :  { %3417 = vmatprep.subr.mxu0 %v3341_v42  ;;  %v3469_v42 = vld [vmem:[%s5995_s4 + $0x7a0] sm:$0xff] }
 0xe2f   :  { %3418 = vmatpush2.msra.mxu0 %v3340_v0  ;;  %v3498_v0 = vld [vmem:[%s5995_s4 + $0x970] sm:$0xff] }
 0xe30   :  { %3419 = vmatprep.subr.mxu0 %v3339_v34  ;;  %v3497_v34 = vld [vmem:[%s5995_s4 + $0x960] sm:$0xff] }
 0xe31   :  { %3420 = vmatpush2.msra.mxu0 %v3338_v31  ;;  %v3496_v31 = vld [vmem:[%s5995_s4 + $0x950] sm:$0xff] }
 0xe32   :  { %3421 = vmatprep.subr.mxu0 %v3337_v62  ;;  %v3495_v62 = vld [vmem:[%s5995_s4 + $0x940] sm:$0xff] }
 0xe33   :  { %3422 = vmatpush2.msra.mxu0 %v3336_v46  ;;  %v3494_v46 = vld [vmem:[%s5995_s4 + $0x930] sm:$0xff] }
 0xe34   :  { %3423 = vmatprep.subr.mxu0 %v3335_v12  ;;  %v3493_v12 = vld [vmem:[%s5995_s4 + $0x920] sm:$0xff] }
 0xe35   :  { %3424 = vmatpush2.msra.mxu0 %v3334_v14  ;;  %v3492_v14 = vld [vmem:[%s5995_s4 + $0x910] sm:$0xff] }
 0xe36   :  { %3425 = vmatprep.subr.mxu0 %v3333_v24  ;;  %v3491_v24 = vld [vmem:[%s5995_s4 + $0x900] sm:$0xff] }
 0xe37   :  { %3426 = vmatpush2.msra.mxu0 %v3332_v33  ;;  %v3490_v33 = vld [vmem:[%s5995_s4 + $0x8f0] sm:$0xff] }
 0xe38   :  { %3427 = vmatprep.subr.mxu0 %v3331_v63  ;;  %v3489_v63 = vld [vmem:[%s5995_s4 + $0x8e0] sm:$0xff] }
 0xe39   :  { %3428 = vmatpush2.msra.mxu0 %v3330_v17  ;;  %v3488_v17 = vld [vmem:[%s5995_s4 + $0x8d0] sm:$0xff] }
 0xe3a   :  { %3429 = vmatprep.subr.mxu0 %v3329_v6  ;;  %v3485_v6 = vld [vmem:[%s5995_s4 + $0x8a0] sm:$0xff] }
 0xe3b   :  { %3430 = vmatpush2.msra.mxu0 %v3328_v7  ;;  %v3657_v7 = vld [vmem:[%s5994_s3 + $0x3] ss:$8 sm:$0x3] }
 0xe3c   :  { %3431 = vmatprep.subr.mxu0 %v3327_v16  ;;  %v3358_v16 = vrot.slane %v3657_v7, %v5459_v35 }
 0xe3d   :  { %3432 = vmatpush2.msra.mxu0 %v3326_v50 }
 0xe3e   :  { %3433 = vmatprep.subr.mxu0 %v3325_v26 }
 0xe3f   :  { %3434 = vmatpush2.msra.mxu0 %v3324_v54 }
 0xeb0   :  { %v3079_v30 = vpop.f32.mrf.mxu1 }
 0xeb1   :  { %v3080_v57 = vadd.f32 %v3079_v30, %v2991_v52  ;;  %v3480_v52 = vld [vmem:[%s5995_s4 + $0x850] sm:$0xff] }
 0xeb2   :  { %v3081_v56 = vpop.f32.mrf.mxu1  ;;  %v3322_v30 = vld [vmem:[%s5995_s4 + $0x6d0] sm:$0xff] }
 0xeb3   :  { %v3082_v22 = vadd.f32 %v3081_v56, %v2995_v55  ;;  %v3323_v55 = vld [vmem:[%s5995_s4 + $0x6d8] sm:$0xff]  ;;  %v3479_v56 = vld [vmem:[%s5995_s4 + $0x840] sm:$0xff] }
 0xeb4   :  { %3435 = vmatprep.subr.mxu0 %v3323_v55 }
 0xeb5   :  { %v3086_v32 = vcombine.low %v3080_v57, %v3082_v22  ;;  %v3321_v57 = vld [vmem:[%s5995_s4 + $0x6c8] sm:$0xff]  ;;  %v3320_v22 = vld [vmem:[%s5995_s4 + $0x6c0] sm:$0xff]  ;;  %3436 = vmatpush2.msra.mxu0 %v3322_v30 }
 0xeb6   :  { %3437 = vmatprep.subr.mxu0 %v3321_v57 }
 0xeb7   :  { %v3093_v59 = vrot.slane %v3086_v32, %v6115_v3  ;;  %v3478_v32 = vld [vmem:[%s5995_s4 + $0x830] sm:$0xff]  ;;  %3438 = vmatpush2.msra.mxu0 %v3320_v22 }
 0xeb9   :  { %v3094_v53 = vcombine.high %v3093_v59, %v3093_v59  ;;  %v3099_v15 = vmul.f32 0.70710677, %v3093_v59  ;;  %v3097_v4 = vmul.f32 0.5, %v3093_v59  ;;  %v3477_v59 = vld [vmem:[%s5995_s4 + $0x820] sm:$0xff] }
 0xebb   :  { %v3100_v58 = vmul.f32 0.70710677, %v3094_v53  ;;  %3931 = verf.f32 %v3099_v15  ;;  %v3098_v5 = vmul.f32 0.5, %v3094_v53  ;;  %v3476_v53 = vld [vmem:[%s5995_s4 + $0x810] sm:$0xff]  ;;  %v3475_v15 = vld [vmem:[%s5995_s4 + $0x800] sm:$0xff] }
 0xebd   :  { %3933 = verf.f32 %v3100_v58  ;;  %v3474_v58 = vld [vmem:[%s5995_s4 + $0x7f0] sm:$0xff] }
 0xec8   :  { %v3932_v60 = vpop.eup %3931 }
 0xec9   :  { %v3103_v8 = vadd.f32 1.0, %v3932_v60  ;;  %v3655_v60 = vld [vmem:[%s5994_s3 + $0x2] ss:$8 sm:$0x3] }
 0xeca   :  { %v3934_v1 = vpop.eup %3933 }
 0xecb   :  { %v3104_v61 = vadd.f32 1.0, %v3934_v1  ;;  %v3105_v20 = vmul.f32 %v3103_v8, %v3097_v4  ;;  %v3173_v8 = vrot.slane %v3655_v60, %v6117_v2  ;;  %v3177_v1 = vrot.slane %v3655_v60, %v5459_v35 }
 0xecd   :  { %v3106_v36 = vmul.f32 %v3104_v61, %v3098_v5 }
 0xecf   :  { %v3182_v13 = vcombine.low %v3105_v20, %v3106_v36 }
 0xed1   :  { %v3189_v38 = vrot.slane %v3182_v13, %v6115_v3 }
 0xed3   :  { %v3190_v19 = vcombine.high %v3189_v38, %v3189_v38 }
 0xed5   :  { %3656 = vmatprep.mubr.msk.f32.mxu1 %vm3010_vm1, %v3190_v19 }
 0xed6   :  { %3259 = vmatmul.mubr.f32.vlgmr.msra.gmra.mxu1 %v3189_v38 }
 0xed7   :  { %3515 = vmatpush1.msra.mxu1 %v3484_v44  ;;  %v3487_v44 = vld [vmem:[%s5995_s4 + $0x8c0] sm:$0xff] }
 0xed8   :  { %3516 = vmatprep.subr.mxu1 %v6118_v37 }
 0xed9   :  { %3517 = vmatpush1.msra.mxu1 %v3483_v49  ;;  %v3486_v49 = vld [vmem:[%s5995_s4 + $0x8b0] sm:$0xff] }
 0xeda   :  { %3518 = vmatprep.subr.mxu1 %v6118_v37 }
 0xedb   :  { %3519 = vmatpush1.msra.mxu1 %v3482_v25  ;;  %v3354_v25 = vrot.slane %v3657_v7, %v6117_v2 }
 0xedc   :  { %3520 = vmatprep.subr.mxu1 %v6118_v37 }
 0xedd   :  { %3521 = vmatpush1.msra.mxu1 %v3481_v51 }
 0xede   :  { %3522 = vmatprep.subr.mxu1 %v6118_v37 }
 0xedf   :  { %3523 = vmatpush1.msra.mxu1 %v3480_v52 }
 0xee0   :  { %3524 = vmatprep.subr.mxu1 %v6118_v37 }
 0xee1   :  { %3525 = vmatpush1.msra.mxu1 %v3479_v56 }
 0xee2   :  { %3526 = vmatprep.subr.mxu1 %v6118_v37 }
 0xee3   :  { %3527 = vmatpush1.msra.mxu1 %v3478_v32 }
 0xee4   :  { %3528 = vmatprep.subr.mxu1 %v6118_v37 }
 0xee5   :  { %3529 = vmatpush1.msra.mxu1 %v3477_v59 }
 0xee6   :  { %3530 = vmatprep.subr.mxu1 %v6118_v37 }
 0xee7   :  { %3531 = vmatpush1.msra.mxu1 %v3476_v53 }
 0xee8   :  { %3532 = vmatprep.subr.mxu1 %v6118_v37 }
 0xee9   :  { %3533 = vmatpush1.msra.mxu1 %v3475_v15 }
 0xeea   :  { %3534 = vmatprep.subr.mxu1 %v6118_v37 }
 0xeeb   :  { %3535 = vmatpush1.msra.mxu1 %v3474_v58 }
 0xeec   :  { %3536 = vmatprep.subr.mxu1 %v6118_v37 }
 0xeed   :  { %3537 = vmatpush1.msra.mxu1 %v3473_v28 }
 0xeee   :  { %3538 = vmatprep.subr.mxu1 %v6118_v37 }
 0xeef   :  { %3539 = vmatpush1.msra.mxu1 %v3472_v48 }
 0xef0   :  { %3540 = vmatprep.subr.mxu1 %v6118_v37 }
 0xef1   :  { %3541 = vmatpush1.msra.mxu1 %v3471_v10 }
 0xef2   :  { %3542 = vmatprep.subr.mxu1 %v6118_v37 }
 0xef3   :  { %3543 = vmatpush1.msra.mxu1 %v3470_v39 }
 0xef4   :  { %3544 = vmatprep.subr.mxu1 %v6118_v37 }
 0xef5   :  { %3545 = vmatpush1.msra.mxu1 %v3469_v42 }
 0xef6   :  { %3550 = vmatprep.subr.mxu1 %v6118_v37 }
 0xef7   :  { %3551 = vmatpush2.msra.mxu1 %v3498_v0 }
 0xef8   :  { %3552 = vmatprep.subr.mxu1 %v6118_v37 }
 0xef9   :  { %3553 = vmatpush2.msra.mxu1 %v3497_v34 }
 0xefa   :  { %3554 = vmatprep.subr.mxu1 %v6118_v37 }
 0xefb   :  { %3555 = vmatpush2.msra.mxu1 %v3496_v31 }
 0xefc   :  { %3556 = vmatprep.subr.mxu1 %v6118_v37 }
 0xefd   :  { %3557 = vmatpush2.msra.mxu1 %v3495_v62 }
 0xefe   :  { %3558 = vmatprep.subr.mxu1 %v6118_v37 }
 0xeff   :  { %3559 = vmatpush2.msra.mxu1 %v3494_v46 }
 0xf00   :  { %3560 = vmatprep.subr.mxu1 %v6118_v37 }
 0xf01   :  { %3561 = vmatpush2.msra.mxu1 %v3493_v12 }
 0xf02   :  { %3562 = vmatprep.subr.mxu1 %v6118_v37 }
 0xf03   :  { %3563 = vmatpush2.msra.mxu1 %v3492_v14 }
 0xf04   :  { %3564 = vmatprep.subr.mxu1 %v6118_v37 }
 0xf05   :  { %3565 = vmatpush2.msra.mxu1 %v3491_v24 }
 0xf06   :  { %3566 = vmatprep.subr.mxu1 %v6118_v37 }
 0xf07   :  { %3567 = vmatpush2.msra.mxu1 %v3490_v33 }
 0xf08   :  { %3568 = vmatprep.subr.mxu1 %v6118_v37 }
 0xf09   :  { %3569 = vmatpush2.msra.mxu1 %v3489_v63 }
 0xf0a   :  { %3570 = vmatprep.subr.mxu1 %v6118_v37 }
 0xf0b   :  { %3571 = vmatpush2.msra.mxu1 %v3488_v17 }
 0xf0c   :  { %3572 = vmatprep.subr.mxu1 %v6118_v37 }
 0xf0d   :  { %3573 = vmatpush2.msra.mxu1 %v3487_v44 }
 0xf0e   :  { %3574 = vmatprep.subr.mxu1 %v6118_v37 }
 0xf0f   :  { %3575 = vmatpush2.msra.mxu1 %v3486_v49 }
 0xf10   :  { %3576 = vmatprep.subr.mxu1 %v6118_v37 }
 0xf11   :  { %3577 = vmatpush2.msra.mxu1 %v3485_v6 }
 0xf96   :  { %v3260_v4 = vpop.f32.mrf.mxu1 }
 0xf97   :  { %v3261_v61 = vadd.f32 %v3260_v4, %v3173_v8 }
 0xf98   :  { %v3262_v5 = vpop.f32.mrf.mxu1 }
 0xf99   :  { %v3263_v20 = vadd.f32 %v3262_v5, %v3177_v1 }
 0xf9b   :  { %v3267_v36 = vcombine.low %v3261_v61, %v3263_v20 }
 0xf9d   :  { %v3274_v13 = vrot.slane %v3267_v36, %v6115_v3 }
 0xf9f   :  { %v3275_v38 = vcombine.high %v3274_v13, %v3274_v13  ;;  %v3280_v19 = vmul.f32 0.70710677, %v3274_v13  ;;  %v3278_v45 = vmul.f32 0.5, %v3274_v13 }
 0xfa1   :  { %v3281_v11 = vmul.f32 0.70710677, %v3275_v38  ;;  %3935 = verf.f32 %v3280_v19  ;;  %v3279_v47 = vmul.f32 0.5, %v3275_v38 }
 0xfa3   :  { %3937 = verf.f32 %v3281_v11 }
 0xfae   :  { %v3936_v29 = vpop.eup %3935 }
 0xfaf   :  { %v3284_v27 = vadd.f32 1.0, %v3936_v29 }
 0xfb0   :  { %v3938_v40 = vpop.eup %3937 }
 0xfb1   :  { %v3285_v41 = vadd.f32 1.0, %v3938_v40  ;;  %v3286_v21 = vmul.f32 %v3284_v27, %v3278_v45 }
 0xfb3   :  { %v3287_v9 = vmul.f32 %v3285_v41, %v3279_v47 }
 0xfb5   :  { %v3363_v23 = vcombine.low %v3286_v21, %v3287_v9 }
 0xfb7   :  { %v3370_v18 = vrot.slane %v3363_v23, %v6115_v3 }
 0xfb9   :  { %v3371_v43 = vcombine.high %v3370_v18, %v3370_v18 }
 0xfbb   :  { %3658 = vmatprep.mubr.msk.f32.mxu0 %vm3010_vm1, %v3371_v43 }
 0xfbc   :  { %3440 = vmatmul.mubr.f32.vlgmr.msra.gmra.mxu0 %v3370_v18 }
0x107c   :  { %v3441_v50 = vpop.f32.mrf.mxu0 }
0x107d   :  { %v3442_v26 = vadd.f32 %v3441_v50, %v3354_v25 }
0x107e   :  { %v3443_v51 = vpop.f32.mrf.mxu0 }
0x107f   :  { %v3444_v54 = vadd.f32 %v3443_v51, %v3358_v16 }
0x1081   :  { %v3448_v52 = vcombine.low %v3442_v26, %v3444_v54 }
0x1083   :  { %v3455_v55 = vrot.slane %v3448_v52, %v6115_v3 }
0x1085   :  { %v3456_v30 = vcombine.high %v3455_v55, %v3455_v55  ;;  %v3461_v56 = vmul.f32 0.70710677, %v3455_v55  ;;  %v3459_v53 = vmul.f32 0.5, %v3455_v55 }
0x1087   :  { %v3462_v57 = vmul.f32 0.70710677, %v3456_v30  ;;  %3939 = verf.f32 %v3461_v56  ;;  %v3460_v15 = vmul.f32 0.5, %v3456_v30 }
0x1089   :  { %3941 = verf.f32 %v3462_v57 }
0x1094   :  { %v3940_v22 = vpop.eup %3939 }
0x1095   :  { %v3465_v32 = vadd.f32 1.0, %v3940_v22 }
0x1096   :  { %v3942_v59 = vpop.eup %3941 }
0x1097   :  { %v3466_v2 = vadd.f32 1.0, %v3942_v59  ;;  %v3467_v58 = vmul.f32 %v3465_v32, %v3459_v53 }
0x1099   :  { %v3468_v35 = vmul.f32 %v3466_v2, %v3460_v15 }
0x109b   :  { %v3502_v60 = vcombine.low %v3467_v58, %v3468_v35 }
0x109d   :  { %v3509_v8 = vrot.slane %v3502_v60, %v6115_v3 }
0x109f   :  { %v3510_v1 = vcombine.high %v3509_v8, %v3509_v8 }
0x10a1   :  { %3659 = vmatprep.mubr.msk.f32.mxu1 %vm3010_vm1, %v3510_v1 }
0x10a2   :  { %3579 = vmatmul.mubr.f32.vlgmr.msra.gmra.mxu1 %v3509_v8 }
0x10a3   :  { %3954 = shalt.err (!%p3951_p4)
}
0x10a4   :  { %3610 = dma.vmem_to_hbm [thread:$0]  %s3608_s12, 96, %s5996_s5, [#allocation4]   ;;  %v3499_v4 = vld [vmem:[%s5994_s3 + $0x4] ss:$0 sm:$0xff]  ;;  %vm3595_vm4 = vcmask 648192  }
0x1162   :  { %v3580_v5 = vpop.f32.mrf.mxu1 }
0x1163   :  { %v3581_v37 = vadd.f32 %v3580_v5, %v3499_v4 }
0x1164   :  { %v3582_v61 = vpop.f32.mrf.mxu1 }
0x1165   :  { %v3591_v20 = vrot.slane %v3581_v37, %v6115_v3 }
0x1167   :  { %v3592_v36 = vcombine.high %v3591_v20, %v3591_v20  ;;  %3596 = vst.msk [vmem:[%s5997_s6] sm:$0x3] %vm3595_vm4, %v3591_v20 }
0x1169   :  { %3597 = vst.msk [vmem:[%s5997_s6 + $0x4] sm:$0x3] %vm3595_vm4, %v3592_v36 }
0x116a   :  { %3963 = dma.done.wait [#allocation4], 96  }
0x116b   :  { %3964 = vsyncadd [#allocation4], 4294967200 }
0x116c   :  { %3618 = vsyncpa [#allocation4], 1 }

</bundles_post_ra>
